<compile_context>
chip_gen: v7x
topology: tpu7x:2x2x1
jax: 0.10.0
libtpu: 0.0.40
codegen_flags: <defaults>
</compile_context>

<pallas_src>
import jax
import jax.numpy as jnp
from jax.experimental import pallas as pl
from jax.experimental.pallas import tpu as pltpu
import numpy as np


def _mish(v):
    # torch.nn.Mish: x * tanh(softplus(x)).
    # Algebraic rewrite: tanh(log(1+e^x)) = (u^2 - 1) / (u^2 + 1) with u = 1 + e^x.
    # 1 exp + 1 (approx) reciprocal per element instead of exp + log1p + tanh.
    v_c = jnp.minimum(v, 20.0)                 # avoid exp overflow; mish(x)≈x for x>20
    u = 1.0 + jnp.exp(v_c)
    u2 = u * u
    y = v * (u2 - 1.0) * pl.reciprocal(u2 + 1.0, approx=True)
    return jnp.where(v > 20.0, v, y)


def _residual_block_kernel(x_ref, w1_ref, b1_ref, w2_ref, b2_ref, o_ref, h1pad_ref):
    # x_ref   : (1, H+2, W+2, Cp)  spatially pre-padded input tile (NHWC, lane-dense C)
    # w*_ref  : (9*Cp, Cp)         im2col-reshaped conv weights (row order: kh, kw, cin)
    # b*_ref  : (1, Cp)            biases (f32)
    # o_ref   : (1, H, W, Cp)
    # h1pad_ref: (H+2, W+2, Cp)    persistent VMEM scratch = zero-bordered padded h1
    _, H, W, Cp = o_ref.shape
    mm_dtype = w1_ref.dtype

    def conv3x3(padded_f32, w_ref, b_ref):
        # Build the (H*W, 9*Cp) patch matrix from 9 shifted views and do a single
        # big-K MXU matmul (K = 9*Cp) with f32 accumulation.
        cols = [padded_f32[dh:dh + H, dw:dw + W, :].reshape(H * W, Cp)
                for dh in range(3) for dw in range(3)]
        patches = jnp.concatenate(cols, axis=1).astype(mm_dtype)
        acc = jnp.dot(patches, w_ref[...], preferred_element_type=jnp.float32)
        return acc + b_ref[...].astype(jnp.float32)          # (H*W, Cp) + (1, Cp)

    x_pad = x_ref[0].astype(jnp.float32)                     # (H+2, W+2, Cp)

    # ---- conv1 + Mish ----
    h1 = _mish(conv3x3(x_pad, w1_ref, b1_ref))               # (H*W, Cp) f32

    # ---- build padded h1 in the persistent scratch (conv2 "SAME" padding) ----
    # Border rows 0 and H+1 are zeroed every step (cheap full-slab stores; done
    # every step so it is correct even when the batch axis is sharded across
    # TensorCores). The interior store covers the full W+2 sublane extent, so all
    # stores stay sublane-aligned (no masked vst).
    zrow = jnp.zeros((1, W + 2, Cp), jnp.float32)
    zcolh = jnp.zeros((H, 1, Cp), jnp.float32)
    h1pad_ref[0:1, :, :] = zrow
    h1pad_ref[H + 1:H + 2, :, :] = zrow
    h1_rows = jnp.concatenate([zcolh, h1.reshape(H, W, Cp), zcolh], axis=1)
    h1pad_ref[pl.ds(1, H), :, :] = h1_rows                   # (H, W+2, Cp)

    # ---- conv2 + Mish ----
    h2 = _mish(conv3x3(h1pad_ref[...], w2_ref, b2_ref))      # (H*W, Cp) f32

    # ---- residual add ----
    residual = x_pad[1:H + 1, 1:W + 1, :].reshape(H * W, Cp)
    o_ref[0] = (h2 + residual).reshape(H, W, Cp).astype(o_ref.dtype)


def residual_block_pallas(x_nchw, w1, b1, w2, b2, *, matmul_dtype=jnp.float32):
    """x_nchw: (B, C, H, W). w1/w2: (3, 3, C, C) HWIO. b1/b2: (C,).

    matmul_dtype: jnp.float32 for exact module numerics; jnp.bfloat16 to use the
    fast bf16 MXU path on v6e/v7x (accumulation and Mish/residual stay f32).
    """
    B, C, H, W = x_nchw.shape
    Cp = max(128, ((C + 127) // 128) * 128)        # lane-dense channel padding
    pad_c = Cp - C

    # NCHW -> NHWC (channels on the lane axis); pad spatial halo (+1) and channels.
    x_nhwc = jnp.transpose(x_nchw, (0, 2, 3, 1))
    x_pad = jnp.pad(x_nhwc, ((0, 0), (1, 1), (1, 1), (0, pad_c)))

    def prep_w(w):
        # (3,3,C,C) -> zero-pad channels -> (9*Cp, Cp), row order (kh, kw, cin)
        w_p = jnp.zeros((3, 3, Cp, Cp), jnp.float32).at[:, :, :C, :C].set(w)
        return w_p.reshape(9 * Cp, Cp).astype(matmul_dtype)

    def prep_b(b):
        return jnp.zeros((1, Cp), jnp.float32).at[0, :C].set(b)

    w1p, w2p = prep_w(w1), prep_w(w2)
    b1p, b2p = prep_b(b1), prep_b(b2)

    mm_itemsize = jnp.dtype(matmul_dtype).itemsize
    cost = pl.CostEstimate(
        flops=int(2 * B * 2 * H * W * (9 * Cp) * Cp),          # two convs
        transcendentals=int(4 * B * H * W * Cp),               # exp + rcp, two Mish
        bytes_accessed=int(x_pad.size * 4 + B * H * W * Cp * 4
                           + 2 * 9 * Cp * Cp * mm_itemsize + 2 * Cp * 4),
    )

    out_nhwc = pl.pallas_call(
        _residual_block_kernel,
        out_shape=jax.ShapeDtypeStruct((B, H, W, Cp), x_nchw.dtype),
        grid_spec=pltpu.PrefetchScalarGridSpec(
            num_scalar_prefetch=0,
            grid=(B,),
            in_specs=[
                pl.BlockSpec((1, H + 2, W + 2, Cp), lambda b: (b, 0, 0, 0)),
                pl.BlockSpec((9 * Cp, Cp), lambda b: (0, 0)),
                pl.BlockSpec((1, Cp), lambda b: (0, 0)),
                pl.BlockSpec((9 * Cp, Cp), lambda b: (0, 0)),
                pl.BlockSpec((1, Cp), lambda b: (0, 0)),
            ],
            out_specs=pl.BlockSpec((1, H, W, Cp), lambda b: (b, 0, 0, 0)),
            scratch_shapes=[pltpu.VMEM((H + 2, W + 2, Cp), jnp.float32)],
        ),
        compiler_params=pltpu.CompilerParams(
            dimension_semantics=("parallel",),
            vmem_limit_bytes=64 * 1024 * 1024,
        ),
        cost_estimate=cost,
    )(x_pad, w1p, b1p, w2p, b2p)

    # Drop channel padding, back to NCHW.
    return jnp.transpose(out_nhwc[..., :C], (0, 3, 1, 2))


def _reference(x_nchw, w1, b1, w2, b2):
    # Pure-JAX reference (NCHW conv) for sanity checking.
    def conv(inp, w_hwio, b):
        y = jax.lax.conv_general_dilated(
            inp, w_hwio, window_strides=(1, 1), padding="SAME",
            dimension_numbers=("NCHW", "HWIO", "NCHW"),
        )
        return y + b[None, :, None, None]

    def mish(v):
        return v * jnp.tanh(jnp.logaddexp(v, 0.0))

    residual = x_nchw
    h = mish(conv(x_nchw, w1, b1))
    h = mish(conv(h, w2, b2))
    return h + residual


if __name__ == "__main__":
    B, C, H, W = 2, 4, 16, 16
    key = jax.random.PRNGKey(0)
    kx, k1, kb1, k2, kb2 = jax.random.split(key, 5)

    x = jax.random.normal(kx, (B, C, H, W), dtype=jnp.float32)

    # Conv2d(channels, channels, 3) style init, stored in HWIO layout (3,3,Cin,Cout).
    fan_in = C * 3 * 3
    bound = 1.0 / np.sqrt(fan_in)
    w1 = jax.random.uniform(k1, (3, 3, C, C), jnp.float32, -bound, bound)
    b1 = jax.random.uniform(kb1, (C,), jnp.float32, -bound, bound)
    w2 = jax.random.uniform(k2, (3, 3, C, C), jnp.float32, -bound, bound)
    b2 = jax.random.uniform(kb2, (C,), jnp.float32, -bound, bound)

    ref = jax.block_until_ready(_reference(x, w1, b1, w2, b2))

    # f32 MXU operands (module-accurate; small deviation from the approx-reciprocal Mish).
    out_f32 = jax.block_until_ready(residual_block_pallas(x, w1, b1, w2, b2))
    np.testing.assert_allclose(np.asarray(out_f32), np.asarray(ref), rtol=1e-2, atol=1e-2)

    # bf16 MXU operands (v6e/v7x fast path), f32 accumulation + f32 Mish/residual.
    out_bf16 = jax.block_until_ready(
        residual_block_pallas(x, w1, b1, w2, b2, matmul_dtype=jnp.bfloat16))
    np.testing.assert_allclose(np.asarray(out_bf16), np.asarray(ref), rtol=5e-2, atol=5e-2)

    print("KERNEL_OK")
</pallas_src>

<mosaic_0001>
module attributes {stable_mosaic.version = 11 : i64} {
  func.func @_residual_block_kernel(%arg0: i32, %arg1: memref<1x18x18x128xf32, #tpu.memory_space<vmem>>, %arg2: memref<1152x128xf32, #tpu.memory_space<vmem>>, %arg3: memref<1x128xf32, #tpu.memory_space<vmem>>, %arg4: memref<1152x128xf32, #tpu.memory_space<vmem>>, %arg5: memref<1x128xf32, #tpu.memory_space<vmem>>, %arg6: memref<1x16x16x128xf32, #tpu.memory_space<vmem>>, %arg7: memref<18x18x128xf32, #tpu.memory_space<vmem>>) attributes {dimension_semantics = [#tpu.dimension_semantics<parallel>], iteration_bounds = array<i64: 2>, scalar_prefetch = 0 : i64, scratch_operands = 1 : i64, tpu.core_type = #tpu.core_type<tc>, window_params = [{transform_indices = @transform_0, window_bounds = array<i64: 1, 18, 18, 128>}, {pipeline_mode = #tpu.pipeline_mode<synchronous>, transform_indices = @transform_1, window_bounds = array<i64: 1152, 128>}, {pipeline_mode = #tpu.pipeline_mode<synchronous>, transform_indices = @transform_2, window_bounds = array<i64: 1, 128>}, {pipeline_mode = #tpu.pipeline_mode<synchronous>, transform_indices = @transform_3, window_bounds = array<i64: 1152, 128>}, {pipeline_mode = #tpu.pipeline_mode<synchronous>, transform_indices = @transform_4, window_bounds = array<i64: 1, 128>}, {transform_indices = @transform_5, window_bounds = array<i64: 1, 16, 16, 128>}]} {
    %c0 = arith.constant 0 : index
    %c0_0 = arith.constant 0 : index
    %c0_1 = arith.constant 0 : index
    %c0_2 = arith.constant 0 : index
    %0 = vector.load %arg1[%c0, %c0_0, %c0_1, %c0_2] : memref<1x18x18x128xf32, #tpu.memory_space<vmem>>, vector<1x18x18x128xf32>
    %1 = vector.shape_cast %0 : vector<1x18x18x128xf32> to vector<18x18x128xf32>
    %2 = vector.extract_strided_slice %1 {offsets = [0, 0, 0], sizes = [16, 16, 128], strides = [1, 1, 1]} : vector<18x18x128xf32> to vector<16x16x128xf32>
    %3 = vector.shape_cast %2 : vector<16x16x128xf32> to vector<256x128xf32>
    %4 = vector.extract_strided_slice %1 {offsets = [0, 1, 0], sizes = [16, 16, 128], strides = [1, 1, 1]} : vector<18x18x128xf32> to vector<16x16x128xf32>
    %5 = vector.shape_cast %4 : vector<16x16x128xf32> to vector<256x128xf32>
    %6 = vector.extract_strided_slice %1 {offsets = [0, 2, 0], sizes = [16, 16, 128], strides = [1, 1, 1]} : vector<18x18x128xf32> to vector<16x16x128xf32>
    %7 = vector.shape_cast %6 : vector<16x16x128xf32> to vector<256x128xf32>
    %8 = vector.extract_strided_slice %1 {offsets = [1, 0, 0], sizes = [16, 16, 128], strides = [1, 1, 1]} : vector<18x18x128xf32> to vector<16x16x128xf32>
    %9 = vector.shape_cast %8 : vector<16x16x128xf32> to vector<256x128xf32>
    %10 = vector.extract_strided_slice %1 {offsets = [1, 1, 0], sizes = [16, 16, 128], strides = [1, 1, 1]} : vector<18x18x128xf32> to vector<16x16x128xf32>
    %11 = vector.shape_cast %10 : vector<16x16x128xf32> to vector<256x128xf32>
    %12 = vector.extract_strided_slice %1 {offsets = [1, 2, 0], sizes = [16, 16, 128], strides = [1, 1, 1]} : vector<18x18x128xf32> to vector<16x16x128xf32>
    %13 = vector.shape_cast %12 : vector<16x16x128xf32> to vector<256x128xf32>
    %14 = vector.extract_strided_slice %1 {offsets = [2, 0, 0], sizes = [16, 16, 128], strides = [1, 1, 1]} : vector<18x18x128xf32> to vector<16x16x128xf32>
    %15 = vector.shape_cast %14 : vector<16x16x128xf32> to vector<256x128xf32>
    %16 = vector.extract_strided_slice %1 {offsets = [2, 1, 0], sizes = [16, 16, 128], strides = [1, 1, 1]} : vector<18x18x128xf32> to vector<16x16x128xf32>
    %17 = vector.shape_cast %16 : vector<16x16x128xf32> to vector<256x128xf32>
    %18 = vector.extract_strided_slice %1 {offsets = [2, 2, 0], sizes = [16, 16, 128], strides = [1, 1, 1]} : vector<18x18x128xf32> to vector<16x16x128xf32>
    %19 = vector.shape_cast %18 : vector<16x16x128xf32> to vector<256x128xf32>
    %20 = tpu.concatenate %3, %5, %7, %9, %11, %13, %15, %17, %19 in 1 : vector<256x128xf32>, vector<256x128xf32>, vector<256x128xf32>, vector<256x128xf32>, vector<256x128xf32>, vector<256x128xf32>, vector<256x128xf32>, vector<256x128xf32>, vector<256x128xf32> -> vector<256x1152xf32>
    %c0_3 = arith.constant 0 : index
    %c0_4 = arith.constant 0 : index
    %21 = vector.load %arg2[%c0_3, %c0_4] : memref<1152x128xf32, #tpu.memory_space<vmem>>, vector<1152x128xf32>
    %cst = arith.constant dense<0.000000e+00> : vector<256x128xf32>
    %22 = tpu.matmul %20, %21, %cst {dimension_numbers = #tpu.dot_dimension_numbers<[1], [0], [0], [1], [0, 0, 1, 1], [], []>} : vector<256x1152xf32>, vector<1152x128xf32>, vector<256x128xf32> -> vector<256x128xf32>
    %c0_5 = arith.constant 0 : index
    %c0_6 = arith.constant 0 : index
    %23 = vector.load %arg3[%c0_5, %c0_6] : memref<1x128xf32, #tpu.memory_space<vmem>>, vector<1x128xf32>
    %24 = vector.broadcast %23 : vector<1x128xf32> to vector<256x128xf32>
    %25 = arith.addf %22, %24 : vector<256x128xf32>
    %cst_7 = arith.constant 2.000000e+01 : f32
    %26 = vector.broadcast %cst_7 : f32 to vector<256x128xf32>
    %27 = arith.minimumf %25, %26 : vector<256x128xf32>
    %28 = math.exp %27 : vector<256x128xf32>
    %cst_8 = arith.constant 1.000000e+00 : f32
    %29 = vector.broadcast %cst_8 : f32 to vector<256x128xf32>
    %30 = arith.addf %29, %28 : vector<256x128xf32>
    %31 = arith.mulf %30, %30 : vector<256x128xf32>
    %cst_9 = arith.constant 1.000000e+00 : f32
    %32 = vector.broadcast %cst_9 : f32 to vector<256x128xf32>
    %33 = arith.subf %31, %32 : vector<256x128xf32>
    %34 = arith.mulf %25, %33 : vector<256x128xf32>
    %cst_10 = arith.constant 1.000000e+00 : f32
    %35 = vector.broadcast %cst_10 : f32 to vector<256x128xf32>
    %36 = arith.addf %31, %35 : vector<256x128xf32>
    %37 = tpu.reciprocal %36 {approx = true} : vector<256x128xf32> -> vector<256x128xf32>
    %38 = arith.mulf %34, %37 : vector<256x128xf32>
    %cst_11 = arith.constant 2.000000e+01 : f32
    %39 = vector.broadcast %cst_11 : f32 to vector<256x128xf32>
    %40 = arith.cmpf ogt, %25, %39 : vector<256x128xf32>
    %41 = arith.select %40, %25, %38 : vector<256x128xi1>, vector<256x128xf32>
    %cst_12 = arith.constant 0.000000e+00 : f32
    %42 = vector.broadcast %cst_12 : f32 to vector<1x18x128xf32>
    %cst_13 = arith.constant 0.000000e+00 : f32
    %43 = vector.broadcast %cst_13 : f32 to vector<16x1x128xf32>
    %c0_14 = arith.constant 0 : index
    %c0_15 = arith.constant 0 : index
    %c0_16 = arith.constant 0 : index
    %44 = vector.load %arg7[%c0_14, %c0_15, %c0_16] : memref<18x18x128xf32, #tpu.memory_space<vmem>>, vector<1x18x128xf32>
    tpu.vector_store %arg7[%c0_14, %c0_15, %c0_16], %42 {strides = array<i32>} : memref<18x18x128xf32, #tpu.memory_space<vmem>>, vector<1x18x128xf32>,
    %c17 = arith.constant 17 : index
    %c0_17 = arith.constant 0 : index
    %c0_18 = arith.constant 0 : index
    %45 = vector.load %arg7[%c17, %c0_17, %c0_18] : memref<18x18x128xf32, #tpu.memory_space<vmem>>, vector<1x18x128xf32>
    tpu.vector_store %arg7[%c17, %c0_17, %c0_18], %42 {strides = array<i32>} : memref<18x18x128xf32, #tpu.memory_space<vmem>>, vector<1x18x128xf32>,
    %46 = vector.shape_cast %41 : vector<256x128xf32> to vector<16x16x128xf32>
    %47 = tpu.concatenate %43, %46, %43 in 1 : vector<16x1x128xf32>, vector<16x16x128xf32>, vector<16x1x128xf32> -> vector<16x18x128xf32>
    %c1 = arith.constant 1 : index
    %c0_19 = arith.constant 0 : index
    %c0_20 = arith.constant 0 : index
    %48 = vector.load %arg7[%c1, %c0_19, %c0_20] : memref<18x18x128xf32, #tpu.memory_space<vmem>>, vector<16x18x128xf32>
    tpu.vector_store %arg7[%c1, %c0_19, %c0_20], %47 {strides = array<i32>} : memref<18x18x128xf32, #tpu.memory_space<vmem>>, vector<16x18x128xf32>,
    %c0_21 = arith.constant 0 : index
    %c0_22 = arith.constant 0 : index
    %c0_23 = arith.constant 0 : index
    %49 = vector.load %arg7[%c0_21, %c0_22, %c0_23] : memref<18x18x128xf32, #tpu.memory_space<vmem>>, vector<18x18x128xf32>
    %50 = vector.extract_strided_slice %49 {offsets = [0, 0, 0], sizes = [16, 16, 128], strides = [1, 1, 1]} : vector<18x18x128xf32> to vector<16x16x128xf32>
    %51 = vector.shape_cast %50 : vector<16x16x128xf32> to vector<256x128xf32>
    %52 = vector.extract_strided_slice %49 {offsets = [0, 1, 0], sizes = [16, 16, 128], strides = [1, 1, 1]} : vector<18x18x128xf32> to vector<16x16x128xf32>
    %53 = vector.shape_cast %52 : vector<16x16x128xf32> to vector<256x128xf32>
    %54 = vector.extract_strided_slice %49 {offsets = [0, 2, 0], sizes = [16, 16, 128], strides = [1, 1, 1]} : vector<18x18x128xf32> to vector<16x16x128xf32>
    %55 = vector.shape_cast %54 : vector<16x16x128xf32> to vector<256x128xf32>
    %56 = vector.extract_strided_slice %49 {offsets = [1, 0, 0], sizes = [16, 16, 128], strides = [1, 1, 1]} : vector<18x18x128xf32> to vector<16x16x128xf32>
    %57 = vector.shape_cast %56 : vector<16x16x128xf32> to vector<256x128xf32>
    %58 = vector.extract_strided_slice %49 {offsets = [1, 1, 0], sizes = [16, 16, 128], strides = [1, 1, 1]} : vector<18x18x128xf32> to vector<16x16x128xf32>
    %59 = vector.shape_cast %58 : vector<16x16x128xf32> to vector<256x128xf32>
    %60 = vector.extract_strided_slice %49 {offsets = [1, 2, 0], sizes = [16, 16, 128], strides = [1, 1, 1]} : vector<18x18x128xf32> to vector<16x16x128xf32>
    %61 = vector.shape_cast %60 : vector<16x16x128xf32> to vector<256x128xf32>
    %62 = vector.extract_strided_slice %49 {offsets = [2, 0, 0], sizes = [16, 16, 128], strides = [1, 1, 1]} : vector<18x18x128xf32> to vector<16x16x128xf32>
    %63 = vector.shape_cast %62 : vector<16x16x128xf32> to vector<256x128xf32>
    %64 = vector.extract_strided_slice %49 {offsets = [2, 1, 0], sizes = [16, 16, 128], strides = [1, 1, 1]} : vector<18x18x128xf32> to vector<16x16x128xf32>
    %65 = vector.shape_cast %64 : vector<16x16x128xf32> to vector<256x128xf32>
    %66 = vector.extract_strided_slice %49 {offsets = [2, 2, 0], sizes = [16, 16, 128], strides = [1, 1, 1]} : vector<18x18x128xf32> to vector<16x16x128xf32>
    %67 = vector.shape_cast %66 : vector<16x16x128xf32> to vector<256x128xf32>
    %68 = tpu.concatenate %51, %53, %55, %57, %59, %61, %63, %65, %67 in 1 : vector<256x128xf32>, vector<256x128xf32>, vector<256x128xf32>, vector<256x128xf32>, vector<256x128xf32>, vector<256x128xf32>, vector<256x128xf32>, vector<256x128xf32>, vector<256x128xf32> -> vector<256x1152xf32>
    %c0_24 = arith.constant 0 : index
    %c0_25 = arith.constant 0 : index
    %69 = vector.load %arg4[%c0_24, %c0_25] : memref<1152x128xf32, #tpu.memory_space<vmem>>, vector<1152x128xf32>
    %cst_26 = arith.constant dense<0.000000e+00> : vector<256x128xf32>
    %70 = tpu.matmul %68, %69, %cst_26 {dimension_numbers = #tpu.dot_dimension_numbers<[1], [0], [0], [1], [0, 0, 1, 1], [], []>} : vector<256x1152xf32>, vector<1152x128xf32>, vector<256x128xf32> -> vector<256x128xf32>
    %c0_27 = arith.constant 0 : index
    %c0_28 = arith.constant 0 : index
    %71 = vector.load %arg5[%c0_27, %c0_28] : memref<1x128xf32, #tpu.memory_space<vmem>>, vector<1x128xf32>
    %72 = vector.broadcast %71 : vector<1x128xf32> to vector<256x128xf32>
    %73 = arith.addf %70, %72 : vector<256x128xf32>
    %cst_29 = arith.constant 2.000000e+01 : f32
    %74 = vector.broadcast %cst_29 : f32 to vector<256x128xf32>
    %75 = arith.minimumf %73, %74 : vector<256x128xf32>
    %76 = math.exp %75 : vector<256x128xf32>
    %cst_30 = arith.constant 1.000000e+00 : f32
    %77 = vector.broadcast %cst_30 : f32 to vector<256x128xf32>
    %78 = arith.addf %77, %76 : vector<256x128xf32>
    %79 = arith.mulf %78, %78 : vector<256x128xf32>
    %cst_31 = arith.constant 1.000000e+00 : f32
    %80 = vector.broadcast %cst_31 : f32 to vector<256x128xf32>
    %81 = arith.subf %79, %80 : vector<256x128xf32>
    %82 = arith.mulf %73, %81 : vector<256x128xf32>
    %cst_32 = arith.constant 1.000000e+00 : f32
    %83 = vector.broadcast %cst_32 : f32 to vector<256x128xf32>
    %84 = arith.addf %79, %83 : vector<256x128xf32>
    %85 = tpu.reciprocal %84 {approx = true} : vector<256x128xf32> -> vector<256x128xf32>
    %86 = arith.mulf %82, %85 : vector<256x128xf32>
    %cst_33 = arith.constant 2.000000e+01 : f32
    %87 = vector.broadcast %cst_33 : f32 to vector<256x128xf32>
    %88 = arith.cmpf ogt, %73, %87 : vector<256x128xf32>
    %89 = arith.select %88, %73, %86 : vector<256x128xi1>, vector<256x128xf32>
    %90 = vector.extract_strided_slice %1 {offsets = [1, 1, 0], sizes = [16, 16, 128], strides = [1, 1, 1]} : vector<18x18x128xf32> to vector<16x16x128xf32>
    %91 = vector.shape_cast %90 : vector<16x16x128xf32> to vector<256x128xf32>
    %92 = arith.addf %89, %91 : vector<256x128xf32>
    %93 = vector.shape_cast %92 : vector<256x128xf32> to vector<16x16x128xf32>
    %c0_34 = arith.constant 0 : index
    %c0_35 = arith.constant 0 : index
    %c0_36 = arith.constant 0 : index
    %c0_37 = arith.constant 0 : index
    %94 = vector.load %arg6[%c0_34, %c0_35, %c0_36, %c0_37] : memref<1x16x16x128xf32, #tpu.memory_space<vmem>>, vector<1x16x16x128xf32>
    %95 = vector.shape_cast %94 : vector<1x16x16x128xf32> to vector<16x16x128xf32>
    %96 = vector.shape_cast %93 : vector<16x16x128xf32> to vector<1x16x16x128xf32>
    tpu.vector_store %arg6[%c0_34, %c0_35, %c0_36, %c0_37], %96 {strides = array<i32>} : memref<1x16x16x128xf32, #tpu.memory_space<vmem>>, vector<1x16x16x128xf32>,
    return
  }
  func.func @transform_0(%arg0: i32) -> (i32, i32, i32, i32) {
    %c0_i32 = arith.constant 0 : i32
    %c0_i32_0 = arith.constant 0 : i32
    %c0_i32_1 = arith.constant 0 : i32
    %c0_i32_2 = arith.constant 0 : i32
    return %arg0, %c0_i32, %c0_i32_0, %c0_i32_1 : i32, i32, i32, i32
  }
  func.func @transform_1(%arg0: i32) -> (i32, i32) {
    %c0_i32 = arith.constant 0 : i32
    %c0_i32_0 = arith.constant 0 : i32
    %c0_i32_1 = arith.constant 0 : i32
    return %c0_i32, %c0_i32_0 : i32, i32
  }
  func.func @transform_2(%arg0: i32) -> (i32, i32) {
    %c0_i32 = arith.constant 0 : i32
    %c0_i32_0 = arith.constant 0 : i32
    %c0_i32_1 = arith.constant 0 : i32
    return %c0_i32, %c0_i32_0 : i32, i32
  }
  func.func @transform_3(%arg0: i32) -> (i32, i32) {
    %c0_i32 = arith.constant 0 : i32
    %c0_i32_0 = arith.constant 0 : i32
    %c0_i32_1 = arith.constant 0 : i32
    return %c0_i32, %c0_i32_0 : i32, i32
  }
  func.func @transform_4(%arg0: i32) -> (i32, i32) {
    %c0_i32 = arith.constant 0 : i32
    %c0_i32_0 = arith.constant 0 : i32
    %c0_i32_1 = arith.constant 0 : i32
    return %c0_i32, %c0_i32_0 : i32, i32
  }
  func.func @transform_5(%arg0: i32) -> (i32, i32, i32, i32) {
    %c0_i32 = arith.constant 0 : i32
    %c0_i32_0 = arith.constant 0 : i32
    %c0_i32_1 = arith.constant 0 : i32
    %c0_i32_2 = arith.constant 0 : i32
    return %arg0, %c0_i32, %c0_i32_0, %c0_i32_1 : i32, i32, i32, i32
  }
}

</mosaic_0001>

<bundles_post_ra>
// kernel: tpu_custom_call.1
= control target key start
LH: loop header
LB: loop body
LE: loop exit
PB: predicated region body
PF: predicated region fallthrough
CT: control target
= control target key end

     0   :  { %10 = vsyncpa [#allocation4], 0  ;;  %s9569_s0 = inlined_call_operand.hbm [shape: f32[2,18,18,128], index: 0, kind: input, shape index: {}]   ;;  %s9570_s1 = inlined_call_operand.hbm [shape: f32[1152,128], index: 1, kind: input, shape index: {}]   ;;  %s9571_s2 = inlined_call_operand.hbm [shape: f32[1,128], index: 2, kind: input, shape index: {}]   ;;  %s9572_s3 = inlined_call_operand.hbm [shape: f32[1152,128], index: 3, kind: input, shape index: {}]   ;;  %s9573_s4 = inlined_call_operand.hbm [shape: f32[1,128], index: 4, kind: input, shape index: {}]   ;;  %s9574_s5 = inlined_call_operand.hbm [shape: f32[2,16,16,128], index: 5, kind: output, shape index: {}]  }
   0x1   :  { %12 = vsyncpa [#allocation4 + $0x1], 0 }
   0x2   :  { %13 = vsyncpa [#allocation7], 0 }
   0x3   :  { %14 = vsyncpa [#allocation10], 0 }
   0x4   :  { %15 = vsyncpa [#allocation5], 0 }
   0x5   :  { %17 = vsyncpa [#allocation5 + $0x1], 0  ;;  %s6717_s18 = smov 0   ;;  %s6719_s19 = smov 0  }
   0x6   :  { %s6721_s20 = smov 0   ;;  %s6723_s21 = smov 0  }
   0x7 LB: > { %s6738_s22 = sadd.s32 4294967295, %s6673_s21   ;;  %s4745_s23 = sadd.s32 4294967294, %s6673_s21   ;;  %s6673_s21 = sphi %s6723_s21, %s9987_s21   ;;  %s6669_s20 = sphi %s6721_s20, %s9986_s20   ;;  %s6665_s19 = sphi %s6719_s19, %s9985_s19   ;;  %s6661_s18 = sphi %s6717_s18, %s9984_s18  }
   0x8   : > { %p43_p0 = scmp.ne.s32.totalorder %s6665_s19, %s6661_s18  ;;  %p9575_p1 = scmp.eq.s32.totalorder %s6738_s22, 0 }
   0x9   : > { %p157_p3 = scmp.eq.s32.totalorder %s4745_s23, 1  ;;  %p4746_p5 = scmp.ge.s32.totalorder %s6673_s21, 1 }
   0xa   : > { %p6747_p4 = por %p9575_p1, %p43_p0  ;;  %p164_p7 = scmp.lt.s32.totalorder %s6673_s21, 3 }
   0xb   : > { %p6752_p6 = por %p157_p3, %p43_p0  ;;  %s6675_s27 = smov [#allocation6]  }
   0xc   : > { %s9744_s24 = scalar_select %p6747_p4, 1, 0 }
   0xd   : > { %s9745_s25 = scalar_select %p6752_p6, 1, 0 }
   0xe   : > { %p6757_p8 = pnand %p4746_p5, %p164_p7  ;;  %s176_s28 = sshll.u32 %s6675_s27, 4  ;;  %s6761_s28 = int_to_ptr.vmem [resolvable:$true] %s176_s28 }
   0xf   : > { %s6676_s30 = smov [#allocation9]   ;;  %s6677_s7 = smov [#allocation8]  }
  0x10   : > { %s9746_s26 = scalar_select %p6757_p8, 1, 0 }
  0x11   : > { %p6022_p9 = pneg %p6757_p8  ;;  %s200_s6 = sshll.u32 %s6676_s30, 4  ;;  %s6772_s6 = int_to_ptr.vmem [resolvable:$true] %s200_s6 }
  0x12   : > { %s6774_s8 = sshll.u32 %s6677_s7, 4  ;;  %s6457_s11 = scalar_lea.hbm %s9570_s1, 18432  ;;  %s191_s8 = int_to_ptr.vmem [resolvable:$true] %s6774_s8 }
  0x13   : > { %p6768_p11 = pnand %p6022_p9, %p9575_p1  ;;  %p6458_p12 = scmp.ne.s32.totalorder %s9570_s1, %s6457_s11 }
  0x14   : > { %p6464_p5 = scmp.lt.u32.totalorder %s6457_s11, %s9570_s1 }
  0x15   : > { %p6784_p13 = pneg %p6768_p11 }
  0x17   : > { %p6460_p0 = pnand %p6784_p13, %p6458_p12 }
  0x19   : > { %p6461_p3 = pneg %p6460_p0 }
  0x1b   : > { %p6466_p7 = pnand %p6464_p5, %p6461_p3 }
  0x1d   : > { %6469 = shalt.err (!%p6466_p7)
}
  0x1e   : > { %s6470_s17 = scalar_lea.vmem %s6761_s28, 18432  ;;  %p6478_p2 = scmp.lt.s32.totalorder %s6761_s28, %s6761_s28 }
  0x1f   : > { %p6471_p9 = scmp.ne.s32.totalorder %s6761_s28, %s6470_s17  ;;  %p6479_p6 = scmp.lt.s32.totalorder %s6470_s17, %s6470_s17 }
  0x21   : > { %p6473_p10 = pnand %p6471_p9, %p6784_p13  ;;  %p6480_p12 = por %p6479_p6, %p6478_p2 }
  0x23   : > { %p6474_p1 = pneg %p6473_p10 }
  0x25   : > { %p6481_p0 = pnand %p6480_p12, %p6474_p1 }
  0x27   : > { %6484 = shalt.err (!%p6481_p0)
}
  0x28   : > { %s9578_s23 = smov 128   ;;  %s6679_s27 = smov 8  }
  0x29   : > { %6025 = dma.hbm_to_vmem [thread:$0]  (!%p6768_p11), %s9570_s1, 18432, %s6761_s28, [#allocation7], %s9578_s23, %s9578_s23, %s6679_s27  }
  0x2a   : > { %s6485_s11 = scalar_lea.hbm %s9572_s3, 18432 }
  0x2b   : > { %p6486_p1 = scmp.ne.s32.totalorder %s9572_s3, %s6485_s11  ;;  %p6492_p10 = scmp.lt.u32.totalorder %s6485_s11, %s9572_s3 }
  0x2d   : > { %p6488_p2 = pnand %p6486_p1, %p6784_p13 }
  0x2f   : > { %p6489_p6 = pneg %p6488_p2 }
  0x31   : > { %p6494_p3 = pnand %p6492_p10, %p6489_p6 }
  0x33   : > { %6497 = shalt.err (!%p6494_p3)
}
  0x34   : > { %s6498_s28 = scalar_lea.vmem %s6772_s6, 18432  ;;  %p6506_p12 = scmp.lt.s32.totalorder %s6772_s6, %s6772_s6 }
  0x35   : > { %p6499_p5 = scmp.ne.s32.totalorder %s6772_s6, %s6498_s28  ;;  %p6507_p0 = scmp.lt.s32.totalorder %s6498_s28, %s6498_s28 }
  0x37   : > { %p6501_p7 = pnand %p6499_p5, %p6784_p13  ;;  %p6508_p1 = por %p6507_p0, %p6506_p12 }
  0x39   : > { %p6502_p9 = pneg %p6501_p7 }
  0x3b   : > { %p6509_p2 = pnand %p6508_p1, %p6502_p9 }
  0x3d   : > { %6512 = shalt.err (!%p6509_p2)
}
  0x3e   : > { %6031 = dma.hbm_to_vmem [thread:$0]  (!%p6768_p11), %s9572_s3, 18432, %s6772_s6, [#allocation10], %s9578_s23, %s9578_s23, %s6679_s27  }
  0x3f   : > { %s6513_s10 = scalar_lea.hbm %s9571_s2, 16 }
  0x40   : > { %p6514_p6 = scmp.ne.s32.totalorder %s9571_s2, %s6513_s10  ;;  %p6520_p5 = scmp.lt.u32.totalorder %s6513_s10, %s9571_s2 }
  0x42   : > { %p6516_p10 = pnand %p6514_p6, %p6784_p13 }
  0x44   : > { %p6517_p3 = pneg %p6516_p10 }
  0x46   : > { %p6522_p7 = pnand %p6520_p5, %p6517_p3 }
  0x48   : > { %6525 = shalt.err (!%p6522_p7)
}
  0x49   : > { %s6526_s16 = scalar_lea.vmem %s191_s8, 16  ;;  %s6533_s6 = scalar_lea.vmem %s191_s8, 32 }
  0x4a   : > { %p6527_p9 = scmp.ne.s32.totalorder %s191_s8, %s6526_s16  ;;  %p6534_p1 = scmp.lt.s32.totalorder %s191_s8, %s191_s8 }
  0x4b   : > { %p6535_p2 = scmp.lt.s32.totalorder %s6533_s6, %s6526_s16 }
  0x4c   : > { %p6529_p12 = pnand %p6527_p9, %p6784_p13 }
  0x4d   : > { %p6536_p4 = por %p6535_p2, %p6534_p1 }
  0x4e   : > { %p6530_p0 = pneg %p6529_p12 }
  0x50   : > { %p6537_p8 = pnand %p6536_p4, %p6530_p0 }
  0x52   : > { %6540 = shalt.err (!%p6537_p8)
}
  0x53   : > { %6028 = dma.hbm_to_vmem [thread:$0]  (!%p6768_p11), %s9571_s2, 16, %s191_s8, [#allocation7]  }
  0x54   : > { %s6680_s30 = smov [#allocation11]   ;;  %s6541_s11 = scalar_lea.hbm %s9573_s4, 16 }
  0x55   : > { %s214_s7 = sshll.u32 %s6680_s30, 4  ;;  %p6542_p6 = scmp.ne.s32.totalorder %s9573_s4, %s6541_s11  ;;  %s215_s7 = int_to_ptr.vmem [resolvable:$true] %s214_s7 }
  0x56   : > { %p6548_p10 = scmp.lt.u32.totalorder %s6541_s11, %s9573_s4 }
  0x57   : > { %p6544_p4 = pnand %p6542_p6, %p6784_p13 }
  0x59   : > { %p6545_p8 = pneg %p6544_p4 }
  0x5b   : > { %p6550_p3 = pnand %p6548_p10, %p6545_p8 }
  0x5d   : > { %6553 = shalt.err (!%p6550_p3)
}
  0x5e   : > { %s6554_s8 = scalar_lea.vmem %s215_s7, 16  ;;  %s6561_s6 = scalar_lea.vmem %s215_s7, 32 }
  0x5f   : > { %p6555_p5 = scmp.ne.s32.totalorder %s215_s7, %s6554_s8  ;;  %p6562_p12 = scmp.lt.s32.totalorder %s215_s7, %s215_s7 }
  0x60   : > { %p6563_p0 = scmp.lt.s32.totalorder %s6561_s6, %s6554_s8 }
  0x61   : > { %p6557_p7 = pnand %p6555_p5, %p6784_p13 }
  0x62   : > { %p6564_p1 = por %p6563_p0, %p6562_p12 }
  0x63   : > { %p6558_p9 = pneg %p6557_p7 }
  0x65   : > { %p6565_p2 = pnand %p6564_p1, %p6558_p9 }
  0x67   : > { %6568 = shalt.err (!%p6565_p2)
}
  0x68   : > { %6034 = dma.hbm_to_vmem [thread:$0]  (!%p6768_p11), %s9573_s4, 16, %s215_s7, [#allocation10]  }
  0x69   : > { %s6872_s14 = sadd.s32 1, %s6673_s21   ;;  %s30_s30 = sadd.s32 1, %s6669_s20 }
  0x6a   : > { %s27_s29 = ssub.s32 %s6673_s21, %s6872_s14  ;;  %p37_p13 = scmp.ne.s32.totalorder %s6669_s20, %s6665_s19 }
  0x6b   : > { %p28_p6 = scmp.eq.s32.totalorder %s27_s29, 0  ;;  %p38_p4 = scmp.eq.s32.totalorder %s6673_s21, 0 }
  0x6c   : > { %p9749_p8 = scmp.eq.s32.totalorder %s6738_s22, 1  ;;  %p6047_p3 = scmp.lt.s32.totalorder %s6673_s21, 2 }
  0x6d   : > { %s6888_s10 = scalar_select %p28_p6, %s6669_s20, %s30_s30  }
  0x6e   : > { %p6882_p10 = por %p9749_p8, %p37_p13  ;;  %p39_p5 = por %p38_p4, %p37_p13 }
  0x6f   : > { %s225_s11 = sand.u32 1, %s6669_s20   ;;  %s6000_s7 = smul.u32 6912, %s6673_s21 }
  0x70   : > { %s5999_s12 = smul.u32 432, %s225_s11  ;;  %p6892_p11 = pnand %p6047_p3, %p39_p5 }
  0x71   : > { %s6899_s8 = scalar_lea.hbm %s9569_s0, %s6000_s7  ;;  %s6903_s17 = scalar_lea.sflag [#allocation4], %s225_s11 }
  0x72   : > { %s229_s6 = scalar_lea.vmem [#allocation3], %s5999_s12  ;;  %s6569_s30 = scalar_lea.hbm %s6899_s8, 6912 }
  0x73   : > { %s236_s28 = sshll.u32 %s229_s6, 4  ;;  %p6570_p7 = scmp.ne.s32.totalorder %s6899_s8, %s6569_s30  ;;  %s6901_s28 = int_to_ptr.vmem [resolvable:$true] %s236_s28 }
  0x74   : > { %p6571_p9 = pneg %p6892_p11  ;;  %s6574_s15 = scalar_lea.hbm %s9569_s0, 13824 }
  0x75   : > { %p6575_p1 = scmp.lt.u32.totalorder %s6899_s8, %s9569_s0  ;;  %p6576_p2 = scmp.lt.u32.totalorder %s6574_s15, %s6569_s30 }
  0x76   : > { %p6572_p12 = pnand %p6571_p9, %p6570_p7  ;;  %p6578_p6 = scmp.lt.u32.totalorder %s6569_s30, %s6899_s8 }
  0x77   : > { %p6577_p13 = por %p6576_p2, %p6575_p1 }
  0x78   : > { %p6573_p0 = pneg %p6572_p12 }
  0x79   : > { %p6579_p4 = por %p6578_p6, %p6577_p13 }
  0x7b   : > { %p6580_p8 = pnand %p6579_p4, %p6573_p0 }
  0x7d   : > { %6583 = shalt.err (!%p6580_p8)
}
  0x7e   : > { %s6584_s11 = scalar_lea.vmem %s6901_s28, 6912  ;;  %s6681_s12 = smov [#allocation3]  }
  0x7f   : > { %p6585_p3 = scmp.ne.s32.totalorder %s6901_s28, %s6584_s11  ;;  %s6589_s6 = sshll.u32 %s6681_s12, 4  ;;  %s6590_s6 = int_to_ptr.vmem [resolvable:$false] %s6589_s6 }
  0x80   : > { %s6591_s23 = scalar_lea.vmem %s6590_s6, 13824  ;;  %p6592_p12 = scmp.lt.s32.totalorder %s6901_s28, %s6590_s6 }
  0x81   : > { %p6587_p5 = pnand %p6585_p3, %p6571_p9  ;;  %p6593_p1 = scmp.lt.s32.totalorder %s6591_s23, %s6584_s11 }
  0x83   : > { %p6588_p7 = pneg %p6587_p5  ;;  %p6594_p2 = por %p6593_p1, %p6592_p12 }
  0x85   : > { %p6595_p13 = pnand %p6594_p2, %p6588_p7 }
  0x87   : > { %6598 = shalt.err (!%p6595_p13)
}
  0x88   : > { %s9752_s30 = smov 128   ;;  %p9753_p9 = scmp.ne.s32.totalorder %s9746_s26, 0 }
  0x89   : > { %6038 = dma.hbm_to_vmem [thread:$0]  (!%p6892_p11), %s6899_s8, 6912, %s6901_s28, %s6903_s17, %s9752_s30, %s9752_s30, %s6679_s27  }
  0x8a   : > { %248 = sbr.rel (%p9753_p9) target bundleno = 1692 (0x69c), region = 40 }
  0x91   : > { %s6937_s29 = sand.u32 1, %s6665_s19   ;;  %p9754_p0 = scmp.ne.s32.totalorder %s9744_s24, 0 }
  0x92   : > { %s6001_s7 = smul.u32 432, %s6937_s29  ;;  %s251_s15 = scalar_lea.sflag [#allocation4], %s6937_s29 }
  0x94   : > { %s6941_s16 = scalar_lea.vmem [#allocation3], %s6001_s7 }
  0x95   : > { %6644 = dma.done.wait (%p9754_p0), %s251_s15, 6912  }
  0x96   : > { %6646 = vsyncadd (%p9754_p0), %s251_s15, 4294960384  ;;  %p9755_p11 = scmp.eq.s32.totalorder %s6738_s22, 0 }
  0x98   : > { %6648 = dma.done.wait (%p9755_p11), [#allocation7], 18448   ;;  %p9756_p6 = pmov %p9755_p11 }
  0x9a   : > { %6650 = vsyncadd (%p9756_p6), [#allocation7], 4294948848  ;;  %p9757_p4 = pmov %p9756_p6 }
  0x9c   : > { %6652 = dma.done.wait (%p9757_p4), [#allocation10], 18448   ;;  %p9758_p8 = pmov %p9757_p4 }
  0x9d   : > { %v9580_v0 = vmov 0.0|0.0   ;;  %v659_v1 = vld [vmem:[#allocation6] sm:$0xff]  ;;  %v660_v2 = vld [vmem:[#allocation6 + $0x8] sm:$0xff]  ;;  %v661_v3 = vld [vmem:[#allocation6 + $0x10] sm:$0xff]  ;;  %vm399_vm0 = vcmask 1046528   ;;  %vm512_vm1 = vcmask 1045504  }
  0x9e   : > { %6654 = vsyncadd (%p9758_p8), [#allocation10], 4294948848  ;;  %5087 = vmatprep.subr.bf16.mxu0 %v9580_v0  ;;  %v5088_v4 = vpack.c.bf16 %v660_v2, %v659_v1  ;;  %v662_v5 = vld [vmem:[#allocation6 + $0x18] sm:$0xff]  ;;  %v663_v7 = vld [vmem:[#allocation6 + $0x20] sm:$0xff]  ;;  %vm2358_vm3 = vcmask 1040384   ;;  %s4758_s24 = sshll.u32 %s6937_s29, 8 }
  0x9f   : > { %v5091_v6 = vpack.c.bf16 %v662_v5, %v661_v3  ;;  %v664_v8 = vld [vmem:[#allocation6 + $0x28] sm:$0xff]  ;;  %v665_v10 = vld [vmem:[#allocation6 + $0x30] sm:$0xff]  ;;  %v666_v11 = vld [vmem:[#allocation6 + $0x38] sm:$0xff]  ;;  %s9246_s26 = scalar_lea.vmem [#allocation12], %s4758_s24  ;;  %s4830_s27 = sshll.u32 %s6738_s22, 12 }
  0xa0   : > { %5089 = vmatpush1.bf16.msra.mxu0 %v5088_v4  ;;  %v5094_v9 = vpack.c.bf16 %v664_v8, %v663_v7  ;;  %v6959_v12 = vld [vmem:[%s6941_s16] sm:$0xff]  ;;  %v5097_v13 = vpack.c.bf16 %v666_v11, %v665_v10  ;;  %v6962_v14 = vld [vmem:[%s6941_s16 + $0x8] sm:$0xff]  ;;  %v299_v53 = vld [vmem:[%s6941_s16 + $0x10] sm:$0x3]  ;;  %s4634_s13 = sshll.u32 %s9246_s26, 4  ;;  %s9520_s17 = scalar_lea.hbm %s9574_s5, %s4830_s27  ;;  %s9522_s13 = int_to_ptr.vmem [resolvable:$true] %s4634_s13 }
  0xa1   : > { %5090 = vmatprep.subr.bf16.mxu0 %v9580_v0  ;;  %v400_v15 = vrot.slane %v6959_v12, 1  ;;  %v667_v16 = vld [vmem:[#allocation6 + $0x40] sm:$0xff]  ;;  %v668_v17 = vld [vmem:[#allocation6 + $0x48] sm:$0xff]  ;;  %v401_v18 = vrot.slane %v6962_v14, 1  ;;  %v669_v21 = vld [vmem:[#allocation6 + $0x50] sm:$0xff]  ;;  %v513_v55 = vrot.slane %v6959_v12, 2 }
  0xa2   : > { %v5100_v20 = vpack.c.bf16 %v668_v17, %v667_v16  ;;  %v670_v22 = vld [vmem:[#allocation6 + $0x58] sm:$0xff]  ;;  %v671_v24 = vld [vmem:[#allocation6 + $0x60] sm:$0xff]  ;;  %v672_v25 = vld [vmem:[#allocation6 + $0x68] sm:$0xff]  ;;  %v514_v56 = vrot.slane %v6962_v14, 2  ;;  %v403_v59 = vrot.slane %v299_v53, 1  ;;  %v516_v8 = vrot.slane %v299_v53, 2 }
  0xa3   : > { %v402_v19 = vsel %vm399_vm0, %v400_v15, %v401_v18  ;;  %v5103_v23 = vpack.c.bf16 %v670_v22, %v669_v21  ;;  %v5106_v26 = vpack.c.bf16 %v672_v25, %v671_v24  ;;  %v673_v27 = vld [vmem:[#allocation6 + $0x70] sm:$0xff]  ;;  %v674_v28 = vld [vmem:[#allocation6 + $0x78] sm:$0xff]  ;;  %v675_v30 = vld [vmem:[#allocation6 + $0x80] sm:$0xff]  ;;  %s4621_s22 = scalar_lea.sflag [#allocation5], %s6937_s29  ;;  %s6599_s11 = scalar_lea.vmem %s9522_s13, 4096 }
  0xa4   : > { %5092 = vmatpush1.bf16.msra.mxu0 %v5091_v6  ;;  %874 = vmatprep.mubr.f32.mxu0 %v402_v19  ;;  %v5109_v29 = vpack.c.bf16 %v674_v28, %v673_v27  ;;  %v676_v31 = vld [vmem:[#allocation6 + $0x88] sm:$0xff]  ;;  %v677_v33 = vld [vmem:[#allocation6 + $0x90] sm:$0xff]  ;;  %v678_v34 = vld [vmem:[#allocation6 + $0x98] sm:$0xff]  ;;  %v404_v63 = vsel %vm399_vm0, %v401_v18, %v403_v59  ;;  %v6998_v5 = vsel %vm512_vm1, %v513_v55, %v514_v56  ;;  %p6600_p3 = scmp.ne.s32.totalorder %s9522_s13, %s6599_s11  ;;  %s6684_s12 = smov [#allocation12]  }
  0xa5   : > { %5093 = vmatprep.subr.bf16.mxu0 %v9580_v0  ;;  %v5112_v32 = vpack.c.bf16 %v676_v31, %v675_v30  ;;  %v5115_v35 = vpack.c.bf16 %v678_v34, %v677_v33  ;;  %v679_v36 = vld [vmem:[#allocation6 + $0xa0] sm:$0xff]  ;;  %v680_v37 = vld [vmem:[#allocation6 + $0xa8] sm:$0xff]  ;;  %v681_v39 = vld [vmem:[#allocation6 + $0xb0] sm:$0xff]  ;;  %s6603_s6 = sshll.u32 %s6684_s12, 4  ;;  %s6604_s6 = int_to_ptr.vmem [resolvable:$false] %s6603_s6 }
  0xa6   : > { %v5118_v38 = vpack.c.bf16 %v680_v37, %v679_v36  ;;  %v682_v40 = vld [vmem:[#allocation6 + $0xb8] sm:$0xff]  ;;  %v683_v42 = vld [vmem:[#allocation6 + $0xc0] sm:$0xff]  ;;  %v684_v43 = vld [vmem:[#allocation6 + $0xc8] sm:$0xff]  ;;  %p6601_p5 = pnand %p6600_p3, %p6882_p10  ;;  %s6605_s23 = scalar_lea.vmem %s6604_s6, 8192 }
  0xa7   : > { %v5121_v41 = vpack.c.bf16 %v682_v40, %v681_v39  ;;  %v5124_v44 = vpack.c.bf16 %v684_v43, %v683_v42  ;;  %v685_v45 = vld [vmem:[#allocation6 + $0xd0] sm:$0xff]  ;;  %v686_v46 = vld [vmem:[#allocation6 + $0xd8] sm:$0xff]  ;;  %v687_v48 = vld [vmem:[#allocation6 + $0xe0] sm:$0xff]  ;;  %p6606_p12 = scmp.lt.s32.totalorder %s9522_s13, %s6604_s6  ;;  %p6607_p1 = scmp.lt.s32.totalorder %s6605_s23, %s6599_s11 }
  0xa8   : > { %5095 = vmatpush1.bf16.msra.mxu0 %v5094_v9  ;;  %v5127_v47 = vpack.c.bf16 %v686_v46, %v685_v45  ;;  %v688_v49 = vld [vmem:[#allocation6 + $0xe8] sm:$0xff]  ;;  %v689_v51 = vld [vmem:[#allocation6 + $0xf0] sm:$0xff]  ;;  %v690_v52 = vld [vmem:[#allocation6 + $0xf8] sm:$0xff]  ;;  %p6602_p7 = pneg %p6601_p5 }
  0xa9   : > { %5096 = vmatprep.subr.bf16.mxu0 %v9580_v0  ;;  %v5130_v50 = vpack.c.bf16 %v688_v49, %v687_v48  ;;  %v5133_v54 = vpack.c.bf16 %v690_v52, %v689_v51  ;;  %v691_v57 = vld [vmem:[#allocation6 + $0x100] sm:$0xff]  ;;  %v692_v58 = vld [vmem:[#allocation6 + $0x108] sm:$0xff]  ;;  %v693_v3 = vld [vmem:[#allocation6 + $0x110] sm:$0xff]  ;;  %p6608_p2 = por %p6607_p1, %p6606_p12 }
  0xaa   : > { %v6986_v60 = vld [vmem:[%s6941_s16 + $0x18] sm:$0xff]  ;;  %v6989_v61 = vld [vmem:[%s6941_s16 + $0x20] sm:$0xff]  ;;  %v5136_v62 = vpack.c.bf16 %v692_v58, %v691_v57  ;;  %v7001_v6 = vld [vmem:[%s6941_s16 + $0x28] sm:$0x3] }
  0xab   : > { %v405_v1 = vrot.slane %v6986_v60, 1  ;;  %v406_v2 = vrot.slane %v6989_v61, 1  ;;  %v694_v4 = vld [vmem:[#allocation6 + $0x118] sm:$0xff]  ;;  %v408_v10 = vrot.slane %v7001_v6, 1  ;;  %v695_v11 = vld [vmem:[#allocation6 + $0x120] sm:$0xff]  ;;  %v697_v21 = vld [vmem:[#allocation6 + $0x130] sm:$0xff]  ;;  %p6609_p13 = pnand %p6608_p2, %p6602_p7 }
  0xac   : > { %5098 = vmatpush1.bf16.msra.mxu0 %v5097_v13  ;;  %v5139_v7 = vpack.c.bf16 %v694_v4, %v693_v3  ;;  %v696_v13 = vld [vmem:[#allocation6 + $0x128] sm:$0xff]  ;;  %v7010_v15 = vld [vmem:[%s6941_s16 + $0x30] sm:$0xff]  ;;  %v698_v22 = vld [vmem:[#allocation6 + $0x138] sm:$0xff] }
  0xad   : > { %5099 = vmatprep.subr.bf16.mxu0 %v9580_v0  ;;  %v7005_v9 = vsel %vm399_vm0, %v405_v1, %v406_v2  ;;  %v7013_v16 = vld [vmem:[%s6941_s16 + $0x38] sm:$0xff]  ;;  %v5142_v17 = vpack.c.bf16 %v696_v13, %v695_v11  ;;  %v7021_v18 = vsel %vm399_vm0, %v406_v2, %v408_v10  ;;  %v410_v19 = vrot.slane %v7010_v15, 1  ;;  %v7037_v28 = vld [vmem:[%s6941_s16 + $0x48] sm:$0xff]  ;;  %v701_v36 = vld [vmem:[#allocation6 + $0x150] sm:$0xff] }
  0xae   : > { %9759 = vst [vmem:[#allocation17_spill] sm:$0xff] %v7005_v9  ;;  %9760 = vst [vmem:[#allocation18_spill] sm:$0xff] %v7021_v18  ;;  %v700_v27 = vld [vmem:[#allocation6 + $0x148] sm:$0xff]  ;;  %v523_v31 = vrot.slane %v7010_v15, 2  ;;  %v415_v34 = vrot.slane %v7037_v28, 1  ;;  %v702_v37 = vld [vmem:[#allocation6 + $0x158] sm:$0xff] }
  0xaf   : > { %v5151_v40 = vpack.c.bf16 %v702_v37, %v701_v36  ;;  %v703_v43 = vld [vmem:[#allocation6 + $0x160] sm:$0xff]  ;;  %v7072_v46 = vld [vmem:[%s6941_s16 + $0x68] sm:$0xff]  ;;  %v705_v51 = vld [vmem:[#allocation6 + $0x170] sm:$0xff] }
  0xb0   : > { %5101 = vmatpush1.bf16.msra.mxu0 %v5100_v20  ;;  %v411_v20 = vrot.slane %v7013_v16, 1  ;;  %v7069_v45 = vld [vmem:[%s6941_s16 + $0x60] sm:$0xff]  ;;  %v706_v52 = vld [vmem:[#allocation6 + $0x178] sm:$0xff]  ;;  %v7083_v53 = vld [vmem:[%s6941_s16 + $0x70] sm:$0x3] }
  0xb1   : > { %5102 = vmatprep.subr.bf16.mxu0 %v9580_v0  ;;  %v420_v49 = vrot.slane %v7069_v45, 1  ;;  %v707_v57 = vld [vmem:[#allocation6 + $0x180] sm:$0xff]  ;;  %v708_v58 = vld [vmem:[#allocation6 + $0x188] sm:$0xff]  ;;  %v709_v4 = vld [vmem:[#allocation6 + $0x190] sm:$0xff] }
  0xb2   : > { %v7032_v24 = vsel %vm399_vm0, %v410_v19, %v411_v20  ;;  %v7093_v59 = vld [vmem:[%s6941_s16 + $0x78] sm:$0xff]  ;;  %v715_v37 = vld [vmem:[#allocation6 + $0x1c0] sm:$0xff]  ;;  %vm8032_vm10 = vmneg %vm2358_vm3 }
  0xb3   : > { %9761 = vst [vmem:[#allocation19_spill] sm:$0xff] %v7032_v24  ;;  %v425_v2 = vrot.slane %v7093_v59, 1  ;;  %v712_v19 = vld [vmem:[#allocation6 + $0x1a8] sm:$0xff] }
  0xb4   : > { %5104 = vmatpush1.bf16.msra.mxu0 %v5103_v23  ;;  %v7027_v23 = vld [vmem:[%s6941_s16 + $0x40] sm:$0x3] }
  0xb5   : > { %5105 = vmatprep.subr.bf16.mxu0 %v9580_v0  ;;  %v413_v25 = vrot.slane %v7027_v23, 1 }
  0xb7   : > { %v7047_v33 = vsel %vm399_vm0, %v411_v20, %v413_v25  ;;  %v7117_v20 = vld [vmem:[%s6941_s16 + $0x90] sm:$0xff] }
  0xb8   : > { %5107 = vmatpush1.bf16.msra.mxu0 %v5106_v26  ;;  %v699_v26 = vld [vmem:[#allocation6 + $0x140] sm:$0xff]  ;;  %9762 = vst [vmem:[#allocation20_spill] sm:$0xff] %v7047_v33  ;;  %v430_v25 = vrot.slane %v7117_v20, 1 }
  0xb9   : > { %5108 = vmatprep.subr.bf16.mxu0 %v9580_v0  ;;  %v5148_v30 = vpack.c.bf16 %v700_v27, %v699_v26  ;;  %v713_v27 = vld [vmem:[#allocation6 + $0x1b0] sm:$0xff] }
  0xbc   : > { %5110 = vmatpush1.bf16.msra.mxu0 %v5109_v29  ;;  %v7040_v29 = vld [vmem:[%s6941_s16 + $0x50] sm:$0xff] }
  0xbd   : > { %5111 = vmatprep.subr.bf16.mxu0 %v9580_v0 }
  0xc0   : > { %5113 = vmatpush1.bf16.msra.mxu0 %v5112_v32  ;;  %v9579_v32 = vrot.slane %v7013_v16, 2 }
  0xc1   : > { %5114 = vmatprep.subr.bf16.mxu0 %v9580_v0 }
  0xc2   : > { %v7058_v39 = vsel %vm512_vm1, %v523_v31, %v9579_v32  ;;  %v7131_v31 = vld [vmem:[%s6941_s16 + $0xa0] sm:$0x3] }
  0xc3   : > { %4959 = vmatprep.mubr.f32.mxu1 %v7058_v39  ;;  %v433_v36 = vrot.slane %v7131_v31, 1  ;;  %v7256_v32 = vld [vmem:[%s6941_s16 + $0x120] sm:$0xff] }
  0xc4   : > { %5116 = vmatpush1.bf16.msra.mxu0 %v5115_v35  ;;  %v416_v35 = vrot.slane %v7040_v29, 1 }
  0xc5   : > { %5117 = vmatprep.subr.bf16.mxu0 %v9580_v0 }
  0xc8   : > { %5119 = vmatpush1.bf16.msra.mxu0 %v5118_v38  ;;  %v7053_v38 = vld [vmem:[%s6941_s16 + $0x58] sm:$0x3] }
  0xc9   : > { %5120 = vmatprep.subr.bf16.mxu0 %v9580_v0  ;;  %v418_v42 = vrot.slane %v7053_v38, 1 }
  0xcb   : > { %v7077_v48 = vsel %vm399_vm0, %v416_v35, %v418_v42  ;;  %v7141_v42 = vld [vmem:[%s6941_s16 + $0xa8] sm:$0xff] }
  0xcc   : > { %5122 = vmatpush1.bf16.msra.mxu0 %v5121_v41  ;;  %v7064_v41 = vsel %vm399_vm0, %v415_v34, %v416_v35  ;;  %9764 = vst [vmem:[#allocation22_spill] sm:$0xff] %v7077_v48 }
  0xcd   : > { %5123 = vmatprep.subr.bf16.mxu0 %v9580_v0  ;;  %9763 = vst [vmem:[#allocation21_spill] sm:$0xff] %v7064_v41 }
  0xd0   : > { %5125 = vmatpush1.bf16.msra.mxu0 %v5124_v44  ;;  %v704_v44 = vld [vmem:[#allocation6 + $0x168] sm:$0xff] }
  0xd1   : > { %5126 = vmatprep.subr.bf16.mxu0 %v9580_v0 }
  0xd4   : > { %5128 = vmatpush1.bf16.msra.mxu0 %v5127_v47  ;;  %v5154_v47 = vpack.c.bf16 %v704_v44, %v703_v43  ;;  %v7144_v43 = vld [vmem:[%s6941_s16 + $0xb0] sm:$0xff] }
  0xd5   : > { %5129 = vmatprep.subr.bf16.mxu0 %v9580_v0 }
  0xd8   : > { %5131 = vmatpush1.bf16.msra.mxu0 %v5130_v50  ;;  %v421_v50 = vrot.slane %v7072_v46, 1 }
  0xd9   : > { %5132 = vmatprep.subr.bf16.mxu0 %v9580_v0 }
  0xda   : > { %v7088_v55 = vsel %vm399_vm0, %v420_v49, %v421_v50  ;;  %v435_v49 = vrot.slane %v7141_v42, 1 }
  0xdb   : > { %9765 = vst [vmem:[#allocation23_spill] sm:$0xff] %v7088_v55 }
  0xdc   : > { %5134 = vmatpush1.bf16.msra.mxu0 %v5133_v54  ;;  %v5157_v54 = vpack.c.bf16 %v706_v52, %v705_v51  ;;  %v717_v51 = vld [vmem:[#allocation6 + $0x1d0] sm:$0xff]  ;;  %v718_v52 = vld [vmem:[#allocation6 + $0x1d8] sm:$0xff] }
  0xdd   : > { %5135 = vmatprep.subr.bf16.mxu0 %v9580_v0 }
  0xdf   : > { %875 = vmatmul.mubr.f32.vlgmr.msra.gmra.mrb[0].mxu0 %v6959_v12  ;;  %v7016_v12 = vsel %vm512_vm1, %v514_v56, %v516_v8  ;;  %v423_v56 = vrot.slane %v7083_v53, 1  ;;  %v7107_v8 = vld [vmem:[%s6941_s16 + $0x88] sm:$0x3] }
  0xe0   : > { %5137 = vmatpush1.bf16.msra.mxu0 %v5136_v62  ;;  %879 = vmatprep.mubr.f32.mxu0 %v404_v63  ;;  %v7096_v62 = vld [vmem:[%s6941_s16 + $0x80] sm:$0xff]  ;;  %v5160_v63 = vpack.c.bf16 %v708_v58, %v707_v57  ;;  %v428_v13 = vrot.slane %v7107_v8, 1 }
  0xe1   : > { %5138 = vmatprep.subr.bf16.mxu0 %v9580_v0  ;;  %v7101_v1 = vsel %vm399_vm0, %v421_v50, %v423_v56  ;;  %v426_v3 = vrot.slane %v7096_v62, 1  ;;  %v436_v50 = vrot.slane %v7144_v43, 1  ;;  %v5175_v56 = vpack.c.bf16 %v718_v52, %v717_v51  ;;  %v7212_v52 = vld [vmem:[%s6941_s16 + $0xf0] sm:$0xff] }
  0xe2   : > { %9766 = vst [vmem:[#allocation24_spill] sm:$0xff] %v7101_v1 }
  0xe3   : > { %880 = vmatmul.mubr.f32.gmra.mrb[2].mxu0 %v6962_v14  ;;  %v5145_v14 = vpack.c.bf16 %v698_v22, %v697_v21  ;;  %v7112_v11 = vsel %vm399_vm0, %v425_v2, %v426_v3  ;;  %v7120_v21 = vld [vmem:[%s6941_s16 + $0x98] sm:$0xff]  ;;  %v7160_v57 = vsel %vm399_vm0, %v435_v49, %v436_v50  ;;  %v7203_v49 = vld [vmem:[%s6941_s16 + $0xe8] sm:$0x3] }
  0xe4   : > { %884 = vmatprep.mubr.f32.mxu0 %v7005_v9  ;;  %5140 = vmatpush1.bf16.msra.mxu0 %v5139_v7  ;;  %v710_v7 = vld [vmem:[#allocation6 + $0x198] sm:$0xff]  ;;  %9767 = vst [vmem:[#allocation25_spill] sm:$0xff] %v7112_v11  ;;  %v431_v26 = vrot.slane %v7120_v21, 1  ;;  %9771 = vst [vmem:[#allocation29_spill] sm:$0xff] %v7160_v57  ;;  %v720_v2 = vld [vmem:[#allocation6 + $0x1e8] sm:$0xff]  ;;  %v448_v51 = vrot.slane %v7203_v49, 1 }
  0xe5   : > { %5141 = vmatprep.subr.bf16.mxu0 %v9580_v0  ;;  %v5163_v10 = vpack.c.bf16 %v710_v7, %v709_v4  ;;  %v7168_v4 = vld [vmem:[%s6941_s16 + $0xc8] sm:$0xff] }
  0xe6   : > { %v7136_v35 = vsel %vm399_vm0, %v430_v25, %v431_v26  ;;  %v7179_v25 = vld [vmem:[%s6941_s16 + $0xd0] sm:$0x3] }
  0xe7   : > { %885 = vmatmul.mubr.f32.gmra.mrb[4].mxu0 %v6986_v60  ;;  %9769 = vst [vmem:[#allocation27_spill] sm:$0xff] %v7136_v35 }
  0xe8   : > { %889 = vmatprep.mubr.f32.mxu0 %v7021_v18  ;;  %5143 = vmatpush1.bf16.msra.mxu0 %v5142_v17  ;;  %v711_v17 = vld [vmem:[#allocation6 + $0x1a0] sm:$0xff] }
  0xe9   : > { %5144 = vmatprep.subr.bf16.mxu0 %v9580_v0  ;;  %v5166_v22 = vpack.c.bf16 %v712_v19, %v711_v17  ;;  %v441_v17 = vrot.slane %v7168_v4, 1  ;;  %v721_v19 = vld [vmem:[#allocation6 + $0x1f0] sm:$0xff] }
  0xeb   : > { %890 = vmatmul.mubr.f32.gmra.mrb[6].mxu0 %v6989_v61 }
  0xec   : > { %894 = vmatprep.mubr.f32.mxu0 %v7032_v24  ;;  %5146 = vmatpush1.bf16.msra.mxu0 %v5145_v14  ;;  %v7125_v14 = vsel %vm399_vm0, %v426_v3, %v428_v13  ;;  %v7165_v3 = vld [vmem:[%s6941_s16 + $0xc0] sm:$0xff] }
  0xed   : > { %5147 = vmatprep.subr.bf16.mxu0 %v9580_v0  ;;  %9768 = vst [vmem:[#allocation26_spill] sm:$0xff] %v7125_v14  ;;  %v440_v13 = vrot.slane %v7165_v3, 1 }
  0xef   : > { %895 = vmatmul.mubr.f32.gmra.mrb[8].mxu0 %v7010_v15 }
  0xf0   : > { %899 = vmatprep.mubr.f32.mxu0 %v7047_v33  ;;  %5149 = vmatpush1.bf16.msra.mxu0 %v5148_v30  ;;  %v714_v30 = vld [vmem:[#allocation6 + $0x1b8] sm:$0xff] }
  0xf1   : > { %5150 = vmatprep.subr.bf16.mxu0 %v9580_v0  ;;  %v5169_v34 = vpack.c.bf16 %v714_v30, %v713_v27  ;;  %v7184_v27 = vsel %vm399_vm0, %v440_v13, %v441_v17  ;;  %v443_v30 = vrot.slane %v7179_v25, 1 }
  0xf2   : > { %9773 = vst [vmem:[#allocation31_spill] sm:$0xff] %v7184_v27 }
  0xf3   : > { %900 = vmatmul.mubr.f32.gmra.mrb[10].mxu0 %v7013_v16 }
  0xf4   : > { %904 = vmatprep.mubr.f32.mxu0 %v7064_v41  ;;  %5152 = vmatpush1.bf16.msra.mxu0 %v5151_v40  ;;  %v716_v40 = vld [vmem:[#allocation6 + $0x1c8] sm:$0xff] }
  0xf5   : > { %5153 = vmatprep.subr.bf16.mxu0 %v9580_v0  ;;  %v5172_v44 = vpack.c.bf16 %v716_v40, %v715_v37  ;;  %v7197_v37 = vsel %vm399_vm0, %v441_v17, %v443_v30 }
  0xf6   : > { %9774 = vst [vmem:[#allocation32_spill] sm:$0xff] %v7197_v37 }
  0xf7   : > { %905 = vmatmul.mubr.f32.gmra.mrb[12].mxu0 %v7037_v28 }
  0xf8   : > { %909 = vmatprep.mubr.f32.mxu0 %v7077_v48  ;;  %5155 = vmatpush1.bf16.msra.mxu0 %v5154_v47  ;;  %v7149_v47 = vsel %vm399_vm0, %v431_v26, %v433_v36  ;;  %v7192_v36 = vld [vmem:[%s6941_s16 + $0xe0] sm:$0xff]  ;;  %v728_v48 = vld [vmem:[#allocation6 + $0x228] sm:$0xff] }
  0xf9   : > { %5156 = vmatprep.subr.bf16.mxu0 %v9580_v0  ;;  %9770 = vst [vmem:[#allocation28_spill] sm:$0xff] %v7149_v47 }
  0xfb   : > { %910 = vmatmul.mubr.f32.gmra.mrb[14].mxu0 %v7040_v29 }
  0xfc   : > { %914 = vmatprep.mubr.f32.mxu0 %v7088_v55  ;;  %5158 = vmatpush1.bf16.msra.mxu0 %v5157_v54  ;;  %v7155_v54 = vld [vmem:[%s6941_s16 + $0xb8] sm:$0x3]  ;;  %v727_v55 = vld [vmem:[#allocation6 + $0x220] sm:$0xff] }
  0xfd   : > { %5159 = vmatprep.subr.bf16.mxu0 %v9580_v0  ;;  %v438_v58 = vrot.slane %v7155_v54, 1 }
  0xff   : > { %915 = vmatmul.mubr.f32.gmra.mrb[16].mxu0 %v7069_v45 }
 0x100   : > { %919 = vmatprep.mubr.f32.mxu0 %v7101_v1  ;;  %5161 = vmatpush1.bf16.msra.mxu0 %v5160_v63  ;;  %v719_v63 = vld [vmem:[#allocation6 + $0x1e0] sm:$0xff]  ;;  %v726_v1 = vld [vmem:[#allocation6 + $0x218] sm:$0xff] }
 0x101   : > { %5162 = vmatprep.subr.bf16.mxu0 %v9580_v0  ;;  %v5178_v7 = vpack.c.bf16 %v720_v2, %v719_v63  ;;  %v450_v63 = vrot.slane %v7212_v52, 1 }
 0x103   : > { %920 = vmatmul.mubr.f32.gmra.mrb[18].mxu0 %v7072_v46 }
 0x104   : > { %924 = vmatprep.mubr.f32.mxu0 %v7112_v11  ;;  %5164 = vmatpush1.bf16.msra.mxu0 %v5163_v10  ;;  %v7173_v10 = vsel %vm399_vm0, %v436_v50, %v438_v58 }
 0x105   : > { %5165 = vmatprep.subr.bf16.mxu0 %v9580_v0  ;;  %9772 = vst [vmem:[#allocation30_spill] sm:$0xff] %v7173_v10 }
 0x107   : > { %925 = vmatmul.mubr.f32.gmra.mrb[20].mxu0 %v7093_v59 }
 0x108   : > { %929 = vmatprep.mubr.f32.mxu0 %v7125_v14  ;;  %5167 = vmatpush1.bf16.msra.mxu0 %v5166_v22  ;;  %v722_v22 = vld [vmem:[#allocation6 + $0x1f8] sm:$0xff] }
 0x109   : > { %5168 = vmatprep.subr.bf16.mxu0 %v9580_v0  ;;  %v5181_v26 = vpack.c.bf16 %v722_v22, %v721_v19  ;;  %v7234_v19 = vld [vmem:[%s6941_s16 + $0x108] sm:$0xff]  ;;  %v7237_v22 = vld [vmem:[%s6941_s16 + $0x110] sm:$0xff]  ;;  %v7335_v14 = vld [vmem:[%s6941_s16 + $0x178] sm:$0x3] }
 0x10a   : > { %v455_v30 = vrot.slane %v7234_v19, 1  ;;  %v478_v11 = vrot.slane %v7335_v14, 1 }
 0x10b   : > { %930 = vmatmul.mubr.f32.gmra.mrb[22].mxu0 %v7096_v62 }
 0x10c   : > { %934 = vmatprep.mubr.f32.mxu0 %v7136_v35  ;;  %5170 = vmatpush1.bf16.msra.mxu0 %v5169_v34  ;;  %v7189_v34 = vld [vmem:[%s6941_s16 + $0xd8] sm:$0xff]  ;;  %v7325_v35 = vld [vmem:[%s6941_s16 + $0x170] sm:$0xff] }
 0x10d   : > { %5171 = vmatprep.subr.bf16.mxu0 %v9580_v0  ;;  %v445_v40 = vrot.slane %v7189_v34, 1 }
 0x10f   : > { %935 = vmatmul.mubr.f32.gmra.mrb[24].mxu0 %v7117_v20 }
 0x110   : > { %939 = vmatprep.mubr.f32.mxu0 %v7149_v47  ;;  %5173 = vmatpush1.bf16.msra.mxu0 %v5172_v44  ;;  %v446_v44 = vrot.slane %v7192_v36, 1 }
 0x111   : > { %5174 = vmatprep.subr.bf16.mxu0 %v9580_v0 }
 0x112   : > { %v7208_v50 = vsel %vm399_vm0, %v445_v40, %v446_v44  ;;  %v7220_v58 = vsel %vm399_vm0, %v446_v44, %v448_v51  ;;  %v456_v40 = vrot.slane %v7237_v22, 1  ;;  %v7247_v44 = vld [vmem:[%s6941_s16 + $0x118] sm:$0x3] }
 0x113   : > { %940 = vmatmul.mubr.f32.gmra.mrb[26].mxu0 %v7120_v21  ;;  %9775 = vst [vmem:[#allocation33_spill] sm:$0xff] %v7208_v50  ;;  %9776 = vst [vmem:[#allocation34_spill] sm:$0xff] %v7220_v58 }
 0x114   : > { %944 = vmatprep.mubr.f32.mxu0 %v7160_v57  ;;  %5176 = vmatpush1.bf16.msra.mxu0 %v5175_v56  ;;  %v7215_v56 = vld [vmem:[%s6941_s16 + $0xf8] sm:$0xff]  ;;  %v7252_v51 = vsel %vm399_vm0, %v455_v30, %v456_v40  ;;  %v7269_v30 = vld [vmem:[%s6941_s16 + $0x130] sm:$0x3] }
 0x115   : > { %5177 = vmatprep.subr.bf16.mxu0 %v9580_v0  ;;  %v451_v2 = vrot.slane %v7215_v56, 1  ;;  %9779 = vst [vmem:[#allocation37_spill] sm:$0xff] %v7252_v51 }
 0x117   : > { %945 = vmatmul.mubr.f32.gmra.mrb[28].mxu0 %v7141_v42  ;;  %v7230_v13 = vsel %vm399_vm0, %v450_v63, %v451_v2  ;;  %v458_v63 = vrot.slane %v7247_v44, 1 }
 0x118   : > { %949 = vmatprep.mubr.f32.mxu0 %v7173_v10  ;;  %5179 = vmatpush1.bf16.msra.mxu0 %v5178_v7  ;;  %v7225_v7 = vld [vmem:[%s6941_s16 + $0x100] sm:$0x3]  ;;  %9777 = vst [vmem:[#allocation35_spill] sm:$0xff] %v7230_v13 }
 0x119   : > { %5180 = vmatprep.subr.bf16.mxu0 %v9580_v0  ;;  %v453_v17 = vrot.slane %v7225_v7, 1 }
 0x11b   : > { %950 = vmatmul.mubr.f32.gmra.mrb[30].mxu0 %v7144_v43 }
 0x11c   : > { %954 = vmatprep.mubr.f32.mxu0 %v7184_v27  ;;  %5182 = vmatpush1.bf16.msra.mxu0 %v5181_v26  ;;  %v7242_v26 = vsel %vm399_vm0, %v451_v2, %v453_v17  ;;  %v7259_v2 = vld [vmem:[%s6941_s16 + $0x128] sm:$0xff]  ;;  %v7264_v17 = vsel %vm399_vm0, %v456_v40, %v458_v63  ;;  %v7281_v40 = vld [vmem:[%s6941_s16 + $0x140] sm:$0xff]  ;;  %v7300_v27 = vld [vmem:[%s6941_s16 + $0x150] sm:$0xff] }
 0x11d   : > { %5183 = vmatprep.subr.bf16.mxu0 %v9580_v0  ;;  %9778 = vst [vmem:[#allocation36_spill] sm:$0xff] %v7242_v26  ;;  %9780 = vst [vmem:[#allocation38_spill] sm:$0xff] %v7264_v17  ;;  %v460_v0 = vrot.slane %v7256_v32, 1 }
 0x11f   : > { %955 = vmatmul.mubr.f32.gmra.mrb[32].mxu0 %v7165_v3 }
 0x120   : > { %959 = vmatprep.mubr.f32.mxu0 %v7197_v37 }
 0x123   : > { %960 = vmatmul.mubr.f32.gmra.mrb[34].mxu0 %v7168_v4 }
 0x124   : > { %964 = vmatprep.mubr.f32.mxu0 %v7208_v50  ;;  %v466_v50 = vrot.slane %v7281_v40, 1 }
 0x127   : > { %965 = vmatmul.mubr.f32.gmra.mrb[36].mxu0 %v7189_v34 }
 0x128   : > { %969 = vmatprep.mubr.f32.mxu0 %v7220_v58  ;;  %v7278_v58 = vld [vmem:[%s6941_s16 + $0x138] sm:$0xff] }
 0x12b   : > { %970 = vmatmul.mubr.f32.gmra.mrb[38].mxu0 %v7192_v36 }
 0x12c   : > { %974 = vmatprep.mubr.f32.mxu0 %v7230_v13 }
 0x12f   : > { %975 = vmatmul.mubr.f32.gmra.mrb[40].mxu0 %v7212_v52 }
 0x130   : > { %979 = vmatprep.mubr.f32.mxu0 %v7242_v26  ;;  %v461_v26 = vrot.slane %v7259_v2, 1 }
 0x132   : > { %v7274_v13 = vsel %vm399_vm0, %v460_v0, %v461_v26  ;;  %v7291_v0 = vld [vmem:[%s6941_s16 + $0x148] sm:$0x3] }
 0x133   : > { %980 = vmatmul.mubr.f32.gmra.mrb[42].mxu0 %v7215_v56  ;;  %9781 = vst [vmem:[#allocation39_spill] sm:$0xff] %v7274_v13 }
 0x134   : > { %984 = vmatprep.mubr.f32.mxu0 %v7252_v51  ;;  %v463_v51 = vrot.slane %v7269_v30, 1 }
 0x136   : > { %v7286_v63 = vsel %vm399_vm0, %v461_v26, %v463_v51  ;;  %v7303_v26 = vld [vmem:[%s6941_s16 + $0x158] sm:$0xff] }
 0x137   : > { %985 = vmatmul.mubr.f32.gmra.mrb[44].mxu0 %v7234_v19  ;;  %9782 = vst [vmem:[#allocation40_spill] sm:$0xff] %v7286_v63  ;;  %v471_v10 = vrot.slane %v7303_v26, 1 }
 0x138   : > { %989 = vmatprep.mubr.f32.mxu0 %v7264_v17  ;;  %v465_v17 = vrot.slane %v7278_v58, 1 }
 0x13a   : > { %v7296_v37 = vsel %vm399_vm0, %v465_v17, %v466_v50  ;;  %v7313_v17 = vld [vmem:[%s6941_s16 + $0x160] sm:$0x3] }
 0x13b   : > { %990 = vmatmul.mubr.f32.gmra.mrb[46].mxu0 %v7237_v22  ;;  %9783 = vst [vmem:[#allocation41_spill] sm:$0xff] %v7296_v37  ;;  %v473_v47 = vrot.slane %v7313_v17, 1 }
 0x13c   : > { %994 = vmatprep.mubr.f32.mxu0 %v7274_v13  ;;  %v468_v13 = vrot.slane %v7291_v0, 1 }
 0x13e   : > { %v7308_v51 = vsel %vm399_vm0, %v466_v50, %v468_v13  ;;  %v7330_v50 = vsel %vm399_vm0, %v471_v10, %v473_v47 }
 0x13f   : > { %995 = vmatmul.mubr.f32.gmra.mrb[48].mxu0 %v7256_v32  ;;  %9784 = vst [vmem:[#allocation42_spill] sm:$0xff] %v7308_v51  ;;  %9786 = vst [vmem:[#allocation44_spill] sm:$0xff] %v7330_v50 }
 0x140   : > { %999 = vmatprep.mubr.f32.mxu0 %v7286_v63  ;;  %v470_v63 = vrot.slane %v7300_v27, 1 }
 0x142   : > { %v7318_v57 = vsel %vm399_vm0, %v470_v63, %v471_v10  ;;  %v723_v10 = vld [vmem:[#allocation6 + $0x200] sm:$0xff] }
 0x143   : > { %1000 = vmatmul.mubr.f32.gmra.mrb[50].mxu0 %v7259_v2  ;;  %9785 = vst [vmem:[#allocation43_spill] sm:$0xff] %v7318_v57 }
 0x144   : > { %1004 = vmatprep.mubr.f32.mxu0 %v7296_v37  ;;  %v7322_v37 = vld [vmem:[%s6941_s16 + $0x168] sm:$0xff] }
 0x145   : > { %v475_v13 = vrot.slane %v7322_v37, 1 }
 0x147   : > { %1005 = vmatmul.mubr.f32.gmra.mrb[52].mxu0 %v7278_v58 }
 0x148   : > { %1009 = vmatprep.mubr.f32.mxu0 %v7308_v51  ;;  %v476_v51 = vrot.slane %v7325_v35, 1 }
 0x14a   : > { %v7340_v63 = vsel %vm399_vm0, %v475_v13, %v476_v51  ;;  %v7346_v47 = vsel %vm399_vm0, %v476_v51, %v478_v11  ;;  %v518_v11 = vrot.slane %v6986_v60, 2  ;;  %v519_v51 = vrot.slane %v6989_v61, 2 }
 0x14b   : > { %1010 = vmatmul.mubr.f32.gmra.mrb[54].mxu0 %v7281_v40  ;;  %9787 = vst [vmem:[#allocation45_spill] sm:$0xff] %v7340_v63  ;;  %9788 = vst [vmem:[#allocation46_spill] sm:$0xff] %v7346_v47 }
 0x14c   : > { %1014 = vmatprep.mubr.f32.mxu0 %v7318_v57  ;;  %v724_v57 = vld [vmem:[#allocation6 + $0x208] sm:$0xff] }
 0x14d   : > { %v5184_v13 = vpack.c.bf16 %v724_v57, %v723_v10  ;;  %v7360_v57 = vsel %vm512_vm1, %v518_v11, %v519_v51  ;;  %v5190_v10 = vpack.c.bf16 %v728_v48, %v727_v55  ;;  %v733_v55 = vld [vmem:[#allocation6 + $0x250] sm:$0xff] }
 0x14f   : > { %1015 = vmatmul.mubr.f32.gmra.mrb[56].mxu0 %v7300_v27 }
 0x150   : > { %1019 = vmatprep.mubr.f32.mxu0 %v7330_v50  ;;  %v725_v50 = vld [vmem:[#allocation6 + $0x210] sm:$0xff] }
 0x153   : > { %1020 = vmatmul.mubr.f32.gmra.mrb[58].mxu0 %v7303_v26 }
 0x154   : > { %1024 = vmatprep.mubr.f32.mxu0 %v7340_v63  ;;  %v5187_v63 = vpack.c.bf16 %v726_v1, %v725_v50  ;;  %v732_v50 = vld [vmem:[#allocation6 + $0x248] sm:$0xff] }
 0x157   : > { %1025 = vmatmul.mubr.f32.gmra.mrb[60].mxu0 %v7322_v37 }
 0x158   : > { %1029 = vmatprep.mubr.f32.mxu0 %v7346_v47  ;;  %v9789_v47 = vmov 0.0|0.0  }
 0x15b   : > { %1030 = vmatmul.mubr.f32.gmra.mrb[62].mxu0 %v7325_v35 }
 0x15c   : > { %1099 = vmatprep.mubr.f32.mxu0 %v6986_v60  ;;  %v729_v60 = vld [vmem:[#allocation6 + $0x230] sm:$0xff] }
 0x15f   : > { %1100 = vmatmul.mubr.f32.vlgmr.msra.gmra.mrb[0].mxu0 %v6998_v5  ;;  %v521_v5 = vrot.slane %v7001_v6, 2  ;;  %v526_v6 = vrot.slane %v7027_v23, 2 }
 0x160   : > { %5185 = vmatpush1.bf16.msra.mxu0 %v5184_v13  ;;  %1104 = vmatprep.mubr.f32.mxu0 %v6989_v61  ;;  %v730_v61 = vld [vmem:[#allocation6 + $0x238] sm:$0xff]  ;;  %v9790_v13 = vrot.slane %v7013_v16, 2 }
 0x161   : > { %5186 = vmatprep.subr.bf16.mxu0 %v9789_v47  ;;  %v7367_v1 = vsel %vm512_vm1, %v519_v51, %v521_v5  ;;  %v528_v51 = vrot.slane %v7037_v28, 2  ;;  %v529_v5 = vrot.slane %v7040_v29, 2 }
 0x162   : > { %v7379_v11 = vsel %vm512_vm1, %v9790_v13, %v526_v6  ;;  %v534_v6 = vrot.slane %v7072_v46, 2  ;;  %v536_v13 = vrot.slane %v7083_v53, 2  ;;  %v743_v53 = vld [vmem:[#allocation6 + $0x2a0] sm:$0xff] }
 0x163   : > { %1105 = vmatmul.mubr.f32.gmra.mrb[2].mxu0 %v7016_v12  ;;  %v731_v12 = vld [vmem:[#allocation6 + $0x240] sm:$0xff] }
 0x164   : > { %1109 = vmatprep.mubr.f32.mxu0 %v7010_v15  ;;  %5188 = vmatpush1.bf16.msra.mxu0 %v5187_v63  ;;  %v5193_v15 = vpack.c.bf16 %v730_v61, %v729_v60  ;;  %v5196_v48 = vpack.c.bf16 %v732_v50, %v731_v12  ;;  %v734_v63 = vld [vmem:[#allocation6 + $0x258] sm:$0xff]  ;;  %v736_v60 = vld [vmem:[#allocation6 + $0x268] sm:$0xff]  ;;  %v7387_v61 = vsel %vm512_vm1, %v528_v51, %v529_v5  ;;  %v533_v50 = vrot.slane %v7069_v45, 2 }
 0x165   : > { %5189 = vmatprep.subr.bf16.mxu0 %v9789_v47  ;;  %v5199_v23 = vpack.c.bf16 %v734_v63, %v733_v55  ;;  %v740_v55 = vld [vmem:[#allocation6 + $0x288] sm:$0xff] }
 0x166   : > { %v7402_v63 = vsel %vm512_vm1, %v533_v50, %v534_v6 }
 0x167   : > { %1110 = vmatmul.mubr.f32.gmra.mrb[4].mxu0 %v7360_v57 }
 0x168   : > { %1114 = vmatprep.mubr.f32.mxu0 %v7013_v16  ;;  %5191 = vmatpush1.bf16.msra.mxu0 %v5190_v10  ;;  %v735_v10 = vld [vmem:[#allocation6 + $0x260] sm:$0xff]  ;;  %v531_v16 = vrot.slane %v7053_v38, 2 }
 0x169   : > { %5192 = vmatprep.subr.bf16.mxu0 %v9789_v47  ;;  %v739_v38 = vld [vmem:[#allocation6 + $0x280] sm:$0xff] }
 0x16a   : > { %v7394_v12 = vsel %vm512_vm1, %v529_v5, %v531_v16  ;;  %v5208_v51 = vpack.c.bf16 %v740_v55, %v739_v38  ;;  %v7409_v5 = vsel %vm512_vm1, %v534_v6, %v536_v13  ;;  %v744_v16 = vld [vmem:[#allocation6 + $0x2a8] sm:$0xff]  ;;  %v543_v6 = vrot.slane %v7117_v20, 2 }
 0x16b   : > { %1115 = vmatmul.mubr.f32.gmra.mrb[6].mxu0 %v7367_v1  ;;  %v748_v55 = vld [vmem:[#allocation6 + $0x2c8] sm:$0xff] }
 0x16c   : > { %1119 = vmatprep.mubr.f32.mxu0 %v7037_v28  ;;  %5194 = vmatpush1.bf16.msra.mxu0 %v5193_v15  ;;  %v5202_v15 = vpack.c.bf16 %v736_v60, %v735_v10  ;;  %v737_v28 = vld [vmem:[#allocation6 + $0x270] sm:$0xff]  ;;  %v539_v10 = vrot.slane %v7096_v62, 2 }
 0x16d   : > { %5195 = vmatprep.subr.bf16.mxu0 %v9789_v47 }
 0x16f   : > { %1120 = vmatmul.mubr.f32.gmra.mrb[8].mxu0 %v7058_v39 }
 0x170   : > { %1124 = vmatprep.mubr.f32.mxu0 %v7040_v29  ;;  %5197 = vmatpush1.bf16.msra.mxu0 %v5196_v48  ;;  %v738_v29 = vld [vmem:[#allocation6 + $0x278] sm:$0xff] }
 0x171   : > { %5198 = vmatprep.subr.bf16.mxu0 %v9789_v47  ;;  %v5205_v48 = vpack.c.bf16 %v738_v29, %v737_v28  ;;  %v541_v28 = vrot.slane %v7107_v8, 2  ;;  %v5214_v29 = vpack.c.bf16 %v744_v16, %v743_v53  ;;  %v747_v8 = vld [vmem:[#allocation6 + $0x2c0] sm:$0xff]  ;;  %v752_v53 = vld [vmem:[#allocation6 + $0x2e8] sm:$0xff] }
 0x173   : > { %1125 = vmatmul.mubr.f32.gmra.mrb[10].mxu0 %v7379_v11  ;;  %v7424_v50 = vsel %vm512_vm1, %v539_v10, %v541_v28  ;;  %v551_v28 = vrot.slane %v7155_v54, 2 }
 0x174   : > { %1129 = vmatprep.mubr.f32.mxu0 %v7069_v45  ;;  %5200 = vmatpush1.bf16.msra.mxu0 %v5199_v23  ;;  %v741_v45 = vld [vmem:[#allocation6 + $0x290] sm:$0xff]  ;;  %v538_v23 = vrot.slane %v7093_v59, 2 }
 0x175   : > { %5201 = vmatprep.subr.bf16.mxu0 %v9789_v47 }
 0x177   : > { %1130 = vmatmul.mubr.f32.gmra.mrb[12].mxu0 %v7387_v61 }
 0x178   : > { %1134 = vmatprep.mubr.f32.mxu0 %v7072_v46  ;;  %5203 = vmatpush1.bf16.msra.mxu0 %v5202_v15  ;;  %v742_v46 = vld [vmem:[#allocation6 + $0x298] sm:$0xff]  ;;  %v7417_v15 = vsel %vm512_vm1, %v538_v23, %v539_v10  ;;  %v548_v23 = vrot.slane %v7141_v42, 2  ;;  %v549_v10 = vrot.slane %v7144_v43, 2 }
 0x179   : > { %5204 = vmatprep.subr.bf16.mxu0 %v9789_v47  ;;  %v5211_v60 = vpack.c.bf16 %v742_v46, %v741_v45  ;;  %v5220_v45 = vpack.c.bf16 %v748_v55, %v747_v8  ;;  %v559_v8 = vrot.slane %v7192_v36, 2  ;;  %v561_v55 = vrot.slane %v7203_v49, 2 }
 0x17a   : > { %v7447_v16 = vsel %vm512_vm1, %v548_v23, %v549_v10  ;;  %v566_v49 = vrot.slane %v7225_v7, 2  ;;  %v571_v7 = vrot.slane %v7247_v44, 2  ;;  %v576_v44 = vrot.slane %v7269_v30, 2 }
 0x17b   : > { %1135 = vmatmul.mubr.f32.gmra.mrb[14].mxu0 %v7394_v12 }
 0x17c   : > { %1139 = vmatprep.mubr.f32.mxu0 %v7093_v59  ;;  %5206 = vmatpush1.bf16.msra.mxu0 %v5205_v48  ;;  %v745_v59 = vld [vmem:[#allocation6 + $0x2b0] sm:$0xff]  ;;  %v544_v48 = vrot.slane %v7120_v21, 2 }
 0x17d   : > { %5207 = vmatprep.subr.bf16.mxu0 %v9789_v47 }
 0x17e   : > { %v7432_v13 = vsel %vm512_vm1, %v543_v6, %v544_v48  ;;  %v554_v6 = vrot.slane %v7168_v4, 2 }
 0x17f   : > { %1140 = vmatmul.mubr.f32.gmra.mrb[16].mxu0 %v7402_v63 }
 0x180   : > { %1144 = vmatprep.mubr.f32.mxu0 %v7096_v62  ;;  %5209 = vmatpush1.bf16.msra.mxu0 %v5208_v51  ;;  %v746_v62 = vld [vmem:[#allocation6 + $0x2b8] sm:$0xff]  ;;  %v546_v51 = vrot.slane %v7131_v31, 2  ;;  %v751_v31 = vld [vmem:[#allocation6 + $0x2e0] sm:$0xff] }
 0x181   : > { %5210 = vmatprep.subr.bf16.mxu0 %v9789_v47  ;;  %v5217_v38 = vpack.c.bf16 %v746_v62, %v745_v59  ;;  %v7454_v59 = vsel %vm512_vm1, %v549_v10, %v551_v28  ;;  %v553_v62 = vrot.slane %v7165_v3, 2  ;;  %v579_v28 = vrot.slane %v7281_v40, 2 }
 0x182   : > { %v7439_v46 = vsel %vm512_vm1, %v544_v48, %v546_v51  ;;  %v7482_v51 = vsel %vm512_vm1, %v559_v8, %v561_v55 }
 0x183   : > { %1145 = vmatmul.mubr.f32.gmra.mrb[18].mxu0 %v7409_v5  ;;  %v7462_v54 = vsel %vm512_vm1, %v553_v62, %v554_v6  ;;  %v581_v62 = vrot.slane %v7291_v0, 2  ;;  %v794_v0 = vld [vmem:[#allocation6 + $0x438] sm:$0xff] }
 0x184   : > { %1149 = vmatprep.mubr.f32.mxu0 %v7117_v20  ;;  %5212 = vmatpush1.bf16.msra.mxu0 %v5211_v60  ;;  %v749_v20 = vld [vmem:[#allocation6 + $0x2d0] sm:$0xff] }
 0x185   : > { %5213 = vmatprep.subr.bf16.mxu0 %v9789_v47 }
 0x187   : > { %1150 = vmatmul.mubr.f32.gmra.mrb[20].mxu0 %v7417_v15 }
 0x188   : > { %1154 = vmatprep.mubr.f32.mxu0 %v7120_v21  ;;  %5215 = vmatpush1.bf16.msra.mxu0 %v5214_v29  ;;  %v750_v21 = vld [vmem:[#allocation6 + $0x2d8] sm:$0xff]  ;;  %v5226_v29 = vpack.c.bf16 %v752_v53, %v751_v31  ;;  %v788_v31 = vld [vmem:[#allocation6 + $0x408] sm:$0xff] }
 0x189   : > { %5216 = vmatprep.subr.bf16.mxu0 %v9789_v47  ;;  %v5223_v60 = vpack.c.bf16 %v750_v21, %v749_v20 }
 0x18b   : > { %1155 = vmatmul.mubr.f32.gmra.mrb[22].mxu0 %v7424_v50 }
 0x18c   : > { %1159 = vmatprep.mubr.f32.mxu0 %v7141_v42  ;;  %5218 = vmatpush1.bf16.msra.mxu0 %v5217_v38  ;;  %v753_v42 = vld [vmem:[#allocation6 + $0x2f0] sm:$0xff]  ;;  %v556_v38 = vrot.slane %v7179_v25, 2 }
 0x18d   : > { %5219 = vmatprep.subr.bf16.mxu0 %v9789_v47 }
 0x18f   : > { %1160 = vmatmul.mubr.f32.gmra.mrb[24].mxu0 %v7432_v13 }
 0x190   : > { %1164 = vmatprep.mubr.f32.mxu0 %v7144_v43  ;;  %5221 = vmatpush1.bf16.msra.mxu0 %v5220_v45  ;;  %v754_v43 = vld [vmem:[#allocation6 + $0x2f8] sm:$0xff] }
 0x191   : > { %5222 = vmatprep.subr.bf16.mxu0 %v9789_v47  ;;  %v5229_v48 = vpack.c.bf16 %v754_v43, %v753_v42  ;;  %v790_v42 = vld [vmem:[#allocation6 + $0x418] sm:$0xff] }
 0x193   : > { %1165 = vmatmul.mubr.f32.gmra.mrb[26].mxu0 %v7439_v46 }
 0x194   : > { %1169 = vmatprep.mubr.f32.mxu0 %v7165_v3  ;;  %5224 = vmatpush1.bf16.msra.mxu0 %v5223_v60  ;;  %v7469_v3 = vsel %vm512_vm1, %v554_v6, %v556_v38  ;;  %v787_v60 = vld [vmem:[#allocation6 + $0x400] sm:$0xff]  ;;  %v583_v38 = vrot.slane %v7300_v27, 2 }
 0x195   : > { %5225 = vmatprep.subr.bf16.mxu0 %v9789_v47  ;;  %v5279_v53 = vpack.c.bf16 %v788_v31, %v787_v60  ;;  %v791_v6 = vld [vmem:[#allocation6 + $0x420] sm:$0xff]  ;;  %v591_v31 = vrot.slane %v7335_v14, 2  ;;  %v802_v14 = vld [vmem:[#allocation6 + $0x478] sm:$0xff] }
 0x197   : > { %1170 = vmatmul.mubr.f32.gmra.mrb[28].mxu0 %v7447_v16  ;;  %5280 = vmatprep.subr.bf16.mxu1 %v5279_v53 }
 0x198   : > { %1174 = vmatprep.mubr.f32.mxu0 %v7168_v4  ;;  %5227 = vmatpush1.bf16.msra.mxu0 %v5226_v29  ;;  %v558_v4 = vrot.slane %v7189_v34, 2  ;;  %v789_v29 = vld [vmem:[#allocation6 + $0x410] sm:$0xff] }
 0x199   : > { %5228 = vmatprep.subr.bf16.mxu0 %v9789_v47  ;;  %5282 = vmatpush3.bf16.msra.mxu1 %v5279_v53  ;;  %v5283_v43 = vpack.c.bf16 %v790_v42, %v789_v29  ;;  %v800_v53 = vld [vmem:[#allocation6 + $0x468] sm:$0xff]  ;;  %v755_v29 = vld [vmem:[#allocation6 + $0x300] sm:$0xff] }
 0x19a   : > { %v7476_v25 = vsel %vm512_vm1, %v558_v4, %v559_v8  ;;  %v584_v4 = vrot.slane %v7303_v26, 2  ;;  %v793_v8 = vld [vmem:[#allocation6 + $0x430] sm:$0xff]  ;;  %v756_v42 = vld [vmem:[#allocation6 + $0x308] sm:$0xff] }
 0x19b   : > { %1175 = vmatmul.mubr.f32.gmra.mrb[30].mxu0 %v7454_v59  ;;  %5284 = vmatprep.subr.bf16.mxu1 %v5283_v43  ;;  %v5291_v55 = vpack.c.bf16 %v794_v0, %v793_v8  ;;  %v760_v8 = vld [vmem:[#allocation6 + $0x328] sm:$0xff]  ;;  %v761_v0 = vld [vmem:[#allocation6 + $0x330] sm:$0xff] }
 0x19c   : > { %1179 = vmatprep.mubr.f32.mxu0 %v7189_v34  ;;  %5230 = vmatpush1.bf16.msra.mxu0 %v5229_v48  ;;  %v563_v34 = vrot.slane %v7212_v52, 2 }
 0x19d   : > { %5231 = vmatprep.subr.bf16.mxu0 %v9789_v47  ;;  %5286 = vmatpush3.bf16.msra.mxu1 %v5283_v43  ;;  %v801_v43 = vld [vmem:[#allocation6 + $0x470] sm:$0xff] }
 0x19f   : > { %1180 = vmatmul.mubr.f32.gmra.mrb[32].mxu0 %v7462_v54 }
 0x1a0   : > { %1184 = vmatprep.mubr.f32.mxu0 %v7192_v36  ;;  %v564_v36 = vrot.slane %v7215_v56, 2 }
 0x1a2   : > { %v7489_v45 = vsel %vm512_vm1, %v563_v34, %v564_v36  ;;  %v7495_v20 = vsel %vm512_vm1, %v564_v36, %v566_v49  ;;  %v7541_v34 = vsel %vm512_vm1, %v583_v38, %v584_v4  ;;  %v586_v36 = vrot.slane %v7313_v17, 2  ;;  %v796_v49 = vld [vmem:[#allocation6 + $0x448] sm:$0xff]  ;;  %v797_v17 = vld [vmem:[#allocation6 + $0x450] sm:$0xff] }
 0x1a3   : > { %1185 = vmatmul.mubr.f32.gmra.mrb[34].mxu0 %v7469_v3 }
 0x1a4   : > { %1189 = vmatprep.mubr.f32.mxu0 %v7212_v52  ;;  %v568_v52 = vrot.slane %v7234_v19, 2 }
 0x1a7   : > { %1190 = vmatmul.mubr.f32.gmra.mrb[36].mxu0 %v7476_v25 }
 0x1a8   : > { %1194 = vmatprep.mubr.f32.mxu0 %v7215_v56  ;;  %v569_v56 = vrot.slane %v7237_v22, 2 }
 0x1aa   : > { %v7502_v21 = vsel %vm512_vm1, %v568_v52, %v569_v56  ;;  %v7508_v23 = vsel %vm512_vm1, %v569_v56, %v571_v7  ;;  %v7547_v52 = vsel %vm512_vm1, %v584_v4, %v586_v36  ;;  %v588_v56 = vrot.slane %v7322_v37, 2  ;;  %v759_v4 = vld [vmem:[#allocation6 + $0x320] sm:$0xff] }
 0x1ab   : > { %1195 = vmatmul.mubr.f32.gmra.mrb[38].mxu0 %v7482_v51  ;;  %v589_v7 = vrot.slane %v7325_v35, 2  ;;  %v763_v36 = vld [vmem:[#allocation6 + $0x340] sm:$0xff] }
 0x1ac   : > { %1199 = vmatprep.mubr.f32.mxu0 %v7234_v19  ;;  %v573_v19 = vrot.slane %v7256_v32, 2 }
 0x1ad   : > { %v7557_v60 = vsel %vm512_vm1, %v588_v56, %v589_v7  ;;  %v767_v56 = vld [vmem:[#allocation6 + $0x360] sm:$0xff] }
 0x1af   : > { %1200 = vmatmul.mubr.f32.gmra.mrb[40].mxu0 %v7489_v45 }
 0x1b0   : > { %1204 = vmatprep.mubr.f32.mxu0 %v7237_v22  ;;  %v574_v22 = vrot.slane %v7259_v2, 2 }
 0x1b2   : > { %v7515_v10 = vsel %vm512_vm1, %v573_v19, %v574_v22  ;;  %v7552_v19 = vld [vmem:[%s6941_s16 + $0x180] sm:$0xff] }
 0x1b3   : > { %1205 = vmatmul.mubr.f32.gmra.mrb[42].mxu0 %v7495_v20 }
 0x1b4   : > { %1209 = vmatprep.mubr.f32.mxu0 %v7256_v32  ;;  %v7521_v32 = vsel %vm512_vm1, %v574_v22, %v576_v44  ;;  %v798_v22 = vld [vmem:[#allocation6 + $0x458] sm:$0xff] }
 0x1b5   : > { %v5299_v44 = vpack.c.bf16 %v798_v22, %v797_v17  ;;  %v769_v22 = vld [vmem:[#allocation6 + $0x370] sm:$0xff] }
 0x1b7   : > { %1210 = vmatmul.mubr.f32.gmra.mrb[44].mxu0 %v7502_v21 }
 0x1b8   : > { %1214 = vmatprep.mubr.f32.mxu0 %v7259_v2  ;;  %v578_v2 = vrot.slane %v7278_v58, 2 }
 0x1ba   : > { %v7528_v30 = vsel %vm512_vm1, %v578_v2, %v579_v28 }
 0x1bb   : > { %1215 = vmatmul.mubr.f32.gmra.mrb[46].mxu0 %v7508_v23 }
 0x1bc   : > { %1219 = vmatprep.mubr.f32.mxu0 %v7278_v58  ;;  %v792_v58 = vld [vmem:[#allocation6 + $0x428] sm:$0xff] }
 0x1bd   : > { %v5287_v48 = vpack.c.bf16 %v792_v58, %v791_v6  ;;  %v5232_v6 = vpack.c.bf16 %v756_v42, %v755_v29  ;;  %v757_v58 = vld [vmem:[#allocation6 + $0x310] sm:$0xff]  ;;  %v9794_v42 = vld [vmem:[#allocation25_spill] sm:$0xff] }
 0x1be   : > { %v773_v29 = vld [vmem:[#allocation6 + $0x390] sm:$0xff] }
 0x1bf   : > { %1220 = vmatmul.mubr.f32.gmra.mrb[48].mxu0 %v7515_v10  ;;  %5288 = vmatprep.subr.bf16.mxu1 %v5287_v48 }
 0x1c0   : > { %1224 = vmatprep.mubr.f32.mxu0 %v7281_v40  ;;  %v7534_v40 = vsel %vm512_vm1, %v579_v28, %v581_v62  ;;  %5290 = vmatpush3.bf16.msra.mxu1 %v5287_v48  ;;  %v7566_v28 = vsel %vm512_vm1, %v589_v7, %v591_v31  ;;  %v5307_v62 = vpack.c.bf16 %v802_v14, %v801_v43  ;;  %v758_v48 = vld [vmem:[#allocation6 + $0x318] sm:$0xff]  ;;  %v9791_v7 = vld [vmem:[#allocation22_spill] sm:$0xff]  ;;  %v775_v14 = vld [vmem:[#allocation6 + $0x3a0] sm:$0xff] }
 0x1c1   : > { %5292 = vmatprep.subr.bf16.mxu1 %v5291_v55  ;;  %v5235_v38 = vpack.c.bf16 %v758_v48, %v757_v58  ;;  %v777_v58 = vld [vmem:[#allocation6 + $0x3b0] sm:$0xff] }
 0x1c2   : > { %v9796_v48 = vld [vmem:[#allocation27_spill] sm:$0xff] }
 0x1c3   : > { %1225 = vmatmul.mubr.f32.gmra.mrb[50].mxu0 %v7521_v32 }
 0x1c4   : > { %1229 = vmatprep.mubr.f32.mxu0 %v7300_v27  ;;  %5294 = vmatpush3.bf16.msra.mxu1 %v5291_v55  ;;  %v795_v27 = vld [vmem:[#allocation6 + $0x440] sm:$0xff]  ;;  %v762_v55 = vld [vmem:[#allocation6 + $0x338] sm:$0xff] }
 0x1c7   : > { %1230 = vmatmul.mubr.f32.gmra.mrb[52].mxu0 %v7528_v30 }
 0x1c8   : > { %1234 = vmatprep.mubr.f32.mxu0 %v7303_v26  ;;  %v5295_v26 = vpack.c.bf16 %v796_v49, %v795_v27  ;;  %v765_v49 = vld [vmem:[#allocation6 + $0x350] sm:$0xff] }
 0x1ca   : > { %5296 = vmatprep.subr.bf16.mxu1 %v5295_v26 }
 0x1cb   : > { %1235 = vmatmul.mubr.f32.gmra.mrb[54].mxu0 %v7534_v40  ;;  %5298 = vmatpush3.bf16.msra.mxu1 %v5295_v26 }
 0x1cc   : > { %1239 = vmatprep.mubr.f32.mxu0 %v7322_v37  ;;  %5300 = vmatprep.subr.bf16.mxu1 %v5299_v44  ;;  %v7561_v37 = vld [vmem:[%s6941_s16 + $0x188] sm:$0xff] }
 0x1cf   : > { %1240 = vmatmul.mubr.f32.gmra.mrb[56].mxu0 %v7541_v34  ;;  %5302 = vmatpush3.bf16.msra.mxu1 %v5299_v44  ;;  %v9792_v44 = vld [vmem:[#allocation23_spill] sm:$0xff] }
 0x1d0   : > { %1244 = vmatprep.mubr.f32.mxu0 %v7325_v35  ;;  %v799_v35 = vld [vmem:[#allocation6 + $0x460] sm:$0xff] }
 0x1d1   : > { %v5303_v2 = vpack.c.bf16 %v800_v53, %v799_v35  ;;  %v771_v35 = vld [vmem:[#allocation6 + $0x380] sm:$0xff] }
 0x1d2   : > { %v9793_v53 = vld [vmem:[#allocation24_spill] sm:$0xff] }
 0x1d3   : > { %1245 = vmatmul.mubr.f32.gmra.mrb[58].mxu0 %v7547_v52  ;;  %5304 = vmatprep.subr.bf16.mxu1 %v5303_v2 }
 0x1d4   : > { %1249 = vmatprep.mubr.f32.mxu0 %v7552_v19  ;;  %5306 = vmatpush3.bf16.msra.mxu1 %v5303_v2 }
 0x1d5   : > { %5308 = vmatprep.subr.bf16.mxu1 %v5307_v62 }
 0x1d7   : > { %1250 = vmatmul.mubr.f32.gmra.mrb[60].mxu0 %v7557_v60 }
 0x1d8   : > { %1254 = vmatprep.mubr.f32.mxu0 %v7561_v37  ;;  %5310 = vmatpush3.bf16.msra.mxu1 %v5307_v62  ;;  %v9795_v62 = vld [vmem:[#allocation26_spill] sm:$0xff] }
 0x1d9   : > { %5311 = vmatprep.subr.bf16.mxu1 %v9789_v47 }
 0x1db   : > { %1255 = vmatmul.mubr.f32.gmra.mrb[62].mxu0 %v7566_v28  ;;  %4960 = vmatmul.mubr.f32.vlgmr.msra.gmra.mrb[0].mxu1 %v7379_v11 }
 0x1dc   : > { %1324 = vmatprep.mubr.f32.mxu0 %v7360_v57  ;;  %4962 = vmatprep.mubr.f32.mxu1 %v7387_v61  ;;  %v5238_v57 = vpack.c.bf16 %v760_v8, %v759_v4  ;;  %v779_v4 = vld [vmem:[#allocation6 + $0x3c0] sm:$0xff] }
 0x1dd   : > { %v9797_v8 = vld [vmem:[#allocation28_spill] sm:$0xff] }
 0x1df   : > { %1325 = vmatmul.mubr.f32.vlgmr.msra.gmra.mrb[0].mxu0 %v7005_v9  ;;  %4963 = vmatmul.mubr.f32.gmra.mrb[2].mxu1 %v7394_v12 }
 0x1e0   : > { %5233 = vmatpush1.bf16.msra.mxu0 %v5232_v6  ;;  %1329 = vmatprep.mubr.f32.mxu0 %v7367_v1  ;;  %v5241_v1 = vpack.c.bf16 %v762_v55, %v761_v0  ;;  %v782_v0 = vld [vmem:[#allocation6 + $0x3d8] sm:$0xff]  ;;  %v9798_v55 = vld [vmem:[#allocation29_spill] sm:$0xff] }
 0x1e1   : > { %5234 = vmatprep.subr.bf16.mxu0 %v9789_v47  ;;  %4965 = vmatprep.mubr.f32.mxu1 %v7402_v63 }
 0x1e3   : > { %1330 = vmatmul.mubr.f32.gmra.mrb[2].mxu0 %v7021_v18  ;;  %4966 = vmatmul.mubr.f32.gmra.mrb[4].mxu1 %v7409_v5 }
 0x1e4   : > { %1334 = vmatprep.mubr.f32.mxu0 %v7058_v39  ;;  %5236 = vmatpush1.bf16.msra.mxu0 %v5235_v38  ;;  %v764_v39 = vld [vmem:[#allocation6 + $0x348] sm:$0xff] }
 0x1e5   : > { %5237 = vmatprep.subr.bf16.mxu0 %v9789_v47  ;;  %4968 = vmatprep.mubr.f32.mxu1 %v7417_v15  ;;  %v5244_v27 = vpack.c.bf16 %v764_v39, %v763_v36  ;;  %v784_v36 = vld [vmem:[#allocation6 + $0x3e8] sm:$0xff]  ;;  %v635_v39 = vrot.slane %v7552_v19, 2 }
 0x1e7   : > { %1335 = vmatmul.mubr.f32.gmra.mrb[4].mxu0 %v7032_v24  ;;  %4969 = vmatmul.mubr.f32.gmra.mrb[6].mxu1 %v7424_v50 }
 0x1e8   : > { %1339 = vmatprep.mubr.f32.mxu0 %v7379_v11  ;;  %5239 = vmatpush1.bf16.msra.mxu0 %v5238_v57  ;;  %v766_v11 = vld [vmem:[#allocation6 + $0x358] sm:$0xff] }
 0x1e9   : > { %5240 = vmatprep.subr.bf16.mxu0 %v9789_v47  ;;  %4971 = vmatprep.mubr.f32.mxu1 %v7432_v13  ;;  %v5247_v26 = vpack.c.bf16 %v766_v11, %v765_v49  ;;  %v7637_v49 = vld [vmem:[%s6941_s16 + $0x190] sm:$0x3] }
 0x1ea   : > { %v9799_v11 = vld [vmem:[#allocation30_spill] sm:$0xff] }
 0x1eb   : > { %1340 = vmatmul.mubr.f32.gmra.mrb[6].mxu0 %v7047_v33  ;;  %4972 = vmatmul.mubr.f32.gmra.mrb[8].mxu1 %v7439_v46 }
 0x1ec   : > { %1344 = vmatprep.mubr.f32.mxu0 %v7387_v61  ;;  %5242 = vmatpush1.bf16.msra.mxu0 %v5241_v1  ;;  %v768_v61 = vld [vmem:[#allocation6 + $0x368] sm:$0xff] }
 0x1ed   : > { %5243 = vmatprep.subr.bf16.mxu0 %v9789_v47  ;;  %4974 = vmatprep.mubr.f32.mxu1 %v7447_v16  ;;  %v5250_v17 = vpack.c.bf16 %v768_v61, %v767_v56  ;;  %v785_v61 = vld [vmem:[#allocation6 + $0x3f0] sm:$0xff] }
 0x1ef   : > { %1345 = vmatmul.mubr.f32.gmra.mrb[8].mxu0 %v7064_v41  ;;  %4975 = vmatmul.mubr.f32.gmra.mrb[10].mxu1 %v7454_v59 }
 0x1f0   : > { %1349 = vmatprep.mubr.f32.mxu0 %v7394_v12  ;;  %5245 = vmatpush1.bf16.msra.mxu0 %v5244_v27  ;;  %v770_v12 = vld [vmem:[#allocation6 + $0x378] sm:$0xff]  ;;  %v636_v27 = vrot.slane %v7561_v37, 2 }
 0x1f1   : > { %5246 = vmatprep.subr.bf16.mxu0 %v9789_v47  ;;  %4977 = vmatprep.mubr.f32.mxu1 %v7462_v54  ;;  %v5253_v31 = vpack.c.bf16 %v770_v12, %v769_v22  ;;  %v9800_v22 = vld [vmem:[#allocation31_spill] sm:$0xff] }
 0x1f2   : > { %v637_v56 = vsel %vm512_vm1, %v635_v39, %v636_v27  ;;  %v2901_v39 = vld [vmem:[#allocation9 + $0x28] sm:$0xff] }
 0x1f3   : > { %1350 = vmatmul.mubr.f32.gmra.mrb[10].mxu0 %v9791_v7  ;;  %4978 = vmatmul.mubr.f32.gmra.mrb[12].mxu1 %v7469_v3 }
 0x1f4   : > { %1354 = vmatprep.mubr.f32.mxu0 %v7402_v63  ;;  %5248 = vmatpush1.bf16.msra.mxu0 %v5247_v26  ;;  %v772_v63 = vld [vmem:[#allocation6 + $0x388] sm:$0xff]  ;;  %v638_v26 = vrot.slane %v7637_v49, 2 }
 0x1f5   : > { %5249 = vmatprep.subr.bf16.mxu0 %v9789_v47  ;;  %4980 = vmatprep.mubr.f32.mxu1 %v7476_v25  ;;  %v5256_v2 = vpack.c.bf16 %v772_v63, %v771_v35  ;;  %v9802_v35 = vld [vmem:[#allocation33_spill] sm:$0xff]  ;;  %v9803_v63 = vld [vmem:[#allocation34_spill] sm:$0xff] }
 0x1f7   : > { %1355 = vmatmul.mubr.f32.gmra.mrb[12].mxu0 %v9792_v44  ;;  %4981 = vmatmul.mubr.f32.gmra.mrb[14].mxu1 %v7482_v51 }
 0x1f8   : > { %1359 = vmatprep.mubr.f32.mxu0 %v7409_v5  ;;  %5251 = vmatpush1.bf16.msra.mxu0 %v5250_v17  ;;  %v774_v5 = vld [vmem:[#allocation6 + $0x398] sm:$0xff] }
 0x1f9   : > { %5252 = vmatprep.subr.bf16.mxu0 %v9789_v47  ;;  %4983 = vmatprep.mubr.f32.mxu1 %v7489_v45  ;;  %v5259_v43 = vpack.c.bf16 %v774_v5, %v773_v29  ;;  %v786_v17 = vld [vmem:[#allocation6 + $0x3f8] sm:$0xff]  ;;  %v9806_v29 = vld [vmem:[#allocation37_spill] sm:$0xff] }
 0x1fa   : > { %v5277_v12 = vpack.c.bf16 %v786_v17, %v785_v61  ;;  %v7682_v5 = vld [vmem:[%s6941_s16 + $0x198] sm:$0xff]  ;;  %v6356_v61 = vld [vmem:[%s6941_s16 + $0x68] sm:$0xff] }
 0x1fb   : > { %1360 = vmatmul.mubr.f32.gmra.mrb[14].mxu0 %v9793_v53  ;;  %4984 = vmatmul.mubr.f32.gmra.mrb[16].mxu1 %v7495_v20  ;;  %v6357_v17 = vld [vmem:[%s6941_s16 + $0x78] sm:$0xff] }
 0x1fc   : > { %1364 = vmatprep.mubr.f32.mxu0 %v7417_v15  ;;  %5254 = vmatpush1.bf16.msra.mxu0 %v5253_v31  ;;  %v776_v15 = vld [vmem:[#allocation6 + $0x3a8] sm:$0xff]  ;;  %v9801_v31 = vld [vmem:[#allocation32_spill] sm:$0xff] }
 0x1fd   : > { %5255 = vmatprep.subr.bf16.mxu0 %v9789_v47  ;;  %4986 = vmatprep.mubr.f32.mxu1 %v7502_v21  ;;  %v5262_v6 = vpack.c.bf16 %v776_v15, %v775_v14  ;;  %v652_v14 = vrot.slane %v7682_v5, 2  ;;  %v7695_v15 = vld [vmem:[%s6941_s16 + $0x1a8] sm:$0x3] }
 0x1ff   : > { %1365 = vmatmul.mubr.f32.gmra.mrb[16].mxu0 %v9794_v42  ;;  %4987 = vmatmul.mubr.f32.gmra.mrb[18].mxu1 %v7508_v23 }
 0x200   : > { %1369 = vmatprep.mubr.f32.mxu0 %v7424_v50  ;;  %5257 = vmatpush1.bf16.msra.mxu0 %v5256_v2  ;;  %v778_v50 = vld [vmem:[#allocation6 + $0x3b8] sm:$0xff] }
 0x201   : > { %5258 = vmatprep.subr.bf16.mxu0 %v9789_v47  ;;  %4989 = vmatprep.mubr.f32.mxu1 %v7515_v10  ;;  %v5265_v38 = vpack.c.bf16 %v778_v50, %v777_v58  ;;  %v9805_v2 = vld [vmem:[#allocation36_spill] sm:$0xff] }
 0x203   : > { %1370 = vmatmul.mubr.f32.gmra.mrb[18].mxu0 %v9795_v62  ;;  %4990 = vmatmul.mubr.f32.gmra.mrb[20].mxu1 %v7521_v32 }
 0x204   : > { %1374 = vmatprep.mubr.f32.mxu0 %v7432_v13  ;;  %5260 = vmatpush1.bf16.msra.mxu0 %v5259_v43  ;;  %v780_v13 = vld [vmem:[#allocation6 + $0x3c8] sm:$0xff] }
 0x205   : > { %5261 = vmatprep.subr.bf16.mxu0 %v9789_v47  ;;  %4992 = vmatprep.mubr.f32.mxu1 %v7528_v30  ;;  %v5268_v57 = vpack.c.bf16 %v780_v13, %v779_v4  ;;  %v9815_v43 = vld [vmem:[#allocation46_spill] sm:$0xff]  ;;  %v2896_v4 = vld [vmem:[#allocation9] sm:$0xff] }
 0x206   : > { %v2897_v13 = vld [vmem:[#allocation9 + $0x8] sm:$0xff] }
 0x207   : > { %1375 = vmatmul.mubr.f32.gmra.mrb[20].mxu0 %v9796_v48  ;;  %4993 = vmatmul.mubr.f32.gmra.mrb[22].mxu1 %v7534_v40 }
 0x208   : > { %1379 = vmatprep.mubr.f32.mxu0 %v7439_v46  ;;  %5263 = vmatpush1.bf16.msra.mxu0 %v5262_v6  ;;  %v781_v46 = vld [vmem:[#allocation6 + $0x3d0] sm:$0xff]  ;;  %v655_v6 = vrot.slane %v7695_v15, 2 }
 0x209   : > { %5264 = vmatprep.subr.bf16.mxu0 %v9789_v47  ;;  %4995 = vmatprep.mubr.f32.mxu1 %v7541_v34  ;;  %v5271_v1 = vpack.c.bf16 %v782_v0, %v781_v46  ;;  %v5312_v46 = vpack.c.bf16 %v2897_v13, %v2896_v4  ;;  %v2899_v0 = vld [vmem:[#allocation9 + $0x18] sm:$0xff] }
 0x20a   : > { %v6368_v4 = vld [vmem:[%s6941_s16 + $0xf8] sm:$0xff]  ;;  %v6369_v13 = vld [vmem:[%s6941_s16 + $0x108] sm:$0xff] }
 0x20b   : > { %1380 = vmatmul.mubr.f32.gmra.mrb[22].mxu0 %v9797_v8  ;;  %4996 = vmatmul.mubr.f32.gmra.mrb[24].mxu1 %v7547_v52 }
 0x20c   : > { %1384 = vmatprep.mubr.f32.mxu0 %v7447_v16  ;;  %5266 = vmatpush1.bf16.msra.mxu0 %v5265_v38  ;;  %v783_v16 = vld [vmem:[#allocation6 + $0x3e0] sm:$0xff] }
 0x20d   : > { %5267 = vmatprep.subr.bf16.mxu0 %v9789_v47  ;;  %4998 = vmatprep.mubr.f32.mxu1 %v7557_v60 }
 0x20e   : > { %5313 = vmatpush1.bf16.msra.mxu1 %v5312_v46  ;;  %v2903_v46 = vld [vmem:[#allocation9 + $0x38] sm:$0xff] }
 0x20f   : > { %1385 = vmatmul.mubr.f32.gmra.mrb[24].mxu0 %v9798_v55  ;;  %4999 = vmatmul.mubr.f32.gmra.mrb[26].mxu1 %v7566_v28 }
 0x210   : > { %1389 = vmatprep.mubr.f32.mxu0 %v7454_v59  ;;  %5269 = vmatpush1.bf16.msra.mxu0 %v5268_v57  ;;  %v5274_v59 = vpack.c.bf16 %v784_v36, %v783_v16  ;;  %v2898_v57 = vld [vmem:[#allocation9 + $0x10] sm:$0xff]  ;;  %v2900_v36 = vld [vmem:[#allocation9 + $0x20] sm:$0xff] }
 0x211   : > { %5270 = vmatprep.subr.bf16.mxu0 %v9789_v47  ;;  %5001 = vmatprep.mubr.f32.mxu1 %v637_v56  ;;  %v6351_v16 = vld [vmem:[%s6941_s16 + $0x30] sm:$0xff] }
 0x212   : > { %5314 = vmatprep.subr.bf16.mxu1 %v9789_v47 }
 0x213   : > { %1390 = vmatmul.mubr.f32.gmra.mrb[26].mxu0 %v9799_v11 }
 0x214   : > { %1394 = vmatprep.mubr.f32.mxu0 %v7462_v54  ;;  %5272 = vmatpush1.bf16.msra.mxu0 %v5271_v1  ;;  %v639_v54 = vsel %vm512_vm1, %v636_v27, %v638_v26  ;;  %v5315_v1 = vpack.c.bf16 %v2899_v0, %v2898_v57  ;;  %v5318_v27 = vpack.c.bf16 %v2901_v39, %v2900_v36  ;;  %v6354_v26 = vld [vmem:[%s6941_s16 + $0x50] sm:$0xff] }
 0x215   : > { %5273 = vmatprep.subr.bf16.mxu0 %v9789_v47  ;;  %5002 = vmatmul.mubr.f32.gmra.mrb[28].mxu1 %v639_v54  ;;  %v2902_v57 = vld [vmem:[#allocation9 + $0x30] sm:$0xff]  ;;  %v2905_v36 = vld [vmem:[#allocation9 + $0x48] sm:$0xff] }
 0x216   : > { %5316 = vmatpush1.bf16.msra.mxu1 %v5315_v1  ;;  %v5321_v0 = vpack.c.bf16 %v2903_v46, %v2902_v57  ;;  %v6370_v1 = vld [vmem:[%s6941_s16 + $0x110] sm:$0xff] }
 0x217   : > { %1395 = vmatmul.mubr.f32.gmra.mrb[28].mxu0 %v9800_v22  ;;  %5317 = vmatprep.subr.bf16.mxu1 %v9789_v47  ;;  %v6375_v46 = vld [vmem:[%s6941_s16 + $0x150] sm:$0xff] }
 0x218   : > { %1399 = vmatprep.mubr.f32.mxu0 %v7469_v3  ;;  %5275 = vmatpush1.bf16.msra.mxu0 %v5274_v59  ;;  %v9804_v3 = vld [vmem:[#allocation35_spill] sm:$0xff] }
 0x219   : > { %5276 = vmatprep.subr.bf16.mxu0 %v9789_v47  ;;  %v6353_v59 = vld [vmem:[%s6941_s16 + $0x48] sm:$0xff] }
 0x21a   : > { %5319 = vmatpush1.bf16.msra.mxu1 %v5318_v27  ;;  %v6371_v27 = vld [vmem:[%s6941_s16 + $0x120] sm:$0xff] }
 0x21b   : > { %1400 = vmatmul.mubr.f32.gmra.mrb[30].mxu0 %v9801_v31  ;;  %5320 = vmatprep.subr.bf16.mxu1 %v9789_v47 }
 0x21c   : > { %1404 = vmatprep.mubr.f32.mxu0 %v7476_v25  ;;  %5278 = vmatpush1.bf16.msra.mxu0 %v5277_v12  ;;  %v9807_v25 = vld [vmem:[#allocation38_spill] sm:$0xff] }
 0x21d   : > { %v6358_v12 = vld [vmem:[%s6941_s16 + $0x80] sm:$0xff] }
 0x21e   : > { %5322 = vmatpush1.bf16.msra.mxu1 %v5321_v0  ;;  %v2914_v0 = vld [vmem:[#allocation9 + $0x90] sm:$0xff] }
 0x21f   : > { %1405 = vmatmul.mubr.f32.gmra.mrb[32].mxu0 %v9802_v35  ;;  %5323 = vmatprep.subr.bf16.mxu1 %v9789_v47 }
 0x220   : > { %1409 = vmatprep.mubr.f32.mxu0 %v7482_v51  ;;  %v9808_v51 = vld [vmem:[#allocation39_spill] sm:$0xff] }
 0x223   : > { %1410 = vmatmul.mubr.f32.gmra.mrb[34].mxu0 %v9803_v63 }
 0x224   : > { %1414 = vmatprep.mubr.f32.mxu0 %v7489_v45  ;;  %v9809_v45 = vld [vmem:[#allocation40_spill] sm:$0xff] }
 0x227   : > { %1415 = vmatmul.mubr.f32.gmra.mrb[36].mxu0 %v9804_v3 }
 0x228   : > { %1419 = vmatprep.mubr.f32.mxu0 %v7495_v20  ;;  %v9810_v20 = vld [vmem:[#allocation41_spill] sm:$0xff] }
 0x22b   : > { %1420 = vmatmul.mubr.f32.gmra.mrb[38].mxu0 %v9805_v2 }
 0x22c   : > { %1424 = vmatprep.mubr.f32.mxu0 %v7502_v21  ;;  %v9811_v21 = vld [vmem:[#allocation42_spill] sm:$0xff] }
 0x22f   : > { %1425 = vmatmul.mubr.f32.gmra.mrb[40].mxu0 %v9806_v29 }
 0x230   : > { %1429 = vmatprep.mubr.f32.mxu0 %v7508_v23  ;;  %v9812_v23 = vld [vmem:[#allocation43_spill] sm:$0xff] }
 0x233   : > { %1430 = vmatmul.mubr.f32.gmra.mrb[42].mxu0 %v9807_v25 }
 0x234   : > { %1434 = vmatprep.mubr.f32.mxu0 %v7515_v10  ;;  %v9813_v10 = vld [vmem:[#allocation44_spill] sm:$0xff] }
 0x237   : > { %1435 = vmatmul.mubr.f32.gmra.mrb[44].mxu0 %v9808_v51 }
 0x238   : > { %1439 = vmatprep.mubr.f32.mxu0 %v7521_v32  ;;  %v9814_v32 = vld [vmem:[#allocation45_spill] sm:$0xff] }
 0x23b   : > { %1440 = vmatmul.mubr.f32.gmra.mrb[46].mxu0 %v9809_v45 }
 0x23c   : > { %1444 = vmatprep.mubr.f32.mxu0 %v7528_v30  ;;  %v628_v30 = vrot.slane %v7552_v19, 1 }
 0x23f   : > { %1445 = vmatmul.mubr.f32.gmra.mrb[48].mxu0 %v9810_v20 }
 0x240   : > { %1449 = vmatprep.mubr.f32.mxu0 %v7534_v40  ;;  %v629_v40 = vrot.slane %v7561_v37, 1 }
 0x243   : > { %1450 = vmatmul.mubr.f32.gmra.mrb[50].mxu0 %v9811_v21 }
 0x244   : > { %1454 = vmatprep.mubr.f32.mxu0 %v7541_v34  ;;  %v7685_v34 = vld [vmem:[%s6941_s16 + $0x1a0] sm:$0xff] }
 0x247   : > { %1455 = vmatmul.mubr.f32.gmra.mrb[52].mxu0 %v9812_v23 }
 0x248   : > { %1459 = vmatprep.mubr.f32.mxu0 %v7547_v52  ;;  %v7689_v52 = vsel %vm399_vm0, %v628_v30, %v629_v40  ;;  %v6360_v30 = vld [vmem:[%s6941_s16 + $0x98] sm:$0xff] }
 0x249   : > { %9816 = vst [vmem:[#allocation47_spill] sm:$0xff] %v7689_v52 }
 0x24b   : > { %1460 = vmatmul.mubr.f32.gmra.mrb[54].mxu0 %v9813_v10 }
 0x24c   : > { %1464 = vmatprep.mubr.f32.mxu0 %v7557_v60  ;;  %v631_v60 = vrot.slane %v7637_v49, 1  ;;  %v6352_v49 = vld [vmem:[%s6941_s16 + $0x38] sm:$0xff] }
 0x24e   : > { %v7702_v38 = vsel %vm399_vm0, %v629_v40, %v631_v60  ;;  %v6361_v40 = vld [vmem:[%s6941_s16 + $0xa8] sm:$0xff]  ;;  %v6362_v60 = vld [vmem:[%s6941_s16 + $0xb0] sm:$0xff] }
 0x24f   : > { %1465 = vmatmul.mubr.f32.gmra.mrb[56].mxu0 %v9814_v32  ;;  %9817 = vst [vmem:[#allocation48_spill] sm:$0xff] %v7702_v38 }
 0x250   : > { %1469 = vmatprep.mubr.f32.mxu0 %v7566_v28  ;;  %v653_v28 = vrot.slane %v7685_v34, 2 }
 0x252   : > { %v654_v58 = vsel %vm512_vm1, %v652_v14, %v653_v28  ;;  %v656_v50 = vsel %vm512_vm1, %v653_v28, %v655_v6  ;;  %v6363_v14 = vld [vmem:[%s6941_s16 + $0xc0] sm:$0xff]  ;;  %v6364_v28 = vld [vmem:[%s6941_s16 + $0xc8] sm:$0xff]  ;;  %v6365_v6 = vld [vmem:[%s6941_s16 + $0xd8] sm:$0xff] }
 0x253   : > { %1470 = vmatmul.mubr.f32.gmra.mrb[58].mxu0 %v9815_v43  ;;  %5004 = vmatprep.mubr.f32.mxu1 %v654_v58  ;;  %v6366_v58 = vld [vmem:[%s6941_s16 + $0xe0] sm:$0xff] }
 0x254   : > { %1474 = vmatprep.mubr.f32.mxu0 %v637_v56  ;;  %5005 = vmatmul.mubr.f32.gmra.mrb[30].mxu1 %v656_v50  ;;  %v6355_v56 = vld [vmem:[%s6941_s16 + $0x60] sm:$0xff]  ;;  %v6367_v50 = vld [vmem:[%s6941_s16 + $0xf0] sm:$0xff] }
 0x257   : > { %1475 = vmatmul.mubr.f32.gmra.mrb[60].mxu0 %v7689_v52 }
 0x258   : > { %1479 = vmatprep.mubr.f32.mxu0 %v639_v54  ;;  %v6359_v54 = vld [vmem:[%s6941_s16 + $0x90] sm:$0xff] }
 0x25b   : > { %1480 = vmatmul.mubr.f32.gmra.mrb[62].mxu0 %v7702_v38 }
 0x25c   : > { %1549 = vmatprep.mubr.f32.mxu0 %v7032_v24 }
 0x25f   : > { %1550 = vmatmul.mubr.f32.vlgmr.msra.gmra.mrb[0].mxu0 %v6351_v16  ;;  %v2904_v16 = vld [vmem:[#allocation9 + $0x40] sm:$0xff] }
 0x260   : > { %1554 = vmatprep.mubr.f32.mxu0 %v7047_v33  ;;  %v5324_v39 = vpack.c.bf16 %v2905_v36, %v2904_v16  ;;  %v6376_v36 = vld [vmem:[%s6941_s16 + $0x158] sm:$0xff] }
 0x262   : > { %5325 = vmatpush1.bf16.msra.mxu1 %v5324_v39 }
 0x263   : > { %1555 = vmatmul.mubr.f32.gmra.mrb[2].mxu0 %v6352_v49  ;;  %5326 = vmatprep.subr.bf16.mxu1 %v9789_v47  ;;  %v2906_v49 = vld [vmem:[#allocation9 + $0x50] sm:$0xff] }
 0x264   : > { %1559 = vmatprep.mubr.f32.mxu0 %v7064_v41 }
 0x267   : > { %1560 = vmatmul.mubr.f32.gmra.mrb[4].mxu0 %v6353_v59  ;;  %v2907_v59 = vld [vmem:[#allocation9 + $0x58] sm:$0xff] }
 0x268   : > { %1564 = vmatprep.mubr.f32.mxu0 %v9791_v7 }
 0x26b   : > { %1565 = vmatmul.mubr.f32.gmra.mrb[6].mxu0 %v6354_v26  ;;  %v5327_v26 = vpack.c.bf16 %v2907_v59, %v2906_v49  ;;  %v2916_v49 = vld [vmem:[#allocation9 + $0xa0] sm:$0xff]  ;;  %v2917_v59 = vld [vmem:[#allocation9 + $0xa8] sm:$0xff] }
 0x26c   : > { %1569 = vmatprep.mubr.f32.mxu0 %v9792_v44 }
 0x26d   : > { %5328 = vmatpush1.bf16.msra.mxu1 %v5327_v26  ;;  %v5342_v26 = vpack.c.bf16 %v2917_v59, %v2916_v49  ;;  %v2923_v59 = vld [vmem:[#allocation9 + $0xd8] sm:$0xff] }
 0x26e   : > { %5329 = vmatprep.subr.bf16.mxu1 %v9789_v47 }
 0x26f   : > { %1570 = vmatmul.mubr.f32.gmra.mrb[8].mxu0 %v6355_v56  ;;  %v6372_v56 = vld [vmem:[%s6941_s16 + $0x128] sm:$0xff] }
 0x270   : > { %1574 = vmatprep.mubr.f32.mxu0 %v9793_v53 }
 0x273   : > { %1575 = vmatmul.mubr.f32.gmra.mrb[10].mxu0 %v6356_v61  ;;  %v2908_v61 = vld [vmem:[#allocation9 + $0x60] sm:$0xff] }
 0x274   : > { %1579 = vmatprep.mubr.f32.mxu0 %v9794_v42  ;;  %v2939_v42 = vld [vmem:[#allocation9 + $0x158] sm:$0xff] }
 0x277   : > { %1580 = vmatmul.mubr.f32.gmra.mrb[12].mxu0 %v6357_v17  ;;  %v2909_v17 = vld [vmem:[#allocation9 + $0x68] sm:$0xff] }
 0x278   : > { %1584 = vmatprep.mubr.f32.mxu0 %v9795_v62  ;;  %v2938_v62 = vld [vmem:[#allocation9 + $0x150] sm:$0xff] }
 0x27b   : > { %1585 = vmatmul.mubr.f32.gmra.mrb[14].mxu0 %v6358_v12 }
 0x27c   : > { %1589 = vmatprep.mubr.f32.mxu0 %v9796_v48 }
 0x27f   : > { %1590 = vmatmul.mubr.f32.gmra.mrb[16].mxu0 %v6359_v54  ;;  %v5330_v54 = vpack.c.bf16 %v2909_v17, %v2908_v61  ;;  %v2918_v61 = vld [vmem:[#allocation9 + $0xb0] sm:$0xff]  ;;  %v2919_v17 = vld [vmem:[#allocation9 + $0xb8] sm:$0xff] }
 0x280   : > { %1594 = vmatprep.mubr.f32.mxu0 %v9797_v8 }
 0x281   : > { %5331 = vmatpush1.bf16.msra.mxu1 %v5330_v54  ;;  %v5345_v54 = vpack.c.bf16 %v2919_v17, %v2918_v61  ;;  %v3026_v17 = vld [vmem:[#allocation9 + $0x410] sm:$0xff] }
 0x282   : > { %5332 = vmatprep.subr.bf16.mxu1 %v9789_v47 }
 0x283   : > { %1595 = vmatmul.mubr.f32.gmra.mrb[18].mxu0 %v6360_v30 }
 0x284   : > { %1599 = vmatprep.mubr.f32.mxu0 %v9798_v55 }
 0x287   : > { %1600 = vmatmul.mubr.f32.gmra.mrb[20].mxu0 %v6361_v40  ;;  %v6373_v40 = vld [vmem:[%s6941_s16 + $0x138] sm:$0xff] }
 0x288   : > { %1604 = vmatprep.mubr.f32.mxu0 %v9799_v11 }
 0x28b   : > { %1605 = vmatmul.mubr.f32.gmra.mrb[22].mxu0 %v6362_v60  ;;  %v2910_v60 = vld [vmem:[#allocation9 + $0x70] sm:$0xff] }
 0x28c   : > { %1609 = vmatprep.mubr.f32.mxu0 %v9800_v22 }
 0x28f   : > { %1610 = vmatmul.mubr.f32.gmra.mrb[24].mxu0 %v6363_v14  ;;  %v2911_v14 = vld [vmem:[#allocation9 + $0x78] sm:$0xff] }
 0x290   : > { %1614 = vmatprep.mubr.f32.mxu0 %v9801_v31 }
 0x293   : > { %1615 = vmatmul.mubr.f32.gmra.mrb[26].mxu0 %v6364_v28  ;;  %v5333_v28 = vpack.c.bf16 %v2911_v14, %v2910_v60 }
 0x294   : > { %1619 = vmatprep.mubr.f32.mxu0 %v9802_v35 }
 0x295   : > { %5334 = vmatpush1.bf16.msra.mxu1 %v5333_v28  ;;  %v645_v28 = vrot.slane %v7682_v5, 1 }
 0x296   : > { %5335 = vmatprep.subr.bf16.mxu1 %v9789_v47 }
 0x297   : > { %1620 = vmatmul.mubr.f32.gmra.mrb[28].mxu0 %v6365_v6  ;;  %v6374_v6 = vld [vmem:[%s6941_s16 + $0x140] sm:$0xff] }
 0x298   : > { %1624 = vmatprep.mubr.f32.mxu0 %v9803_v63  ;;  %v2934_v63 = vld [vmem:[#allocation9 + $0x130] sm:$0xff] }
 0x29b   : > { %1625 = vmatmul.mubr.f32.gmra.mrb[30].mxu0 %v6366_v58 }
 0x29c   : > { %1629 = vmatprep.mubr.f32.mxu0 %v9804_v3 }
 0x29f   : > { %1630 = vmatmul.mubr.f32.gmra.mrb[32].mxu0 %v6367_v50  ;;  %v2912_v50 = vld [vmem:[#allocation9 + $0x80] sm:$0xff] }
 0x2a0   : > { %1634 = vmatprep.mubr.f32.mxu0 %v9805_v2 }
 0x2a3   : > { %1635 = vmatmul.mubr.f32.gmra.mrb[34].mxu0 %v6368_v4  ;;  %v2913_v4 = vld [vmem:[#allocation9 + $0x88] sm:$0xff] }
 0x2a4   : > { %1639 = vmatprep.mubr.f32.mxu0 %v9806_v29  ;;  %v5336_v57 = vpack.c.bf16 %v2913_v4, %v2912_v50  ;;  %v2920_v50 = vld [vmem:[#allocation9 + $0xc0] sm:$0xff]  ;;  %v2921_v4 = vld [vmem:[#allocation9 + $0xc8] sm:$0xff] }
 0x2a6   : > { %5337 = vmatpush1.bf16.msra.mxu1 %v5336_v57  ;;  %v5348_v57 = vpack.c.bf16 %v2921_v4, %v2920_v50  ;;  %v2927_v50 = vld [vmem:[#allocation9 + $0xf8] sm:$0xff]  ;;  %v3028_v4 = vld [vmem:[#allocation9 + $0x420] sm:$0xff] }
 0x2a7   : > { %1640 = vmatmul.mubr.f32.gmra.mrb[36].mxu0 %v6369_v13  ;;  %5338 = vmatprep.subr.bf16.mxu1 %v9789_v47 }
 0x2a8   : > { %1644 = vmatprep.mubr.f32.mxu0 %v9807_v25 }
 0x2ab   : > { %1645 = vmatmul.mubr.f32.gmra.mrb[38].mxu0 %v6370_v1  ;;  %v2915_v1 = vld [vmem:[#allocation9 + $0x98] sm:$0xff] }
 0x2ac   : > { %1649 = vmatprep.mubr.f32.mxu0 %v9808_v51  ;;  %v5339_v16 = vpack.c.bf16 %v2915_v1, %v2914_v0  ;;  %v648_v0 = vrot.slane %v7695_v15, 1  ;;  %v3024_v1 = vld [vmem:[#allocation9 + $0x400] sm:$0xff]  ;;  %v2925_v15 = vld [vmem:[#allocation9 + $0xe8] sm:$0xff] }
 0x2ae   : > { %v7756_v12 = vpop.f32.mrb[0].mxu1  ;;  %5340 = vmatpush1.bf16.msra.mxu1 %v5339_v16  ;;  %v3025_v16 = vld [vmem:[#allocation9 + $0x408] sm:$0xff] }
 0x2af   : > { %1650 = vmatmul.mubr.f32.gmra.mrb[40].mxu0 %v6371_v27  ;;  %v7758_v30 = vpop.f32.mrb[1].mxu1  ;;  %5341 = vmatprep.subr.bf16.mxu1 %v9789_v47  ;;  %v7798_v49 = vpack.c.bf16 %v3025_v16, %v3024_v1 }
 0x2b0   : > { %1654 = vmatprep.mubr.f32.mxu0 %v9809_v45  ;;  %v2933_v45 = vld [vmem:[#allocation9 + $0x128] sm:$0xff] }
 0x2b1   : > { %9818 = vst [vmem:[#allocation49_spill] sm:$0xff] %v7798_v49  ;;  %5504 = vmatprep.subr.bf16.mxu0 %v7798_v49 }
 0x2b2   : > { %v7764_v58 = vpop.f32.mrb[2].mxu1  ;;  %5343 = vmatpush1.bf16.msra.mxu1 %v5342_v26  ;;  %5506 = vmatpush3.bf16.msra.mxu0 %v7798_v49 }
 0x2b3   : > { %1655 = vmatmul.mubr.f32.gmra.mrb[42].mxu0 %v6372_v56  ;;  %v7768_v13 = vpop.f32.mrb[3].mxu1  ;;  %v6377_v56 = vld [vmem:[%s6941_s16 + $0x168] sm:$0xff]  ;;  %5344 = vmatprep.subr.bf16.mxu1 %v9789_v47 }
 0x2b4   : > { %1659 = vmatprep.mubr.f32.mxu0 %v9810_v20 }
 0x2b6   : > { %v7774_v39 = vpop.f32.mrb[4].mxu1  ;;  %5346 = vmatpush1.bf16.msra.mxu1 %v5345_v54  ;;  %v3027_v54 = vld [vmem:[#allocation9 + $0x418] sm:$0xff] }
 0x2b7   : > { %1660 = vmatmul.mubr.f32.gmra.mrb[44].mxu0 %v6373_v40  ;;  %v7778_v27 = vpop.f32.mrb[5].mxu1  ;;  %v6378_v40 = vld [vmem:[%s6941_s16 + $0x170] sm:$0xff]  ;;  %5347 = vmatprep.subr.bf16.mxu1 %v9789_v47 }
 0x2b8   : > { %1664 = vmatprep.mubr.f32.mxu0 %v9811_v21  ;;  %v2932_v21 = vld [vmem:[#allocation9 + $0x120] sm:$0xff] }
 0x2ba   : > { %v7784_v60 = vpop.f32.mrb[6].mxu1  ;;  %5349 = vmatpush1.bf16.msra.mxu1 %v5348_v57  ;;  %v3029_v57 = vld [vmem:[#allocation9 + $0x428] sm:$0xff] }
 0x2bb   : > { %1665 = vmatmul.mubr.f32.gmra.mrb[46].mxu0 %v6374_v6  ;;  %v7787_v14 = vpop.f32.mrb[7].mxu1  ;;  %v646_v6 = vrot.slane %v7685_v34, 1  ;;  %5350 = vmatprep.subr.bf16.mxu1 %v9789_v47 }
 0x2bc   : > { %1669 = vmatprep.mubr.f32.mxu0 %v9812_v23 }
 0x2bf   : > { %1670 = vmatmul.mubr.f32.gmra.mrb[48].mxu0 %v6375_v46  ;;  %v647_v46 = vsel %vm399_vm0, %v645_v28, %v646_v6  ;;  %v7809_v28 = vpack.c.bf16 %v3027_v54, %v3026_v17  ;;  %v3033_v17 = vld [vmem:[#allocation9 + $0x448] sm:$0xff] }
 0x2c0   : > { %1674 = vmatprep.mubr.f32.mxu0 %v9813_v10 }
 0x2c1   : > { %9819 = vst [vmem:[#allocation50_spill] sm:$0xff] %v7809_v28  ;;  %5508 = vmatprep.subr.bf16.mxu0 %v7809_v28 }
 0x2c2   : > { %5510 = vmatpush3.bf16.msra.mxu0 %v7809_v28 }
 0x2c3   : > { %1675 = vmatmul.mubr.f32.gmra.mrb[50].mxu0 %v6376_v36  ;;  %v2922_v36 = vld [vmem:[#allocation9 + $0xd0] sm:$0xff] }
 0x2c4   : > { %1679 = vmatprep.mubr.f32.mxu0 %v9814_v32  ;;  %v5351_v26 = vpack.c.bf16 %v2923_v59, %v2922_v36  ;;  %v3031_v59 = vld [vmem:[#allocation9 + $0x438] sm:$0xff] }
 0x2c6   : > { %5352 = vmatpush1.bf16.msra.mxu1 %v5351_v26 }
 0x2c7   : > { %1680 = vmatmul.mubr.f32.gmra.mrb[52].mxu0 %v6377_v56  ;;  %v649_v56 = vsel %vm399_vm0, %v646_v6, %v648_v0  ;;  %5353 = vmatprep.subr.bf16.mxu1 %v9789_v47  ;;  %v6683_v6 = vmov 0.0   ;;  %v7815_v0 = vpack.c.bf16 %v3029_v57, %v3028_v4  ;;  %v3034_v4 = vld [vmem:[#allocation9 + $0x450] sm:$0xff]  ;;  %v3035_v57 = vld [vmem:[#allocation9 + $0x458] sm:$0xff] }
 0x2c8   : > { %1684 = vmatprep.mubr.f32.mxu0 %v9815_v43  ;;  %2319 = vst [vmem:[#allocation2] sm:$0xff] %v6683_v6  ;;  %2321 = vst [vmem:[#allocation2 + $0x10] sm:$0x3] %v6683_v6  ;;  %v2638_v1 = vrot.slane %v6683_v6, 1 }
 0x2c9   : > { %2325 = vst [vmem:[#allocation2 + $0x1a8] sm:$0x3] %v6683_v6  ;;  %9820 = vst [vmem:[#allocation51_spill] sm:$0xff] %v7815_v0  ;;  %5512 = vmatprep.subr.bf16.mxu0 %v7815_v0 }
 0x2ca   : > { %5514 = vmatpush3.bf16.msra.mxu0 %v7815_v0  ;;  %3111 = vmatprep.mubr.f32.mxu1 %v2638_v1 }
 0x2cb   : > { %1685 = vmatmul.mubr.f32.gmra.mrb[54].mxu0 %v6378_v40 }
 0x2cc   : > { %1689 = vmatprep.mubr.f32.mxu0 %v7689_v52  ;;  %v2929_v52 = vld [vmem:[#allocation9 + $0x108] sm:$0xff] }
 0x2cf   : > { %1690 = vmatmul.mubr.f32.gmra.mrb[56].mxu0 %v7552_v19  ;;  %v7800_v19 = vpop.f32.mrb[8].mxu1 }
 0x2d0   : > { %1694 = vmatprep.mubr.f32.mxu0 %v7702_v38  ;;  %v7803_v61 = vpop.f32.mrb[9].mxu1 }
 0x2d1   : > { %v7817_v16 = vpop.f32.mrb[10].mxu1 }
 0x2d2   : > { %v7819_v36 = vpop.f32.mrb[11].mxu1 }
 0x2d3   : > { %1695 = vmatmul.mubr.f32.gmra.mrb[58].mxu0 %v7561_v37  ;;  %v2924_v37 = vld [vmem:[#allocation9 + $0xe0] sm:$0xff] }
 0x2d4   : > { %1699 = vmatprep.mubr.f32.mxu0 %v647_v46  ;;  %v5354_v40 = vpack.c.bf16 %v2925_v15, %v2924_v37  ;;  %v3032_v15 = vld [vmem:[#allocation9 + $0x440] sm:$0xff] }
 0x2d6   : > { %5355 = vmatpush1.bf16.msra.mxu1 %v5354_v40  ;;  %v7829_v40 = vpack.c.bf16 %v3033_v17, %v3032_v15  ;;  %v3039_v15 = vld [vmem:[#allocation9 + $0x478] sm:$0xff] }
 0x2d7   : > { %1700 = vmatmul.mubr.f32.gmra.mrb[60].mxu0 %v7682_v5  ;;  %v2926_v5 = vld [vmem:[#allocation9 + $0xf0] sm:$0xff]  ;;  %5356 = vmatprep.subr.bf16.mxu1 %v9789_v47 }
 0x2d8   : > { %1704 = vmatprep.mubr.f32.mxu0 %v649_v56  ;;  %v5357_v46 = vpack.c.bf16 %v2927_v50, %v2926_v5  ;;  %v2538_v56 = vld [vmem:[#allocation2 + $0x10] sm:$0x3]  ;;  %9822 = vst [vmem:[#allocation53_spill] sm:$0xff] %v7829_v40  ;;  %v7831_v5 = vpop.f32.mrb[12].mxu1 }
 0x2d9   : > { %v2641_v37 = vrot.slane %v2538_v56, 1  ;;  %v7833_v50 = vpop.f32.mrb[13].mxu1 }
 0x2da   : > { %5358 = vmatpush1.bf16.msra.mxu1 %v5357_v46  ;;  %v7837_v46 = vpack.c.bf16 %v3035_v57, %v3034_v4 }
 0x2db   : > { %1705 = vmatmul.mubr.f32.gmra.mrb[62].mxu0 %v7685_v34  ;;  %5359 = vmatprep.subr.bf16.mxu1 %v9789_v47  ;;  %v3030_v34 = vld [vmem:[#allocation9 + $0x430] sm:$0xff]  ;;  %v2642_v54 = vsel %vm399_vm0, %v2638_v1, %v2641_v37  ;;  %v3036_v1 = vld [vmem:[#allocation9 + $0x460] sm:$0xff] }
 0x2dc   : > { %v7824_v26 = vpack.c.bf16 %v3031_v59, %v3030_v34  ;;  %9823 = vst [vmem:[#allocation54_spill] sm:$0xff] %v7837_v46  ;;  %v3037_v34 = vld [vmem:[#allocation9 + $0x468] sm:$0xff]  ;;  %v7841_v59 = vpop.f32.mrb[14].mxu1  ;;  %v3038_v37 = vld [vmem:[#allocation9 + $0x470] sm:$0xff] }
 0x2dd   : > { %3112 = vmatmul.mubr.f32.vlgmr.msra.gmra.mrb[32].mxu1 %v6683_v6  ;;  %v7843_v56 = vpack.c.bf16 %v3037_v34, %v3036_v1  ;;  %v7849_v17 = vpack.c.bf16 %v3039_v15, %v3038_v37  ;;  %v2928_v34 = vld [vmem:[#allocation9 + $0x100] sm:$0xff]  ;;  %v2930_v37 = vld [vmem:[#allocation9 + $0x110] sm:$0xff]  ;;  %v2931_v15 = vld [vmem:[#allocation9 + $0x118] sm:$0xff] }
 0x2de   : > { %9821 = vst [vmem:[#allocation52_spill] sm:$0xff] %v7824_v26  ;;  %5516 = vmatprep.subr.bf16.mxu0 %v7824_v26  ;;  %3116 = vmatprep.mubr.f32.mxu1 %v2642_v54  ;;  %v5360_v38 = vpack.c.bf16 %v2929_v52, %v2928_v34  ;;  %v5363_v32 = vpack.c.bf16 %v2931_v15, %v2930_v37 }
 0x2df   : > { %5518 = vmatpush3.bf16.msra.mxu0 %v7824_v26  ;;  %9824 = vst [vmem:[#allocation55_spill] sm:$0xff] %v7843_v56  ;;  %9825 = vst [vmem:[#allocation56_spill] sm:$0xff] %v7849_v17  ;;  %v5366_v52 = vpack.c.bf16 %v2933_v45, %v2932_v21 }
 0x2e0   : > { %5520 = vmatprep.subr.bf16.mxu0 %v7829_v40  ;;  %5361 = vmatpush1.bf16.msra.mxu1 %v5360_v38  ;;  %v7871_v38 = vld [vmem:[#allocation8] ss:$0 sm:$0xff] }
 0x2e1   : > { %3117 = vmatmul.mubr.f32.gmra.mrb[34].mxu1 %v6683_v6  ;;  %v7845_v6 = vpop.f32.mrb[15].mxu1  ;;  %5362 = vmatprep.subr.bf16.mxu1 %v9789_v47 }
 0x2e2   : > { %v7853_v54 = vpop.f32.mrb[16].mxu1 }
 0x2e3   : > { %5522 = vmatpush3.bf16.msra.mxu0 %v7829_v40  ;;  %v7855_v4 = vpop.f32.mrb[17].mxu1 }
 0x2e4   : > { %5524 = vmatprep.subr.bf16.mxu0 %v7837_v46  ;;  %v7857_v57 = vpop.f32.mrb[18].mxu1  ;;  %5364 = vmatpush1.bf16.msra.mxu1 %v5363_v32 }
 0x2e5   : > { %v7859_v1 = vpop.f32.mrb[19].mxu1  ;;  %5365 = vmatprep.subr.bf16.mxu1 %v9789_v47 }
 0x2e6   : > { %v7863_v43 = vpop.f32.mrb[20].mxu1 }
 0x2e7   : > { %5526 = vmatpush3.bf16.msra.mxu0 %v7837_v46  ;;  %v7865_v23 = vpop.f32.mrb[21].mxu1 }
 0x2e8   : > { %5528 = vmatprep.subr.bf16.mxu0 %v7843_v56  ;;  %v7867_v10 = vpop.f32.mrb[22].mxu1  ;;  %5367 = vmatpush1.bf16.msra.mxu1 %v5366_v52 }
 0x2e9   : > { %v7869_v20 = vpop.f32.mrb[23].mxu1  ;;  %5368 = vmatprep.subr.bf16.mxu1 %v9789_v47 }
 0x2ea   : > { %v7878_v25 = vpop.f32.mrb[24].mxu1 }
 0x2eb   : > { %5530 = vmatpush3.bf16.msra.mxu0 %v7843_v56  ;;  %v7882_v21 = vpop.f32.mrb[25].mxu1 }
 0x2ec   : > { %5532 = vmatprep.subr.bf16.mxu0 %v7849_v17 }
 0x2ef   : > { %5534 = vmatpush3.bf16.msra.mxu0 %v7849_v17 }
 0x332   : > { %v1551_v34 = vpop.f32.mrb[0].mxu0 }
 0x333   : > { %v5551_v32 = vadd.f32 %v7871_v38, %v1551_v34  ;;  %v1553_v37 = vpop.f32.mrb[1].mxu0  ;;  %v2935_v34 = vld [vmem:[#allocation9 + $0x138] sm:$0xff] }
 0x334   : > { %v5369_v35 = vpack.c.bf16 %v2935_v34, %v2934_v63 }
 0x335   : > { %v7876_v15 = vadd.f32 %v5551_v32, %v7758_v30 }
 0x336   : > { %v1556_v51 = vpop.f32.mrb[2].mxu0  ;;  %5370 = vmatpush1.bf16.msra.mxu1 %v5369_v35 }
 0x337   : > { %v1935_v29 = vmin.f32 %v7876_v15, 20.0  ;;  %v5552_v2 = vadd.f32 %v7871_v38, %v1556_v51  ;;  %v1558_v45 = vpop.f32.mrb[3].mxu0  ;;  %5371 = vmatprep.subr.bf16.mxu1 %v9789_v47  ;;  %vm2255_vm2 = vcmp.gt.f32.partialorder %v7876_v15, 20.0 }
 0x339   : > { %v1967_v52 = vmul.f32 1.442695, %v1935_v29  ;;  %v7885_v3 = vadd.f32 %v5552_v2, %v7756_v12  ;;  %v7893_v2 = vpop.f32.mrb[26].mxu1 }
 0x33a   : > { %v1561_v37 = vpop.f32.mrb[4].mxu0 }
 0x33b   : > { %6095 = vpow2.f32 %v1967_v52  ;;  %v1936_v30 = vmin.f32 %v7885_v3, 20.0  ;;  %v5553_v32 = vadd.f32 %v7871_v38, %v1561_v37  ;;  %v1563_v31 = vpop.f32.mrb[5].mxu0  ;;  %v7897_v52 = vpop.f32.mrb[27].mxu1  ;;  %v2937_v37 = vld [vmem:[#allocation9 + $0x148] sm:$0xff]  ;;  %vm2256_vm4 = vcmp.gt.f32.partialorder %v7885_v3, 20.0 }
 0x33d   : > { %v1969_v22 = vmul.f32 1.442695, %v1936_v30  ;;  %v7890_v51 = vadd.f32 %v5553_v32, %v7768_v13  ;;  %v2936_v13 = vld [vmem:[#allocation9 + $0x140] sm:$0xff] }
 0x33e   : > { %v1566_v29 = vpop.f32.mrb[6].mxu0  ;;  %v5372_v11 = vpack.c.bf16 %v2937_v37, %v2936_v13 }
 0x33f   : > { %6097 = vpow2.f32 %v1969_v22  ;;  %v1937_v12 = vmin.f32 %v7890_v51, 20.0  ;;  %v5554_v63 = vadd.f32 %v7871_v38, %v1566_v29  ;;  %v1568_v45 = vpop.f32.mrb[7].mxu0  ;;  %vm2257_vm5 = vcmp.gt.f32.partialorder %v7890_v51, 20.0 }
 0x340   : > { %5373 = vmatpush1.bf16.msra.mxu1 %v5372_v11 }
 0x341   : > { %v1971_v34 = vmul.f32 1.442695, %v1937_v12  ;;  %v7900_v31 = vadd.f32 %v5554_v63, %v7764_v58  ;;  %v7907_v58 = vpop.f32.mrb[28].mxu1  ;;  %5374 = vmatprep.subr.bf16.mxu1 %v9789_v47 }
 0x342   : > { %v1571_v35 = vpop.f32.mrb[8].mxu0 }
 0x343   : > { %6099 = vpow2.f32 %v1971_v34  ;;  %v1938_v30 = vmin.f32 %v7900_v31, 20.0  ;;  %v5555_v32 = vadd.f32 %v7871_v38, %v1571_v35  ;;  %v1573_v22 = vpop.f32.mrb[9].mxu0  ;;  %v7912_v35 = vpop.f32.mrb[29].mxu1  ;;  %vm2258_vm6 = vcmp.gt.f32.partialorder %v7900_v31, 20.0 }
 0x345   : > { %v6096_v55 = vpop.eup %6095  ;;  %v1973_v8 = vmul.f32 1.442695, %v1938_v30  ;;  %v7905_v29 = vadd.f32 %v5555_v32, %v7778_v27 }
 0x346   : > { %v2031_v45 = vadd.f32 1.0, %v6096_v55  ;;  %v1576_v12 = vpop.f32.mrb[10].mxu0 }
 0x347   : > { %6101 = vpow2.f32 %v1973_v8  ;;  %v1939_v63 = vmin.f32 %v7905_v29, 20.0  ;;  %v5556_v34 = vadd.f32 %v7871_v38, %v1576_v12  ;;  %v1578_v48 = vpop.f32.mrb[11].mxu0  ;;  %vm2259_vm7 = vcmp.gt.f32.partialorder %v7905_v29, 20.0 }
 0x348   : > { %v2063_v13 = vmul.f32 %v2031_v45, %v2031_v45 }
 0x349   : > { %v6098_v37 = vpop.eup %6097  ;;  %v1975_v30 = vmul.f32 1.442695, %v1939_v63  ;;  %v7915_v27 = vadd.f32 %v5556_v34, %v7774_v39  ;;  %v5375_v39 = vpack.c.bf16 %v2939_v42, %v2938_v62 }
 0x34a   : > { %v2159_v55 = vadd.f32 1.0, %v2063_v13  ;;  %v2032_v11 = vadd.f32 1.0, %v6098_v37  ;;  %v1581_v32 = vpop.f32.mrb[12].mxu0 }
 0x34b   : > { %6103 = vpow2.f32 %v1975_v30  ;;  %v1940_v8 = vmin.f32 %v7915_v27, 20.0  ;;  %v5557_v22 = vadd.f32 %v7871_v38, %v1581_v32  ;;  %v1583_v12 = vpop.f32.mrb[13].mxu0  ;;  %5376 = vmatpush1.bf16.msra.mxu1 %v5375_v39  ;;  %v7930_v39 = vpop.f32.mrb[30].mxu1  ;;  %vm2260_vm8 = vcmp.gt.f32.partialorder %v7915_v27, 20.0 }
 0x34c   : > { %6105 = vrcp.f32 %v2159_v55  ;;  %v2064_v48 = vmul.f32 %v2032_v11, %v2032_v11  ;;  %5377 = vmatprep.subr.bf16.mxu1 %v9789_v47 }
 0x34d   : > { %v6100_v53 = vpop.eup %6099  ;;  %v1977_v45 = vmul.f32 1.442695, %v1940_v8  ;;  %v7920_v63 = vadd.f32 %v5557_v22, %v7787_v14  ;;  %v4760_v8 = vadd.f32 -1.0, %v2063_v13 }
 0x34e   : > { %v2160_v34 = vadd.f32 1.0, %v2064_v48  ;;  %v2033_v44 = vadd.f32 1.0, %v6100_v53  ;;  %v1586_v37 = vpop.f32.mrb[14].mxu0 }
 0x34f   : > { %6107 = vpow2.f32 %v1977_v45  ;;  %v1941_v30 = vmin.f32 %v7920_v63, 20.0  ;;  %v5558_v7 = vadd.f32 %v7871_v38, %v1586_v37  ;;  %v1588_v32 = vpop.f32.mrb[15].mxu0  ;;  %vm2261_vm9 = vcmp.gt.f32.partialorder %v7920_v63, 20.0 }
 0x350   : > { %6109 = vrcp.f32 %v2160_v34  ;;  %v2065_v55 = vmul.f32 %v2033_v44, %v2033_v44  ;;  %v4761_v44 = vadd.f32 -1.0, %v2064_v48  ;;  %v7932_v32 = vpop.f32.mrb[31].mxu1 }
 0x351   : > { %v6102_v11 = vpop.eup %6101  ;;  %v1979_v12 = vmul.f32 1.442695, %v1941_v30  ;;  %v7926_v14 = vadd.f32 %v5558_v7, %v7784_v60  ;;  %v2127_v7 = vmul.f32 %v4760_v8, %v7876_v15  ;;  %v2941_v8 = vld [vmem:[#allocation9 + $0x168] sm:$0xff] }
 0x352   : > { %v2161_v42 = vadd.f32 1.0, %v2065_v55  ;;  %v2034_v53 = vadd.f32 1.0, %v6102_v11  ;;  %v1591_v62 = vpop.f32.mrb[16].mxu0 }
 0x353   : > { %6111 = vpow2.f32 %v1979_v12  ;;  %v1942_v22 = vmin.f32 %v7926_v14, 20.0  ;;  %v5559_v45 = vadd.f32 %v7871_v38, %v1591_v62  ;;  %v1593_v37 = vpop.f32.mrb[17].mxu0  ;;  %vm2262_vm11 = vcmp.gt.f32.partialorder %v7926_v14, 20.0 }
 0x354   : > { %6113 = vrcp.f32 %v2161_v42  ;;  %v2066_v34 = vmul.f32 %v2034_v53, %v2034_v53  ;;  %v2940_v53 = vld [vmem:[#allocation9 + $0x160] sm:$0xff] }
 0x355   : > { %v6104_v13 = vpop.eup %6103  ;;  %v1981_v60 = vmul.f32 1.442695, %v1942_v22  ;;  %v7936_v30 = vadd.f32 %v5559_v45, %v7803_v61  ;;  %v2128_v22 = vmul.f32 %v4761_v44, %v7885_v3  ;;  %v5378_v24 = vpack.c.bf16 %v2941_v8, %v2940_v53 }
 0x356   : > { %v6106_v11 = vpop.eup %6105  ;;  %v2162_v12 = vadd.f32 1.0, %v2066_v34  ;;  %v2035_v62 = vadd.f32 1.0, %v6104_v13  ;;  %v1596_v37 = vpop.f32.mrb[18].mxu0 }
 0x357   : > { %v2223_v41 = vmul.f32 %v6106_v11, %v2127_v7  ;;  %6115 = vpow2.f32 %v1981_v60  ;;  %v1943_v48 = vmin.f32 %v7936_v30, 20.0  ;;  %v1598_v42 = vpop.f32.mrb[19].mxu0  ;;  %v5560_v45 = vadd.f32 %v7871_v38, %v1596_v37  ;;  %5379 = vmatpush1.bf16.msra.mxu1 %v5378_v24 }
 0x358   : > { %6117 = vrcp.f32 %v2162_v12  ;;  %v2067_v61 = vmul.f32 %v2035_v62, %v2035_v62  ;;  %v4762_v7 = vadd.f32 -1.0, %v2065_v55  ;;  %v4763_v42 = vadd.f32 -1.0, %v2066_v34  ;;  %5380 = vmatprep.subr.bf16.mxu1 %v9789_v47 }
 0x359   : > { %v6108_v33 = vpop.eup %6107  ;;  %v2287_v13 = vsel %vm2255_vm2, %v7876_v15, %v2223_v41  ;;  %v1983_v11 = vmul.f32 1.442695, %v1943_v48  ;;  %v7949_v12 = vadd.f32 %v5560_v45, %v7800_v19  ;;  %vm2263_vm12 = vcmp.gt.f32.partialorder %v7936_v30, 20.0 }
 0x35a   : > { %v6110_v60 = vpop.eup %6109  ;;  %v7946_v18 = vrot.slane %v2287_v13, 7  ;;  %v2163_v9 = vadd.f32 1.0, %v2067_v61  ;;  %v2036_v17 = vadd.f32 1.0, %v6108_v33  ;;  %v1601_v56 = vpop.f32.mrb[20].mxu0  ;;  %v4764_v45 = vadd.f32 -1.0, %v2067_v61 }
 0x35b   : > { %v2224_v44 = vmul.f32 %v6110_v60, %v2128_v22  ;;  %6119 = vpow2.f32 %v1983_v11  ;;  %v5561_v62 = vadd.f32 %v7871_v38, %v1601_v56  ;;  %v1603_v37 = vpop.f32.mrb[21].mxu0  ;;  %v2129_v56 = vmul.f32 %v4762_v7, %v7890_v51 }
 0x35c   : > { %v7954_v41 = vsel %vm2358_vm3, 0.0, %v7946_v18  ;;  %6121 = vrcp.f32 %v2163_v9  ;;  %v2068_v15 = vmul.f32 %v2036_v17, %v2036_v17  ;;  %v1944_v24 = vmin.f32 %v7949_v12, 20.0 }
 0x35d   : > { %v6112_v33 = vpop.eup %6111  ;;  %2488 = vst [vmem:[#allocation2 + $0x18] sm:$0xff] %v7954_v41  ;;  %v2288_v19 = vsel %vm2256_vm4, %v7885_v3, %v2224_v44  ;;  %v7965_v55 = vadd.f32 %v5561_v62, %v7819_v36  ;;  %v2130_v9 = vmul.f32 %v4763_v42, %v7900_v31  ;;  %vm2264_vm13 = vcmp.gt.f32.partialorder %v7949_v12, 20.0 }
 0x35e   : > { %v6114_v34 = vpop.eup %6113  ;;  %v2360_v48 = vrot.slane %v2288_v19, 7  ;;  %v2164_v17 = vadd.f32 1.0, %v2068_v15  ;;  %v2037_v53 = vadd.f32 1.0, %v6112_v33  ;;  %v1606_v8 = vpop.f32.mrb[22].mxu0  ;;  %v1985_v13 = vmul.f32 1.442695, %v1944_v24 }
 0x35f   : > { %v2225_v22 = vmul.f32 %v6114_v34, %v2129_v56  ;;  %v1945_v11 = vmin.f32 %v7965_v55, 20.0  ;;  %v1608_v3 = vpop.f32.mrb[23].mxu0  ;;  %v4765_v60 = vadd.f32 -1.0, %v2068_v15  ;;  %v5562_v15 = vadd.f32 %v7871_v38, %v1606_v8 }
 0x360   : > { %v7971_v7 = vsel %vm2358_vm3, %v7946_v18, %v2360_v48  ;;  %v2471_v36 = vsel %vm2358_vm3, %v2360_v48, 0.0  ;;  %6123 = vrcp.f32 %v2164_v17  ;;  %v2069_v42 = vmul.f32 %v2037_v53, %v2037_v53 }
 0x361   : > { %v6116_v44 = vpop.eup %6115  ;;  %2489 = vst [vmem:[#allocation2 + $0x20] sm:$0xff] %v7971_v7  ;;  %2490 = vst [vmem:[#allocation2 + $0x28] sm:$0x3] %v2471_v36  ;;  %v2289_v61 = vsel %vm2257_vm5, %v7890_v51, %v2225_v22  ;;  %6125 = vpow2.f32 %v1985_v13  ;;  %v1987_v62 = vmul.f32 1.442695, %v1945_v11  ;;  %v7989_v53 = vadd.f32 %v5562_v15, %v7817_v16 }
 0x362   : > { %v6118_v37 = vpop.eup %6117  ;;  %v7978_v33 = vrot.slane %v2289_v61, 7  ;;  %v2038_v19 = vadd.f32 1.0, %v6116_v44  ;;  %v1611_v56 = vpop.f32.mrb[24].mxu0  ;;  %v2165_v34 = vadd.f32 1.0, %v2069_v42  ;;  %v2131_v13 = vmul.f32 %v4764_v45, %v7905_v29 }
 0x363   : > { %v2226_v24 = vmul.f32 %v6118_v37, %v2130_v9  ;;  %6127 = vpow2.f32 %v1987_v62  ;;  %v1613_v48 = vpop.f32.mrb[25].mxu0  ;;  %v5563_v22 = vadd.f32 %v7871_v38, %v1611_v56  ;;  %v2132_v11 = vmul.f32 %v4765_v60, %v7915_v27 }
 0x364   : > { %v7985_v51 = vsel %vm2358_vm3, 0.0, %v7978_v33  ;;  %v2070_v17 = vmul.f32 %v2038_v19, %v2038_v19  ;;  %6129 = vrcp.f32 %v2165_v34  ;;  %v9668_v62 = vrot.slane %v7971_v7, 1 }
 0x365   : > { %v6120_v8 = vpop.eup %6119  ;;  %2491 = vst [vmem:[#allocation2 + $0x30] sm:$0xff] %v7985_v51  ;;  %v2290_v9 = vsel %vm2258_vm6, %v7900_v31, %v2226_v24  ;;  %v1946_v19 = vmin.f32 %v7989_v53, 20.0  ;;  %v8001_v15 = vadd.f32 %v5563_v22, %v7833_v50  ;;  %v2643_v31 = vrot.slane %v7954_v41, 1 }
 0x366   : > { %v6122_v3 = vpop.eup %6121  ;;  %v2363_v36 = vrot.slane %v2290_v9, 7  ;;  %v2166_v44 = vadd.f32 1.0, %v2070_v17  ;;  %v2039_v61 = vadd.f32 1.0, %v6120_v8  ;;  %v1616_v16 = vpop.f32.mrb[26].mxu0  ;;  %v4766_v24 = vadd.f32 -1.0, %v2069_v42 }
 0x367   : > { %v2227_v37 = vmul.f32 %v6122_v3, %v2131_v13  ;;  %v1618_v56 = vpop.f32.mrb[27].mxu0  ;;  %v1989_v48 = vmul.f32 1.442695, %v1946_v19  ;;  %v1947_v22 = vmin.f32 %v8001_v15, 20.0  ;;  %v5564_v9 = vadd.f32 %v7871_v38, %v1616_v16 }
 0x368   : > { %v8006_v45 = vsel %vm2358_vm3, %v7978_v33, %v2363_v36  ;;  %v2472_v60 = vsel %vm2358_vm3, %v2363_v36, 0.0  ;;  %6131 = vrcp.f32 %v2166_v44  ;;  %v2071_v50 = vmul.f32 %v2039_v61, %v2039_v61 }
 0x369   : > { %2492 = vst [vmem:[#allocation2 + $0x38] sm:$0xff] %v8006_v45  ;;  %2493 = vst [vmem:[#allocation2 + $0x40] sm:$0x3] %v2472_v60  ;;  %v2291_v34 = vsel %vm2259_vm7, %v7905_v29, %v2227_v37  ;;  %v8021_v13 = vsel %vm399_vm0, %v2643_v31, %v9668_v62  ;;  %v4767_v29 = vadd.f32 -1.0, %v2070_v17  ;;  %6133 = vpow2.f32 %v1989_v48 }
 0x36a   : > { %v6124_v41 = vpop.eup %6123  ;;  %v8014_v8 = vrot.slane %v2291_v34, 7  ;;  %v1621_v42 = vpop.f32.mrb[28].mxu0  ;;  %9826 = vst [vmem:[#allocation57_spill] sm:$0xff] %v8021_v13  ;;  %v2167_v44 = vadd.f32 1.0, %v2071_v50  ;;  %3121 = vmatprep.mubr.f32.mxu1 %v8021_v13  ;;  %v1991_v16 = vmul.f32 1.442695, %v1947_v22  ;;  %v8029_v56 = vadd.f32 %v5564_v9, %v7831_v5 }
 0x36b   : > { %v6126_v3 = vpop.eup %6125  ;;  %v2228_v36 = vmul.f32 %v6124_v41, %v2132_v11  ;;  %v1623_v61 = vpop.f32.mrb[29].mxu0  ;;  %6412 = vmatmul.mubr.msk.f32.gmra.mrb[36].mxu1 %vm8032_vm10, %v7946_v18  ;;  %v2133_v60 = vmul.f32 %v4766_v24, %v7920_v63  ;;  %v5565_v5 = vadd.f32 %v7871_v38, %v1621_v42  ;;  %v2134_v18 = vmul.f32 %v4767_v29, %v7926_v14 }
 0x36c   : > { %v8026_v37 = vsel %vm2358_vm3, 0.0, %v8014_v8  ;;  %v2040_v19 = vadd.f32 1.0, %v6126_v3  ;;  %6135 = vrcp.f32 %v2167_v44  ;;  %v1948_v3 = vmin.f32 %v8029_v56, 20.0 }
 0x36d   : > { %v6128_v17 = vpop.eup %6127  ;;  %2494 = vst [vmem:[#allocation2 + $0x48] sm:$0xff] %v8026_v37  ;;  %v2292_v11 = vsel %vm2260_vm8, %v7915_v27, %v2228_v36  ;;  %6137 = vpow2.f32 %v1991_v16  ;;  %v8048_v61 = vadd.f32 %v5565_v5, %v7845_v6  ;;  %vm2265_vm14 = vcmp.gt.f32.partialorder %v7965_v55, 20.0 }
 0x36e   : > { %v2366_v34 = vrot.slane %v2292_v11, 7  ;;  %v2072_v48 = vmul.f32 %v2040_v19, %v2040_v19  ;;  %v2041_v22 = vadd.f32 1.0, %v6128_v17  ;;  %v1626_v41 = vpop.f32.mrb[30].mxu0  ;;  %v6130_v9 = vpop.eup %6129  ;;  %v4768_v19 = vadd.f32 -1.0, %v2071_v50 }
 0x36f   : > { %v5566_v27 = vadd.f32 %v7871_v38, %v1626_v41  ;;  %v1628_v36 = vpop.f32.mrb[31].mxu0  ;;  %v2229_v44 = vmul.f32 %v6130_v9, %v2133_v60  ;;  %v1993_v17 = vmul.f32 1.442695, %v1948_v3  ;;  %v1949_v6 = vmin.f32 %v8048_v61, 20.0 }
 0x370   : > { %v8053_v24 = vsel %vm2358_vm3, %v8014_v8, %v2366_v34  ;;  %v2473_v42 = vsel %vm2358_vm3, %v2366_v34, 0.0  ;;  %v2168_v29 = vadd.f32 1.0, %v2072_v48  ;;  %v2073_v16 = vmul.f32 %v2041_v22, %v2041_v22 }
 0x371   : > { %2495 = vst [vmem:[#allocation2 + $0x50] sm:$0xff] %v8053_v24  ;;  %2496 = vst [vmem:[#allocation2 + $0x58] sm:$0x3] %v2473_v42  ;;  %v2293_v5 = vsel %vm2261_vm9, %v7920_v63, %v2229_v44  ;;  %v8063_v41 = vadd.f32 %v5566_v27, %v7841_v59  ;;  %v1995_v3 = vmul.f32 1.442695, %v1949_v6  ;;  %v2135_v27 = vmul.f32 %v4768_v19, %v7936_v30 }
 0x372   : > { %v6132_v11 = vpop.eup %6131  ;;  %v1631_v60 = vpop.f32.mrb[32].mxu0  ;;  %v8065_v50 = vrot.slane %v2293_v5, 7  ;;  %6139 = vrcp.f32 %v2168_v29  ;;  %v2169_v9 = vadd.f32 1.0, %v2073_v16  ;;  %v2541_v42 = vld [vmem:[#allocation2 + $0x28] sm:$0x3]  ;;  %vm2266_vm15 = vcmp.gt.f32.partialorder %v7989_v53, 20.0 }
 0x373   : > { %v2230_v34 = vmul.f32 %v6132_v11, %v2134_v18  ;;  %v1633_v22 = vpop.f32.mrb[33].mxu0  ;;  %6141 = vpow2.f32 %v1993_v17  ;;  %v1950_v36 = vmin.f32 %v8063_v41, 20.0  ;;  %v6134_v63 = vpop.eup %6133  ;;  %v4769_v18 = vadd.f32 -1.0, %v2072_v48 }
 0x374   : > { %v8071_v44 = vsel %vm2358_vm3, 0.0, %v8065_v50  ;;  %6143 = vrcp.f32 %v2169_v9  ;;  %v2042_v11 = vadd.f32 1.0, %v6134_v63  ;;  %v4770_v22 = vadd.f32 -1.0, %v2073_v16 }
 0x375   : > { %v2294_v59 = vsel %vm2262_vm11, %v7926_v14, %v2230_v34  ;;  %2497 = vst [vmem:[#allocation2 + $0x60] sm:$0xff] %v8071_v44  ;;  %v1997_v17 = vmul.f32 1.442695, %v1950_v36  ;;  %6145 = vpow2.f32 %v1995_v3  ;;  %v2646_v62 = vrot.slane %v2541_v42, 1 }
 0x376   : > { %v2369_v29 = vrot.slane %v2294_v59, 7  ;;  %v1636_v6 = vpop.f32.mrb[34].mxu0  ;;  %v6136_v5 = vpop.eup %6135  ;;  %v5567_v46 = vadd.f32 %v7871_v38, %v1631_v60  ;;  %v2074_v9 = vmul.f32 %v2042_v11, %v2042_v11  ;;  %v9829_v16 = vrot.slane %v7971_v7, 1 }
 0x377   : > { %v1638_v40 = vpop.f32.mrb[35].mxu0  ;;  %v6138_v14 = vpop.eup %6137  ;;  %v2231_v34 = vmul.f32 %v6136_v5, %v2135_v27  ;;  %6147 = vpow2.f32 %v1997_v17  ;;  %v2648_v63 = vrot.slane %v7985_v51, 1  ;;  %v2649_v59 = vrot.slane %v8006_v45, 1 }
 0x378   : > { %v8080_v48 = vsel %vm2358_vm3, %v8065_v50, %v2369_v29  ;;  %v2474_v19 = vsel %vm2358_vm3, %v2369_v29, 0.0  ;;  %v2043_v36 = vadd.f32 1.0, %v6138_v14  ;;  %v8087_v3 = vsel %vm399_vm0, %v9829_v16, %v2646_v62 }
 0x379   : > { %2498 = vst [vmem:[#allocation2 + $0x68] sm:$0xff] %v8080_v48  ;;  %2499 = vst [vmem:[#allocation2 + $0x70] sm:$0x3] %v2474_v19  ;;  %v8090_v40 = vadd.f32 %v5567_v46, %v7855_v4  ;;  %v2295_v60 = vsel %vm2263_vm12, %v7936_v30, %v2231_v34  ;;  %v2170_v42 = vadd.f32 1.0, %v2074_v9  ;;  %3126 = vmatprep.mubr.f32.mxu1 %v8087_v3  ;;  %v2544_v4 = vld [vmem:[#allocation2 + $0x40] sm:$0x3] }
 0x37a   : > { %9830 = vst [vmem:[#allocation58_spill] sm:$0xff] %v8087_v3  ;;  %v1641_v27 = vpop.f32.mrb[36].mxu0  ;;  %v8098_v29 = vrot.slane %v2295_v60, 7  ;;  %v2075_v62 = vmul.f32 %v2043_v36, %v2043_v36  ;;  %3127 = vmatmul.mubr.f32.gmra.mrb[38].mxu1 %v7971_v7  ;;  %v2136_v30 = vmul.f32 %v4769_v18, %v7949_v12  ;;  %v2137_v17 = vmul.f32 %v4770_v22, %v7965_v55 }
 0x37b   : > { %v1951_v46 = vmin.f32 %v8090_v40, 20.0  ;;  %v1643_v11 = vpop.f32.mrb[37].mxu0  ;;  %6149 = vrcp.f32 %v2170_v42  ;;  %v8106_v5 = vsel %vm399_vm0, %v2648_v63, %v2649_v59  ;;  %v2760_v7 = vrot.slane %v7985_v51, 2 }
 0x37c   : > { %9831 = vst [vmem:[#allocation59_spill] sm:$0xff] %v8106_v5  ;;  %v6140_v14 = vpop.eup %6139  ;;  %v8110_v19 = vsel %vm2358_vm3, 0.0, %v8098_v29  ;;  %v2171_v34 = vadd.f32 1.0, %v2075_v62  ;;  %3131 = vmatprep.mubr.f32.mxu1 %v8106_v5  ;;  %v2761_v22 = vrot.slane %v8006_v45, 2  ;;  %v2763_v60 = vrot.slane %v2544_v4, 2 }
 0x37d   : > { %v1999_v36 = vmul.f32 1.442695, %v1951_v46  ;;  %v6142_v16 = vpop.eup %6141  ;;  %2500 = vst [vmem:[#allocation2 + $0x78] sm:$0xff] %v8110_v19  ;;  %v2232_v18 = vmul.f32 %v6140_v14, %v2136_v30  ;;  %v5568_v42 = vadd.f32 %v7871_v38, %v1636_v6  ;;  %v4771_v11 = vadd.f32 -1.0, %v2074_v9 }
 0x37e   : > { %v8117_v63 = vpop.f32.mrb[38].mxu0  ;;  %6151 = vrcp.f32 %v2171_v34  ;;  %v2044_v26 = vadd.f32 1.0, %v6142_v16  ;;  %6414 = vmatmul.mubr.msk.f32.gmra.mrb[40].mxu1 %vm8032_vm10, %v7978_v33  ;;  %v2651_v46 = vrot.slane %v2544_v4, 1  ;;  %v6144_v0 = vpop.eup %6143  ;;  %v8126_v14 = vsel %vm512_vm1, %v2760_v7, %v2761_v22 }
 0x37f   : > { %v1648_v51 = vpop.f32.mrb[39].mxu0  ;;  %v2296_v30 = vsel %vm2264_vm13, %v7949_v12, %v2232_v18  ;;  %6153 = vpow2.f32 %v1999_v36  ;;  %v8129_v6 = vsel %vm512_vm1, %v2761_v22, %v2763_v60  ;;  %v6146_v9 = vpop.eup %6145  ;;  %v2233_v16 = vmul.f32 %v6144_v0, %v2137_v17  ;;  %5039 = vmatprep.mubr.f32.mxu0 %v8126_v14 }
 0x380   : > { %v2372_v34 = vrot.slane %v2296_v30, 7  ;;  %v2076_v28 = vmul.f32 %v2044_v26, %v2044_v26  ;;  %v8133_v33 = vadd.f32 %v5568_v42, %v7853_v54  ;;  %v2045_v4 = vadd.f32 1.0, %v6146_v9  ;;  %5040 = vmatmul.mubr.f32.vlgmr.msra.gmra.mrb[64].mxu0 %v8129_v6 }
 0x381   : > { %v8138_v12 = vsel %vm399_vm0, %v2649_v59, %v2651_v46  ;;  %v5569_v36 = vadd.f32 %v7871_v38, %v1641_v27  ;;  %v6148_v18 = vpop.eup %6147  ;;  %v2297_v54 = vsel %vm2265_vm14, %v7965_v55, %v2233_v16  ;;  %v4772_v17 = vadd.f32 -1.0, %v2075_v62 }
 0x382   : > { %9832 = vst [vmem:[#allocation60_spill] sm:$0xff] %v8138_v12  ;;  %v8141_v7 = vpop.f32.mrb[40].mxu0  ;;  %v8145_v0 = vsel %vm2358_vm3, %v8098_v29, %v2372_v34  ;;  %v2475_v26 = vsel %vm2358_vm3, %v2372_v34, 0.0  ;;  %3136 = vmatprep.mubr.f32.mxu1 %v8138_v12  ;;  %v8153_v27 = vrot.slane %v2297_v54, 7  ;;  %v2172_v22 = vadd.f32 1.0, %v2076_v28 }
 0x383   : > { %v1653_v59 = vpop.f32.mrb[41].mxu0  ;;  %2501 = vst [vmem:[#allocation2 + $0x80] sm:$0xff] %v8145_v0  ;;  %2502 = vst [vmem:[#allocation2 + $0x88] sm:$0x3] %v2475_v26  ;;  %v2077_v60 = vmul.f32 %v2045_v4, %v2045_v4  ;;  %v2046_v42 = vadd.f32 1.0, %v6148_v18  ;;  %3137 = vmatmul.mubr.f32.gmra.mrb[42].mxu1 %v8006_v45  ;;  %v2138_v46 = vmul.f32 %v4771_v11, %v7989_v53  ;;  %v4773_v51 = vadd.f32 -1.0, %v2076_v28 }
 0x384   : > { %v1952_v30 = vmin.f32 %v8133_v33, 20.0  ;;  %v8159_v55 = vadd.f32 %v5569_v36, %v7859_v1  ;;  %v8163_v9 = vsel %vm2358_vm3, 0.0, %v8153_v27  ;;  %vm2267_vm2 = vcmp.gt.f32.partialorder %v8001_v15, 20.0 }
 0x385   : > { %v6150_v62 = vpop.eup %6149  ;;  %6155 = vrcp.f32 %v2172_v22  ;;  %v2173_v34 = vadd.f32 1.0, %v2077_v60  ;;  %2503 = vst [vmem:[#allocation2 + $0x90] sm:$0xff] %v8163_v9  ;;  %v2078_v28 = vmul.f32 %v2046_v42, %v2046_v42  ;;  %v2139_v36 = vmul.f32 %v4772_v17, %v8001_v15 }
 0x386   : > { %v8166_v16 = vpop.f32.mrb[42].mxu0  ;;  %v2234_v45 = vmul.f32 %v6150_v62, %v2138_v46  ;;  %v2001_v11 = vmul.f32 1.442695, %v1952_v30  ;;  %v1953_v4 = vmin.f32 %v8159_v55, 20.0  ;;  %v2653_v18 = vrot.slane %v8026_v37, 1 }
 0x387   : > { %v1658_v1 = vpop.f32.mrb[43].mxu0  ;;  %6157 = vrcp.f32 %v2173_v34  ;;  %v2654_v26 = vrot.slane %v8053_v24, 1  ;;  %v2140_v22 = vmul.f32 %v4773_v51, %v8029_v56  ;;  %v2174_v46 = vadd.f32 1.0, %v2078_v28 }
 0x388   : > { %v6152_v54 = vpop.eup %6151  ;;  %v2298_v59 = vsel %vm2266_vm15, %v7989_v53, %v2234_v45  ;;  %6159 = vpow2.f32 %v2001_v11  ;;  %vm2268_vm4 = vcmp.gt.f32.partialorder %v8029_v56, 20.0  ;;  %v2003_v17 = vmul.f32 1.442695, %v1953_v4  ;;  %v2547_v1 = vld [vmem:[#allocation2 + $0x58] sm:$0x3] }
 0x389   : > { %v6154_v42 = vpop.eup %6153  ;;  %v2375_v30 = vrot.slane %v2298_v59, 7  ;;  %v2235_v62 = vmul.f32 %v6152_v54, %v2139_v36  ;;  %v8179_v34 = vsel %vm399_vm0, %v2653_v18, %v2654_v26  ;;  %v4774_v12 = vadd.f32 -1.0, %v2077_v60 }
 0x38a   : > { %9833 = vst [vmem:[#allocation61_spill] sm:$0xff] %v8179_v34  ;;  %v8181_v49 = vpop.f32.mrb[44].mxu0  ;;  %6161 = vrcp.f32 %v2174_v46  ;;  %v2047_v5 = vadd.f32 1.0, %v6154_v42  ;;  %3141 = vmatprep.mubr.f32.mxu1 %v8179_v34  ;;  %v2765_v53 = vrot.slane %v8026_v37, 2  ;;  %vm2269_vm5 = vcmp.gt.f32.partialorder %v8048_v61, 20.0 }
 0x38b   : > { %v1663_v51 = vpop.f32.mrb[45].mxu0  ;;  %v8187_v45 = vsel %vm2358_vm3, %v8153_v27, %v2375_v30  ;;  %v2476_v11 = vsel %vm2358_vm3, %v2375_v30, 0.0  ;;  %v2299_v4 = vsel %vm2267_vm2, %v8001_v15, %v2235_v62  ;;  %6163 = vpow2.f32 %v2003_v17  ;;  %6416 = vmatmul.mubr.msk.f32.gmra.mrb[44].mxu1 %vm8032_vm10, %v8014_v8 }
 0x38c   : > { %2504 = vst [vmem:[#allocation2 + $0x98] sm:$0xff] %v8187_v45  ;;  %2505 = vst [vmem:[#allocation2 + $0xa0] sm:$0x3] %v2476_v11  ;;  %v8198_v37 = vrot.slane %v2299_v4, 7  ;;  %v2079_v60 = vmul.f32 %v2047_v5, %v2047_v5  ;;  %v2766_v36 = vrot.slane %v8053_v24, 2  ;;  %v2768_v18 = vrot.slane %v2547_v1, 2 }
 0x38d   : > { %v4775_v54 = vadd.f32 -1.0, %v2078_v28  ;;  %v5570_v15 = vadd.f32 %v7871_v38, %v8117_v63  ;;  %v2656_v59 = vrot.slane %v2547_v1, 1  ;;  %v5571_v46 = vadd.f32 %v7871_v38, %v8141_v7 }
 0x38e   : > { %v8205_v42 = vpop.f32.mrb[46].mxu0  ;;  %v8209_v8 = vsel %vm2358_vm3, 0.0, %v8198_v37  ;;  %v2141_v30 = vmul.f32 %v4774_v12, %v8048_v61  ;;  %vm2270_vm6 = vcmp.gt.f32.partialorder %v8063_v41, 20.0  ;;  %v2175_v5 = vadd.f32 1.0, %v2079_v60 }
 0x38f   : > { %v8214_v28 = vsel %vm512_vm1, %v2765_v53, %v2766_v36  ;;  %v1668_v62 = vpop.f32.mrb[47].mxu0  ;;  %v6156_v63 = vpop.eup %6155  ;;  %2506 = vst [vmem:[#allocation2 + $0xa8] sm:$0xff] %v8209_v8  ;;  %v8219_v7 = vsel %vm512_vm1, %v2766_v36, %v2768_v18  ;;  %v8222_v17 = vadd.f32 %v5570_v15, %v7857_v57  ;;  %v8225_v12 = vsel %vm399_vm0, %v2654_v26, %v2656_v59 }
 0x390   : > { %5042 = vmatprep.mubr.f32.mxu0 %v8214_v28  ;;  %9834 = vst [vmem:[#allocation62_spill] sm:$0xff] %v8225_v12  ;;  %v8228_v1 = vadd.f32 %v5571_v46, %v7865_v23  ;;  %v2236_v53 = vmul.f32 %v6156_v63, %v2140_v22  ;;  %6165 = vrcp.f32 %v2175_v5  ;;  %3146 = vmatprep.mubr.f32.mxu1 %v8225_v12  ;;  %v2658_v51 = vrot.slane %v8071_v44, 1  ;;  %v2550_v22 = vld [vmem:[#allocation2 + $0x70] sm:$0x3] }
 0x391   : > { %5043 = vmatmul.mubr.f32.gmra.mrb[66].mxu0 %v8219_v7  ;;  %v2659_v11 = vrot.slane %v8080_v48, 1  ;;  %v6158_v4 = vpop.eup %6157  ;;  %v2142_v57 = vmul.f32 %v4775_v54, %v8063_v41  ;;  %v4776_v36 = vadd.f32 -1.0, %v2079_v60  ;;  %v1954_v26 = vmin.f32 %v8222_v17, 20.0  ;;  %3147 = vmatmul.mubr.f32.gmra.mrb[46].mxu1 %v8053_v24 }
 0x392   : > { %v1955_v23 = vmin.f32 %v8228_v1, 20.0  ;;  %v8238_v18 = vpop.f32.mrb[48].mxu0  ;;  %v6160_v15 = vpop.eup %6159  ;;  %v2300_v59 = vsel %vm2268_vm4, %v8029_v56, %v2236_v53  ;;  %v2237_v46 = vmul.f32 %v6158_v4, %v2141_v30  ;;  %v2770_v60 = vrot.slane %v8071_v44, 2 }
 0x393   : > { %v8246_v54 = vsel %vm399_vm0, %v2658_v51, %v2659_v11  ;;  %v1673_v5 = vpop.f32.mrb[49].mxu0  ;;  %v2378_v24 = vrot.slane %v2300_v59, 7  ;;  %v2048_v62 = vadd.f32 1.0, %v6160_v15  ;;  %v2005_v63 = vmul.f32 1.442695, %v1954_v26 }
 0x394   : > { %9835 = vst [vmem:[#allocation63_spill] sm:$0xff] %v8246_v54  ;;  %v2007_v12 = vmul.f32 1.442695, %v1955_v23  ;;  %3151 = vmatprep.mubr.f32.mxu1 %v8246_v54  ;;  %v6162_v34 = vpop.eup %6161  ;;  %v2301_v56 = vsel %vm2269_vm5, %v8048_v61, %v2237_v46  ;;  %v2771_v30 = vrot.slane %v8080_v48, 2  ;;  %v2773_v53 = vrot.slane %v2550_v22, 2 }
 0x395   : > { %v5572_v51 = vadd.f32 %v7871_v38, %v8166_v16  ;;  %v6164_v4 = vpop.eup %6163  ;;  %v8258_v44 = vsel %vm2358_vm3, %v8198_v37, %v2378_v24  ;;  %v2477_v26 = vsel %vm2358_vm3, %v2378_v24, 0.0  ;;  %v8261_v23 = vrot.slane %v2301_v56, 7  ;;  %6418 = vmatmul.mubr.msk.f32.gmra.mrb[48].mxu1 %vm8032_vm10, %v8065_v50 }
 0x396   : > { %v2238_v15 = vmul.f32 %v6162_v34, %v2142_v57  ;;  %v8266_v61 = vpop.f32.mrb[50].mxu0  ;;  %2507 = vst [vmem:[#allocation2 + $0xb0] sm:$0xff] %v8258_v44  ;;  %2508 = vst [vmem:[#allocation2 + $0xb8] sm:$0x3] %v2477_v26  ;;  %v2080_v16 = vmul.f32 %v2048_v62, %v2048_v62  ;;  %v2049_v59 = vadd.f32 1.0, %v6164_v4  ;;  %6167 = vpow2.f32 %v2005_v63 }
 0x397   : > { %v8270_v46 = vsel %vm512_vm1, %v2770_v60, %v2771_v30  ;;  %v1678_v5 = vpop.f32.mrb[51].mxu0  ;;  %v8274_v24 = vsel %vm2358_vm3, 0.0, %v8261_v23  ;;  %6169 = vpow2.f32 %v2007_v12  ;;  %v8281_v34 = vsel %vm512_vm1, %v2771_v30, %v2773_v53 }
 0x398   : > { %v2302_v50 = vsel %vm2270_vm6, %v8063_v41, %v2238_v15  ;;  %5045 = vmatprep.mubr.f32.mxu0 %v8270_v46  ;;  %2509 = vst [vmem:[#allocation2 + $0xc0] sm:$0xff] %v8274_v24  ;;  %v2176_v60 = vadd.f32 1.0, %v2080_v16  ;;  %v2081_v62 = vmul.f32 %v2049_v59, %v2049_v59  ;;  %v2143_v63 = vmul.f32 %v4776_v36, %v8090_v40  ;;  %v2553_v5 = vld [vmem:[#allocation2 + $0x88] sm:$0x3] }
 0x399   : > { %v2381_v57 = vrot.slane %v2302_v50, 7  ;;  %5046 = vmatmul.mubr.f32.gmra.mrb[68].mxu0 %v8281_v34  ;;  %v8287_v56 = vadd.f32 %v5572_v51, %v7863_v43  ;;  %v2661_v4 = vrot.slane %v2550_v22, 1  ;;  %v5573_v41 = vadd.f32 %v7871_v38, %v8181_v49 }
 0x39a   : > { %v8291_v12 = vpop.f32.mrb[52].mxu0  ;;  %v6166_v30 = vpop.eup %6165  ;;  %6171 = vrcp.f32 %v2176_v60  ;;  %vm2271_vm7 = vcmp.gt.f32.partialorder %v8090_v40, 20.0  ;;  %v2177_v36 = vadd.f32 1.0, %v2081_v62  ;;  %v2663_v51 = vrot.slane %v8110_v19, 1 }
 0x39b   : > { %v8295_v53 = vsel %vm2358_vm3, %v8261_v23, %v2381_v57  ;;  %v2478_v26 = vsel %vm2358_vm3, %v2381_v57, 0.0  ;;  %v1683_v15 = vpop.f32.mrb[53].mxu0  ;;  %v2239_v43 = vmul.f32 %v6166_v30, %v2143_v63  ;;  %v1956_v49 = vmin.f32 %v8287_v56, 20.0 }
 0x39c   : > { %2510 = vst [vmem:[#allocation2 + $0xc8] sm:$0xff] %v8295_v53  ;;  %2511 = vst [vmem:[#allocation2 + $0xd0] sm:$0x3] %v2478_v26  ;;  %v8304_v38 = vsel %vm399_vm0, %v2659_v11, %v2661_v4  ;;  %v8307_v22 = vadd.f32 %v5573_v41, %v7869_v20  ;;  %v2664_v59 = vrot.slane %v8145_v0, 1  ;;  %v4777_v57 = vadd.f32 -1.0, %v2080_v16 }
 0x39d   : > { %9836 = vst [vmem:[#allocation64_spill] sm:$0xff] %v8304_v38  ;;  %v2303_v50 = vsel %vm2271_vm7, %v8090_v40, %v2239_v43  ;;  %6173 = vrcp.f32 %v2177_v36  ;;  %v2009_v60 = vmul.f32 1.442695, %v1956_v49  ;;  %3156 = vmatprep.mubr.f32.mxu1 %v8304_v38  ;;  %v4778_v11 = vadd.f32 -1.0, %v2081_v62  ;;  %v8329_v43 = vld [vmem:[#allocation8] ss:$0 sm:$0xff] }
 0x39e   : > { %v8313_v63 = vpop.f32.mrb[54].mxu0  ;;  %v8315_v30 = vrot.slane %v2303_v50, 7  ;;  %3157 = vmatmul.mubr.f32.gmra.mrb[50].mxu1 %v8080_v48  ;;  %v1957_v20 = vmin.f32 %v8307_v22, 20.0  ;;  %v8320_v4 = vsel %vm399_vm0, %v2663_v51, %v2664_v59  ;;  %v2775_v40 = vrot.slane %v8110_v19, 2 }
 0x39f   : > { %9837 = vst [vmem:[#allocation65_spill] sm:$0xff] %v8320_v4  ;;  %v1688_v41 = vpop.f32.mrb[55].mxu0  ;;  %6175 = vpow2.f32 %v2009_v60  ;;  %3161 = vmatprep.mubr.f32.mxu1 %v8320_v4  ;;  %v2776_v16 = vrot.slane %v8145_v0, 2  ;;  %v2778_v26 = vrot.slane %v2553_v5, 2  ;;  %v5574_v36 = vadd.f32 %v8329_v43, %v8205_v42 }
 0x3a0   : > { %v6168_v15 = vpop.eup %6167  ;;  %v8327_v62 = vsel %vm2358_vm3, 0.0, %v8315_v30  ;;  %v2011_v48 = vmul.f32 1.442695, %v1957_v20  ;;  %v2666_v49 = vrot.slane %v2553_v5, 1  ;;  %v5575_v41 = vadd.f32 %v8329_v43, %v8238_v18 }
 0x3a1   : > { %v6170_v51 = vpop.eup %6169  ;;  %2512 = vst [vmem:[#allocation2 + $0xd8] sm:$0xff] %v8327_v62  ;;  %v2050_v50 = vadd.f32 1.0, %v6168_v15  ;;  %v8335_v19 = vsel %vm512_vm1, %v2775_v40, %v2776_v16  ;;  %v8338_v60 = vsel %vm512_vm1, %v2776_v16, %v2778_v26  ;;  %v8349_v42 = vadd.f32 %v5574_v36, %v7867_v10 }
 0x3a2   : > { %9838 = vst [vmem:[#allocation66_spill] sm:$0xff] %v8338_v60  ;;  %v8342_v20 = vpop.f32.mrb[56].mxu0  ;;  %v2051_v4 = vadd.f32 1.0, %v6170_v51  ;;  %6177 = vpow2.f32 %v2011_v48  ;;  %5048 = vmatprep.mubr.f32.mxu0 %v8335_v19  ;;  %6420 = vmatmul.mubr.msk.f32.gmra.mrb[52].mxu1 %vm8032_vm10, %v8098_v29  ;;  %v8352_v5 = vsel %vm399_vm0, %v2664_v59, %v2666_v49  ;;  %v2144_v16 = vmul.f32 %v4777_v57, %v8133_v33  ;;  %v2556_v51 = vld [vmem:[#allocation2 + $0xa0] sm:$0x3] }
 0x3a3   : > { %9839 = vst [vmem:[#allocation67_spill] sm:$0xff] %v8352_v5  ;;  %v1693_v40 = vpop.f32.mrb[57].mxu0  ;;  %vm2272_vm8 = vcmp.gt.f32.partialorder %v8133_v33, 20.0  ;;  %v2082_v18 = vmul.f32 %v2050_v50, %v2050_v50  ;;  %5049 = vmatmul.mubr.f32.gmra.mrb[70].mxu0 %v8338_v60  ;;  %3166 = vmatprep.mubr.f32.mxu1 %v8352_v5  ;;  %v8359_v26 = vadd.f32 %v5575_v41, %v7882_v21  ;;  %vm2273_vm9 = vcmp.gt.f32.partialorder %v8159_v55, 20.0 }
 0x3a4   : > { %v6172_v29 = vpop.eup %6171  ;;  %v2145_v10 = vmul.f32 %v4778_v11, %v8159_v55  ;;  %v2083_v59 = vmul.f32 %v2051_v4, %v2051_v4  ;;  %v1958_v15 = vmin.f32 %v8349_v42, 20.0  ;;  %v2669_v49 = vrot.slane %v8187_v45, 1 }
 0x3a5   : > { %v2240_v48 = vmul.f32 %v6172_v29, %v2144_v16  ;;  %v2178_v57 = vadd.f32 1.0, %v2082_v18  ;;  %v1959_v36 = vmin.f32 %v8359_v26, 20.0  ;;  %v2668_v11 = vrot.slane %v8163_v9, 1 }
 0x3a6   : > { %v8366_v50 = vpop.f32.mrb[58].mxu0  ;;  %v2179_v40 = vadd.f32 1.0, %v2083_v59  ;;  %v2013_v21 = vmul.f32 1.442695, %v1958_v15  ;;  %3167 = vmatmul.mubr.f32.gmra.mrb[54].mxu1 %v8145_v0  ;;  %v2780_v41 = vrot.slane %v8163_v9, 2  ;;  %v4779_v29 = vadd.f32 -1.0, %v2082_v18 }
 0x3a7   : > { %v1698_v4 = vpop.f32.mrb[59].mxu0  ;;  %v6174_v5 = vpop.eup %6173  ;;  %v2304_v16 = vsel %vm2272_vm8, %v8133_v33, %v2240_v48  ;;  %6179 = vrcp.f32 %v2178_v57  ;;  %v2015_v38 = vmul.f32 1.442695, %v1959_v36  ;;  %v4780_v13 = vadd.f32 -1.0, %v2083_v59 }
 0x3a8   : > { %v2384_v54 = vrot.slane %v2304_v16, 7  ;;  %v2241_v3 = vmul.f32 %v6174_v5, %v2145_v10  ;;  %6181 = vrcp.f32 %v2179_v40  ;;  %v8375_v0 = vsel %vm399_vm0, %v2668_v11, %v2669_v49 }
 0x3a9   : > { %v6176_v15 = vpop.eup %6175  ;;  %6183 = vpow2.f32 %v2013_v21  ;;  %v2781_v9 = vrot.slane %v8187_v45, 2  ;;  %v2783_v4 = vrot.slane %v2556_v51, 2  ;;  %3171 = vmatprep.mubr.f32.mxu1 %v8375_v0  ;;  %v5576_v36 = vadd.f32 %v8329_v43, %v8266_v61 }
 0x3aa   : > { %v8378_v60 = vpop.f32.mrb[60].mxu0  ;;  %v8382_v33 = vsel %vm2358_vm3, %v8315_v30, %v2384_v54  ;;  %v2479_v18 = vsel %vm2358_vm3, %v2384_v54, 0.0  ;;  %v2305_v5 = vsel %vm2273_vm9, %v8159_v55, %v2241_v3  ;;  %v2052_v10 = vadd.f32 1.0, %v6176_v15  ;;  %6422 = vmatmul.mubr.msk.f32.gmra.mrb[56].mxu1 %vm8032_vm10, %v8153_v27 }
 0x3ab   : > { %v1703_v59 = vpop.f32.mrb[61].mxu0  ;;  %2513 = vst [vmem:[#allocation2 + $0xe0] sm:$0xff] %v8382_v33  ;;  %2514 = vst [vmem:[#allocation2 + $0xe8] sm:$0x3] %v2479_v18  ;;  %v8390_v48 = vrot.slane %v2305_v5, 7  ;;  %6185 = vpow2.f32 %v2015_v38  ;;  %v8393_v57 = vsel %vm512_vm1, %v2780_v41, %v2781_v9  ;;  %v8399_v54 = vsel %vm512_vm1, %v2781_v9, %v2783_v4 }
 0x3ac   : > { %v6178_v3 = vpop.eup %6177  ;;  %v2084_v55 = vmul.f32 %v2052_v10, %v2052_v10  ;;  %5051 = vmatprep.mubr.f32.mxu0 %v8393_v57  ;;  %v2671_v40 = vrot.slane %v2556_v51, 1  ;;  %v5577_v38 = vadd.f32 %v8329_v43, %v8291_v12  ;;  %vm2274_vm11 = vcmp.gt.f32.partialorder %v8222_v17, 20.0  ;;  %v2559_v5 = vld [vmem:[#allocation2 + $0xb8] sm:$0x3] }
 0x3ad   : > { %v8408_v21 = vsel %vm2358_vm3, 0.0, %v8390_v48  ;;  %v2053_v27 = vadd.f32 1.0, %v6178_v3  ;;  %5052 = vmatmul.mubr.f32.gmra.mrb[72].mxu0 %v8399_v54  ;;  %v9703_v11 = vrot.slane %v8258_v44, 1  ;;  %v8417_v51 = vadd.f32 %v5576_v36, %v7878_v25 }
 0x3ae   : > { %v8413_v41 = vpop.f32.mrb[62].mxu0  ;;  %2515 = vst [vmem:[#allocation2 + $0xf0] sm:$0xff] %v8408_v21  ;;  %v2180_v61 = vadd.f32 1.0, %v2084_v55  ;;  %v8420_v12 = vsel %vm399_vm0, %v2669_v49, %v2671_v40  ;;  %v2673_v16 = vrot.slane %v8209_v8, 1  ;;  %v2146_v9 = vmul.f32 %v4779_v29, %v8222_v17 }
 0x3af   : > { %9840 = vst [vmem:[#allocation68_spill] sm:$0xff] %v8420_v12  ;;  %v1708_v15 = vpop.f32.mrb[63].mxu0  ;;  %vm2275_vm12 = vcmp.gt.f32.partialorder %v8228_v1, 20.0  ;;  %v2085_v4 = vmul.f32 %v2053_v27, %v2053_v27  ;;  %3176 = vmatprep.mubr.f32.mxu1 %v8420_v12  ;;  %v8427_v18 = vadd.f32 %v5577_v38, %v7897_v52  ;;  %v2147_v25 = vmul.f32 %v4780_v13, %v8228_v1 }
 0x3b0   : > { %6187 = vrcp.f32 %v2180_v61  ;;  %v1960_v49 = vmin.f32 %v8417_v51, 20.0  ;;  %3177 = vmatmul.mubr.f32.gmra.mrb[58].mxu1 %v8187_v45  ;;  %v8435_v29 = vsel %vm399_vm0, %v2673_v16, %v9703_v11  ;;  %v4781_v59 = vadd.f32 -1.0, %v2084_v55 }
 0x3b1   : > { %9841 = vst [vmem:[#allocation69_spill] sm:$0xff] %v8435_v29  ;;  %v6180_v10 = vpop.eup %6179  ;;  %v2181_v3 = vadd.f32 1.0, %v2085_v4  ;;  %v1961_v36 = vmin.f32 %v8427_v18, 20.0  ;;  %3181 = vmatprep.mubr.f32.mxu1 %v8435_v29  ;;  %v2785_v52 = vrot.slane %v8209_v8, 2  ;;  %v2786_v27 = vrot.slane %v8258_v44, 2  ;;  %v2942_v8 = vld [vmem:[#allocation9 + $0x170] sm:$0xff] }
 0x3b2   : > { %v6182_v13 = vpop.eup %6181  ;;  %v2242_v40 = vmul.f32 %v6180_v10, %v2146_v9  ;;  %v2017_v38 = vmul.f32 1.442695, %v1960_v49  ;;  %v2788_v45 = vrot.slane %v2559_v5, 2  ;;  %v4782_v12 = vadd.f32 -1.0, %v2085_v4  ;;  %v2943_v9 = vld [vmem:[#allocation9 + $0x178] sm:$0xff] }
 0x3b3   : > { %v6184_v61 = vpop.eup %6183  ;;  %v2243_v15 = vmul.f32 %v6182_v13, %v2147_v25  ;;  %6189 = vrcp.f32 %v2181_v3  ;;  %v2019_v16 = vmul.f32 1.442695, %v1961_v36  ;;  %v8445_v29 = vsel %vm512_vm1, %v2785_v52, %v2786_v27 }
 0x3b4   : > { %v2306_v55 = vsel %vm2274_vm11, %v8222_v17, %v2242_v40  ;;  %v2054_v11 = vadd.f32 1.0, %v6184_v61  ;;  %6191 = vpow2.f32 %v2017_v38  ;;  %6424 = vmatmul.mubr.msk.f32.gmra.mrb[60].mxu1 %vm8032_vm10, %v8198_v37  ;;  %5054 = vmatprep.mubr.f32.mxu0 %v8445_v29  ;;  %v8455_v17 = vsel %vm512_vm1, %v2786_v27, %v2788_v45 }
 0x3b5   : > { %v6186_v49 = vpop.eup %6185  ;;  %v2387_v25 = vrot.slane %v2306_v55, 7  ;;  %v2307_v4 = vsel %vm2275_vm12, %v8228_v1, %v2243_v15  ;;  %6193 = vpow2.f32 %v2019_v16  ;;  %5055 = vmatmul.mubr.f32.gmra.mrb[74].mxu0 %v8455_v17  ;;  %v5578_v37 = vadd.f32 %v8329_v43, %v8313_v63 }
 0x3b6   : > { %v8457_v10 = vrot.slane %v2307_v4, 7  ;;  %v2086_v3 = vmul.f32 %v2054_v11, %v2054_v11  ;;  %v2055_v36 = vadd.f32 1.0, %v6186_v49  ;;  %v2676_v13 = vrot.slane %v2559_v5, 1  ;;  %v2562_v4 = vld [vmem:[#allocation2 + $0xd0] sm:$0x3] }
 0x3b7   : > { %v8464_v52 = vsel %vm2358_vm3, %v8390_v48, %v2387_v25  ;;  %v2480_v1 = vsel %vm2358_vm3, %v2387_v25, 0.0  ;;  %v5381_v40 = vpack.c.bf16 %v2943_v9, %v2942_v8  ;;  %vm2276_vm13 = vcmp.gt.f32.partialorder %v8287_v56, 20.0 }
 0x3b8   : > { %2516 = vst [vmem:[#allocation2 + $0xf8] sm:$0xff] %v8464_v52  ;;  %2517 = vst [vmem:[#allocation2 + $0x100] sm:$0x3] %v2480_v1  ;;  %v8470_v11 = vsel %vm2358_vm3, 0.0, %v8457_v10  ;;  %v2182_v38 = vadd.f32 1.0, %v2086_v3  ;;  %v2087_v27 = vmul.f32 %v2055_v36, %v2055_v36  ;;  %v2148_v63 = vmul.f32 %v4781_v59, %v8287_v56 }
 0x3b9   : > { %2518 = vst [vmem:[#allocation2 + $0x108] sm:$0xff] %v8470_v11  ;;  %v8476_v45 = vadd.f32 %v5578_v37, %v7893_v2  ;;  %v9842_v5 = vrot.slane %v8258_v44, 1  ;;  %5382 = vmatpush1.bf16.msra.mxu1 %v5381_v40  ;;  %v5579_v15 = vadd.f32 %v8329_v43, %v8342_v20  ;;  %v2149_v55 = vmul.f32 %v4782_v12, %v8307_v22 }
 0x3ba   : > { %v6188_v16 = vpop.eup %6187  ;;  %vm2277_vm14 = vcmp.gt.f32.partialorder %v8307_v22, 20.0  ;;  %6195 = vrcp.f32 %v2182_v38  ;;  %v2183_v8 = vadd.f32 1.0, %v2087_v27  ;;  %5383 = vmatprep.subr.bf16.mxu1 %v9789_v47  ;;  %v4783_v59 = vadd.f32 -1.0, %v2086_v3 }
 0x3bb   : > { %v8481_v61 = vsel %vm399_vm0, %v9842_v5, %v2676_v13  ;;  %v2244_v2 = vmul.f32 %v6188_v16, %v2148_v63  ;;  %v1962_v9 = vmin.f32 %v8476_v45, 20.0  ;;  %v8492_v49 = vadd.f32 %v5579_v15, %v7912_v35 }
 0x3bc   : > { %3186 = vmatprep.mubr.f32.mxu1 %v8481_v61  ;;  %v4784_v20 = vadd.f32 -1.0, %v2087_v27  ;;  %6197 = vrcp.f32 %v2183_v8  ;;  %v2678_v12 = vrot.slane %v8274_v24, 1  ;;  %v2679_v25 = vrot.slane %v8295_v53, 1 }
 0x3bd   : > { %3187 = vmatmul.mubr.f32.gmra.mrb[62].mxu1 %v8258_v44  ;;  %v6190_v36 = vpop.eup %6189  ;;  %v2308_v37 = vsel %vm2276_vm13, %v8287_v56, %v2244_v2  ;;  %v2021_v3 = vmul.f32 1.442695, %v1962_v9  ;;  %v1963_v1 = vmin.f32 %v8492_v49, 20.0  ;;  %v2790_v44 = vrot.slane %v8274_v24, 2  ;;  %v2944_v2 = vld [vmem:[#allocation9 + $0x180] sm:$0xff]  ;;  %v2945_v9 = vld [vmem:[#allocation9 + $0x188] sm:$0xff] }
 0x3be   : > { %v6192_v13 = vpop.eup %6191  ;;  %v2390_v35 = vrot.slane %v2308_v37, 7  ;;  %v2245_v40 = vmul.f32 %v6190_v36, %v2149_v55  ;;  %v8502_v38 = vsel %vm399_vm0, %v2678_v12, %v2679_v25  ;;  %v2791_v27 = vrot.slane %v8295_v53, 2 }
 0x3bf   : > { %v6194_v63 = vpop.eup %6193  ;;  %v2056_v5 = vadd.f32 1.0, %v6192_v13  ;;  %6199 = vpow2.f32 %v2021_v3  ;;  %v2023_v15 = vmul.f32 1.442695, %v1963_v1  ;;  %3191 = vmatprep.mubr.f32.mxu1 %v8502_v38  ;;  %v2793_v56 = vrot.slane %v2562_v4, 2 }
 0x3c0   : > { %v8508_v16 = vsel %vm2358_vm3, %v8457_v10, %v2390_v35  ;;  %v2481_v24 = vsel %vm2358_vm3, %v2390_v35, 0.0  ;;  %v2309_v55 = vsel %vm2277_vm14, %v8307_v22, %v2245_v40  ;;  %v2057_v8 = vadd.f32 1.0, %v6194_v63 }
 0x3c1   : > { %6426 = vmatmul.mubr.msk.f32.gmra.mrb[64].mxu1 %vm8032_vm10, %v8261_v23  ;;  %2519 = vst [vmem:[#allocation2 + $0x110] sm:$0xff] %v8508_v16  ;;  %2520 = vst [vmem:[#allocation2 + $0x118] sm:$0x3] %v2481_v24  ;;  %v8518_v12 = vrot.slane %v2309_v55, 7  ;;  %v2088_v36 = vmul.f32 %v2056_v5, %v2056_v5  ;;  %6201 = vpow2.f32 %v2023_v15  ;;  %v8521_v37 = vsel %vm512_vm1, %v2790_v44, %v2791_v27 }
 0x3c2   : > { %v2089_v3 = vmul.f32 %v2057_v8, %v2057_v8  ;;  %5057 = vmatprep.mubr.f32.mxu0 %v8521_v37  ;;  %v8525_v22 = vsel %vm512_vm1, %v2791_v27, %v2793_v56  ;;  %v5580_v23 = vadd.f32 %v8329_v43, %v8366_v50  ;;  %v2681_v1 = vrot.slane %v2562_v4, 1 }
 0x3c3   : > { %v8531_v13 = vsel %vm2358_vm3, 0.0, %v8518_v12  ;;  %v2150_v35 = vmul.f32 %v4783_v59, %v8349_v42  ;;  %v2184_v40 = vadd.f32 1.0, %v2088_v36  ;;  %5058 = vmatmul.mubr.f32.gmra.mrb[76].mxu0 %v8525_v22  ;;  %v5384_v44 = vpack.c.bf16 %v2945_v9, %v2944_v2 }
 0x3c4   : > { %v6196_v63 = vpop.eup %6195  ;;  %2521 = vst [vmem:[#allocation2 + $0x120] sm:$0xff] %v8531_v13  ;;  %vm2278_vm15 = vcmp.gt.f32.partialorder %v8349_v42, 20.0  ;;  %v2185_v27 = vadd.f32 1.0, %v2089_v3  ;;  %v8538_v5 = vadd.f32 %v5580_v23, %v7907_v58  ;;  %v8541_v50 = vsel %vm399_vm0, %v2679_v25, %v2681_v1 }
 0x3c5   : > { %v2246_v4 = vmul.f32 %v6196_v63, %v2150_v35  ;;  %v2151_v15 = vmul.f32 %v4784_v20, %v8359_v26  ;;  %6203 = vrcp.f32 %v2184_v40  ;;  %3196 = vmatprep.mubr.f32.mxu1 %v8541_v50  ;;  %5385 = vmatpush1.bf16.msra.mxu1 %v5384_v44  ;;  %v5581_v59 = vadd.f32 %v8329_v43, %v8378_v60  ;;  %v2565_v35 = vld [vmem:[#allocation2 + $0xe8] sm:$0x3] }
 0x3c6   : > { %v6198_v56 = vpop.eup %6197  ;;  %vm2279_vm2 = vcmp.gt.f32.partialorder %v8359_v26, 20.0  ;;  %v4785_v24 = vadd.f32 -1.0, %v2088_v36  ;;  %6205 = vrcp.f32 %v2185_v27  ;;  %v1964_v58 = vmin.f32 %v8538_v5, 20.0  ;;  %3197 = vmatmul.mubr.f32.gmra.mrb[66].mxu1 %v8295_v53  ;;  %5386 = vmatprep.subr.bf16.mxu1 %v9789_v47  ;;  %v2946_v27 = vld [vmem:[#allocation9 + $0x190] sm:$0xff] }
 0x3c7   : > { %v2310_v20 = vsel %vm2278_vm15, %v8349_v42, %v2246_v4  ;;  %v2247_v25 = vmul.f32 %v6198_v56, %v2151_v15  ;;  %v4786_v55 = vadd.f32 -1.0, %v2089_v3  ;;  %v8555_v8 = vadd.f32 %v5581_v59, %v7932_v32 }
 0x3c8   : > { %v2393_v60 = vrot.slane %v2310_v20, 7  ;;  %v2025_v2 = vmul.f32 1.442695, %v1964_v58  ;;  %v2683_v9 = vrot.slane %v8327_v62, 1  ;;  %v2684_v36 = vrot.slane %v8382_v33, 1 }
 0x3c9   : > { %v6200_v23 = vpop.eup %6199  ;;  %v2311_v53 = vsel %vm2279_vm2, %v8359_v26, %v2247_v25  ;;  %vm2280_vm4 = vcmp.gt.f32.partialorder %v8417_v51, 20.0  ;;  %v1965_v1 = vmin.f32 %v8555_v8, 20.0  ;;  %v2795_v42 = vrot.slane %v8327_v62, 2  ;;  %v2947_v26 = vld [vmem:[#allocation9 + $0x198] sm:$0xff] }
 0x3ca   : > { %v2796_v3 = vrot.slane %v8382_v33, 2  ;;  %v8566_v32 = vsel %vm2358_vm3, %v8518_v12, %v2393_v60  ;;  %v2482_v40 = vsel %vm2358_vm3, %v2393_v60, 0.0  ;;  %v8569_v44 = vrot.slane %v2311_v53, 7 }
 0x3cb   : > { %v2058_v63 = vadd.f32 1.0, %v6200_v23  ;;  %v6202_v4 = vpop.eup %6201  ;;  %2522 = vst [vmem:[#allocation2 + $0x128] sm:$0xff] %v8566_v32  ;;  %2523 = vst [vmem:[#allocation2 + $0x130] sm:$0x3] %v2482_v40  ;;  %6207 = vpow2.f32 %v2025_v2  ;;  %v2027_v62 = vmul.f32 1.442695, %v1965_v1  ;;  %v8573_v15 = vsel %vm399_vm0, %v2683_v9, %v2684_v36 }
 0x3cc   : > { %9843 = vst [vmem:[#allocation70_spill] sm:$0xff] %v8573_v15  ;;  %v8576_v59 = vsel %vm512_vm1, %v2795_v42, %v2796_v3  ;;  %v8580_v56 = vsel %vm2358_vm3, 0.0, %v8569_v44  ;;  %v2059_v20 = vadd.f32 1.0, %v6202_v4  ;;  %3201 = vmatprep.mubr.f32.mxu1 %v8573_v15  ;;  %v2798_v25 = vrot.slane %v2565_v35, 2 }
 0x3cd   : > { %v2090_v58 = vmul.f32 %v2058_v63, %v2058_v63  ;;  %5060 = vmatprep.mubr.f32.mxu0 %v8576_v59  ;;  %2524 = vst [vmem:[#allocation2 + $0x138] sm:$0xff] %v8580_v56  ;;  %6209 = vpow2.f32 %v2027_v62  ;;  %6428 = vmatmul.mubr.msk.f32.gmra.mrb[68].mxu1 %vm8032_vm10, %v8315_v30  ;;  %v5582_v60 = vadd.f32 %v8329_v43, %v8413_v41  ;;  %v2686_v2 = vrot.slane %v2565_v35, 1 }
 0x3ce   : > { %v5387_v9 = vpack.c.bf16 %v2947_v26, %v2946_v27  ;;  %v2152_v23 = vmul.f32 %v4785_v24, %v8417_v51  ;;  %v2091_v1 = vmul.f32 %v2059_v20, %v2059_v20  ;;  %v8592_v42 = vsel %vm512_vm1, %v2796_v3, %v2798_v25  ;;  %v2568_v27 = vld [vmem:[#allocation2 + $0x100] sm:$0x3] }
 0x3cf   : > { %v2186_v53 = vadd.f32 1.0, %v2090_v58  ;;  %v6204_v40 = vpop.eup %6203  ;;  %v2153_v63 = vmul.f32 %v4786_v55, %v8427_v18  ;;  %5061 = vmatmul.mubr.f32.gmra.mrb[78].mxu0 %v8592_v42  ;;  %v8597_v4 = vadd.f32 %v5582_v60, %v7930_v39  ;;  %v8600_v30 = vsel %vm399_vm0, %v2684_v36, %v2686_v2  ;;  %v2948_v60 = vld [vmem:[#allocation9 + $0x1a0] sm:$0xff]  ;;  %v2949_v2 = vld [vmem:[#allocation9 + $0x1a8] sm:$0xff] }
 0x3d0   : > { %9844 = vst [vmem:[#allocation71_spill] sm:$0xff] %v8600_v30  ;;  %5388 = vmatpush1.bf16.msra.mxu1 %v5387_v9  ;;  %v2689_v43 = vrot.slane %v8464_v52, 1  ;;  %v6206_v41 = vpop.eup %6205  ;;  %v2248_v24 = vmul.f32 %v6204_v40, %v2152_v23  ;;  %vm2281_vm5 = vcmp.gt.f32.partialorder %v8427_v18, 20.0  ;;  %3206 = vmatprep.mubr.f32.mxu1 %v8600_v30  ;;  %v2688_v55 = vrot.slane %v8408_v21, 1 }
 0x3d1   : > { %6211 = vrcp.f32 %v2186_v53  ;;  %5389 = vmatprep.subr.bf16.mxu1 %v9789_v47  ;;  %v2249_v3 = vmul.f32 %v6206_v41, %v2153_v63  ;;  %v4787_v39 = vadd.f32 -1.0, %v2090_v58  ;;  %v2187_v35 = vadd.f32 1.0, %v2091_v1  ;;  %3207 = vmatmul.mubr.f32.gmra.mrb[70].mxu1 %v8382_v33  ;;  %v2571_v41 = vld [vmem:[#allocation2 + $0x118] sm:$0x3] }
 0x3d2   : > { %v1966_v36 = vmin.f32 %v8597_v4, 20.0  ;;  %v2312_v26 = vsel %vm2280_vm4, %v8417_v51, %v2248_v24  ;;  %v4788_v62 = vadd.f32 -1.0, %v2091_v1  ;;  %v8613_v20 = vsel %vm399_vm0, %v2688_v55, %v2689_v43 }
 0x3d3   : > { %9845 = vst [vmem:[#allocation72_spill] sm:$0xff] %v8613_v20  ;;  %v2800_v25 = vrot.slane %v8408_v21, 2  ;;  %v2396_v9 = vrot.slane %v2312_v26, 7  ;;  %v2313_v58 = vsel %vm2281_vm5, %v8427_v18, %v2249_v3  ;;  %6213 = vrcp.f32 %v2187_v35  ;;  %3211 = vmatprep.mubr.f32.mxu1 %v8613_v20 }
 0x3d4   : > { %v2029_v33 = vmul.f32 1.442695, %v1966_v36  ;;  %v8620_v23 = vrot.slane %v2313_v58, 7  ;;  %v2801_v51 = vrot.slane %v8464_v52, 2  ;;  %v2803_v53 = vrot.slane %v2568_v27, 2  ;;  %v2950_v36 = vld [vmem:[#allocation9 + $0x1b0] sm:$0xff] }
 0x3d5   : > { %v2691_v1 = vrot.slane %v2568_v27, 1  ;;  %v6208_v40 = vpop.eup %6207  ;;  %v8625_v21 = vsel %vm2358_vm3, %v8569_v44, %v2396_v9  ;;  %v2483_v63 = vsel %vm2358_vm3, %v2396_v9, 0.0  ;;  %6430 = vmatmul.mubr.msk.f32.gmra.mrb[72].mxu1 %vm8032_vm10, %v8390_v48  ;;  %v5390_v18 = vpack.c.bf16 %v2949_v2, %v2948_v60  ;;  %v2951_v27 = vld [vmem:[#allocation9 + $0x1b8] sm:$0xff] }
 0x3d6   : > { %6215 = vpow2.f32 %v2029_v33  ;;  %2525 = vst [vmem:[#allocation2 + $0x140] sm:$0xff] %v8625_v21  ;;  %2526 = vst [vmem:[#allocation2 + $0x148] sm:$0x3] %v2483_v63  ;;  %v8634_v24 = vsel %vm2358_vm3, 0.0, %v8620_v23  ;;  %v2060_v55 = vadd.f32 1.0, %v6208_v40  ;;  %v8637_v3 = vsel %vm512_vm1, %v2800_v25, %v2801_v51 }
 0x3d7   : > { %v8640_v35 = vsel %vm512_vm1, %v2801_v51, %v2803_v53  ;;  %v6210_v26 = vpop.eup %6209  ;;  %2527 = vst [vmem:[#allocation2 + $0x150] sm:$0xff] %v8634_v24  ;;  %5063 = vmatprep.mubr.f32.mxu0 %v8637_v3  ;;  %v8645_v48 = vsel %vm399_vm0, %v2689_v43, %v2691_v1  ;;  %5391 = vmatpush1.bf16.msra.mxu1 %v5390_v18  ;;  %v2693_v60 = vrot.slane %v8470_v11, 1  ;;  %v2694_v2 = vrot.slane %v8508_v16, 1 }
 0x3d8   : > { %9846 = vst [vmem:[#allocation73_spill] sm:$0xff] %v8645_v48  ;;  %v2805_v25 = vrot.slane %v8470_v11, 2  ;;  %v2092_v9 = vmul.f32 %v2060_v55, %v2060_v55  ;;  %v2061_v58 = vadd.f32 1.0, %v6210_v26  ;;  %5064 = vmatmul.mubr.f32.gmra.mrb[80].mxu0 %v8640_v35  ;;  %3216 = vmatprep.mubr.f32.mxu1 %v8645_v48  ;;  %v2806_v33 = vrot.slane %v8508_v16, 2 }
 0x3d9   : > { %v2808_v51 = vrot.slane %v2571_v41, 2  ;;  %v2154_v53 = vmul.f32 %v4787_v39, %v8476_v45  ;;  %3217 = vmatmul.mubr.f32.gmra.mrb[74].mxu1 %v8464_v52  ;;  %v8656_v43 = vsel %vm399_vm0, %v2693_v60, %v2694_v2  ;;  %5392 = vmatprep.subr.bf16.mxu1 %v9789_v47  ;;  %v2696_v1 = vrot.slane %v2571_v41, 1 }
 0x3da   : > { %9847 = vst [vmem:[#allocation74_spill] sm:$0xff] %v8656_v43  ;;  %v5393_v11 = vpack.c.bf16 %v2951_v27, %v2950_v36  ;;  %v2188_v63 = vadd.f32 1.0, %v2092_v9  ;;  %v2093_v18 = vmul.f32 %v2061_v58, %v2061_v58  ;;  %3221 = vmatprep.mubr.f32.mxu1 %v8656_v43  ;;  %v8661_v55 = vsel %vm512_vm1, %v2805_v25, %v2806_v33  ;;  %v2574_v27 = vld [vmem:[#allocation2 + $0x130] sm:$0x3]  ;;  %v2952_v25 = vld [vmem:[#allocation9 + $0x1c0] sm:$0xff]  ;;  %v2953_v58 = vld [vmem:[#allocation9 + $0x1c8] sm:$0xff] }
 0x3db   : > { %v6212_v40 = vpop.eup %6211  ;;  %vm2282_vm6 = vcmp.gt.f32.partialorder %v8476_v45, 20.0  ;;  %5066 = vmatprep.mubr.f32.mxu0 %v8661_v55  ;;  %v8666_v39 = vsel %vm512_vm1, %v2806_v33, %v2808_v51  ;;  %v8669_v60 = vsel %vm399_vm0, %v2694_v2, %v2696_v1  ;;  %v2155_v41 = vmul.f32 %v4788_v62, %v8492_v49 }
 0x3dc   : > { %v2250_v26 = vmul.f32 %v6212_v40, %v2154_v53  ;;  %9848 = vst [vmem:[#allocation75_spill] sm:$0xff] %v8669_v60  ;;  %5394 = vmatpush1.bf16.msra.mxu1 %v5393_v11  ;;  %vm2283_vm7 = vcmp.gt.f32.partialorder %v8492_v49, 20.0  ;;  %6217 = vrcp.f32 %v2188_v63  ;;  %v2189_v36 = vadd.f32 1.0, %v2093_v18  ;;  %5067 = vmatmul.mubr.f32.gmra.mrb[82].mxu0 %v8666_v39 }
 0x3dd   : > { %5395 = vmatprep.subr.bf16.mxu1 %v9789_v47  ;;  %v6214_v53 = vpop.eup %6213  ;;  %6432 = vmatmul.mubr.msk.f32.gmra.mrb[76].mxu1 %vm8032_vm10, %v8457_v10  ;;  %v2699_v62 = vrot.slane %v8566_v32, 1  ;;  %v2810_v2 = vrot.slane %v8531_v13, 2  ;;  %v2811_v51 = vrot.slane %v8566_v32, 2  ;;  %v2698_v40 = vrot.slane %v8531_v13, 1  ;;  %v2577_v13 = vld [vmem:[#allocation2 + $0x148] sm:$0x3] }
 0x3de   : > { %v2314_v33 = vsel %vm2282_vm6, %v8476_v45, %v2250_v26  ;;  %v2251_v11 = vmul.f32 %v6214_v53, %v2155_v41  ;;  %6219 = vrcp.f32 %v2189_v36  ;;  %3226 = vmatprep.mubr.f32.mxu1 %v8669_v60  ;;  %v2813_v26 = vrot.slane %v2574_v27, 2  ;;  %v2954_v53 = vld [vmem:[#allocation9 + $0x1d0] sm:$0xff] }
 0x3df   : > { %v2399_v1 = vrot.slane %v2314_v33, 7  ;;  %v8685_v45 = vsel %vm512_vm1, %v2810_v2, %v2811_v51  ;;  %v2701_v43 = vrot.slane %v2574_v27, 1  ;;  %v5396_v48 = vpack.c.bf16 %v2953_v58, %v2952_v25  ;;  %v2955_v33 = vld [vmem:[#allocation9 + $0x1d8] sm:$0xff] }
 0x3e0   : > { %v6216_v63 = vpop.eup %6215  ;;  %v2315_v41 = vsel %vm2283_vm7, %v8492_v49, %v2251_v11  ;;  %5069 = vmatprep.mubr.f32.mxu0 %v8685_v45  ;;  %v4789_v27 = vadd.f32 -1.0, %v2092_v9  ;;  %v8700_v25 = vsel %vm399_vm0, %v2698_v40, %v2699_v62  ;;  %v8703_v58 = vsel %vm512_vm1, %v2811_v51, %v2813_v26 }
 0x3e1   : > { %v8689_v20 = vsel %vm2358_vm3, %v8620_v23, %v2399_v1  ;;  %v2484_v30 = vsel %vm2358_vm3, %v2399_v1, 0.0  ;;  %v2062_v36 = vadd.f32 1.0, %v6216_v63  ;;  %v8696_v2 = vrot.slane %v2315_v41, 7  ;;  %3227 = vmatmul.mubr.f32.gmra.mrb[78].mxu1 %v8508_v16  ;;  %9849 = vst [vmem:[#allocation76_spill] sm:$0xff] %v8700_v25  ;;  %5070 = vmatmul.mubr.f32.gmra.mrb[84].mxu0 %v8703_v58  ;;  %v2956_v41 = vld [vmem:[#allocation9 + $0x1e0] sm:$0xff] }
 0x3e2   : > { %2529 = vst [vmem:[#allocation2 + $0x160] sm:$0x3] %v2484_v30  ;;  %v4790_v1 = vadd.f32 -1.0, %v2093_v18  ;;  %3231 = vmatprep.mubr.f32.mxu1 %v8700_v25  ;;  %v2815_v11 = vrot.slane %v8580_v56, 2  ;;  %v2816_v30 = vrot.slane %v8625_v21, 2  ;;  %v8714_v40 = vsel %vm399_vm0, %v2699_v62, %v2701_v43  ;;  %5397 = vmatpush1.bf16.msra.mxu1 %v5396_v48 }
 0x3e3   : > { %v2094_v49 = vmul.f32 %v2062_v36, %v2062_v36  ;;  %v8711_v9 = vsel %vm2358_vm3, 0.0, %v8696_v2  ;;  %9850 = vst [vmem:[#allocation77_spill] sm:$0xff] %v8714_v40  ;;  %v2818_v51 = vrot.slane %v2577_v13, 2  ;;  %v5399_v63 = vpack.c.bf16 %v2955_v33, %v2954_v53  ;;  %5398 = vmatprep.subr.bf16.mxu1 %v9789_v47  ;;  %v2957_v36 = vld [vmem:[#allocation9 + $0x1e8] sm:$0xff] }
 0x3e4   : > { %v8717_v26 = vsel %vm512_vm1, %v2815_v11, %v2816_v30  ;;  %v2156_v25 = vmul.f32 %v4789_v27, %v8538_v5  ;;  %v2704_v43 = vrot.slane %v8625_v21, 1  ;;  %v2157_v53 = vmul.f32 %v4790_v1, %v8555_v8 }
 0x3e5   : > { %v2190_v18 = vadd.f32 1.0, %v2094_v49  ;;  %6434 = vmatmul.mubr.msk.f32.gmra.mrb[80].mxu1 %vm8032_vm10, %v8518_v12  ;;  %5072 = vmatprep.mubr.f32.mxu0 %v8717_v26  ;;  %v8727_v48 = vsel %vm512_vm1, %v2816_v30, %v2818_v51  ;;  %v2703_v27 = vrot.slane %v8580_v56, 1  ;;  %v2706_v11 = vrot.slane %v2577_v13, 1  ;;  %v2958_v30 = vld [vmem:[#allocation9 + $0x1f0] sm:$0xff]  ;;  %v2959_v51 = vld [vmem:[#allocation9 + $0x1f8] sm:$0xff] }
 0x3e6   : > { %v6218_v62 = vpop.eup %6217  ;;  %3236 = vmatprep.mubr.f32.mxu1 %v8714_v40  ;;  %5073 = vmatmul.mubr.f32.gmra.mrb[86].mxu0 %v8727_v48  ;;  %v5402_v60 = vpack.c.bf16 %v2957_v36, %v2956_v41  ;;  %vm2284_vm8 = vcmp.gt.f32.partialorder %v8538_v5, 20.0  ;;  %vm2285_vm9 = vcmp.gt.f32.partialorder %v8555_v8, 20.0  ;;  %v4791_v13 = vadd.f32 -1.0, %v2094_v49 }
 0x3e7   : > { %6221 = vrcp.f32 %v2190_v18  ;;  %v2252_v33 = vmul.f32 %v6218_v62, %v2156_v25  ;;  %5400 = vmatpush1.bf16.msra.mxu1 %v5399_v63  ;;  %v8738_v40 = vsel %vm399_vm0, %v2703_v27, %v2704_v43  ;;  %v8744_v63 = vsel %vm399_vm0, %v2704_v43, %v2706_v11 }
 0x3e8   : > { %v6220_v15 = vpop.eup %6219  ;;  %5401 = vmatprep.subr.bf16.mxu1 %v9789_v47  ;;  %v5405_v41 = vpack.c.bf16 %v2959_v51, %v2958_v30  ;;  %v2158_v49 = vmul.f32 %v4791_v13, %v8597_v4  ;;  %v2708_v43 = vrot.slane %v8634_v24, 1  ;;  %vm2286_vm11 = vcmp.gt.f32.partialorder %v8597_v4, 20.0 }
 0x3e9   : > { %v2316_v1 = vsel %vm2284_vm8, %v8538_v5, %v2252_v33  ;;  %v2253_v18 = vmul.f32 %v6220_v15, %v2157_v53  ;;  %3237 = vmatmul.mubr.f32.gmra.mrb[82].mxu1 %v8566_v32  ;;  %v8753_v62 = vld [vmem:[#allocation2 + $0x160] sm:$0x3] }
 0x3ea   : > { %v2402_v25 = vrot.slane %v2316_v1, 7  ;;  %3241 = vmatprep.mubr.f32.mxu1 %v8738_v40  ;;  %v2711_v53 = vrot.slane %v8753_v62, 1 }
 0x3eb   : > { %v2317_v56 = vsel %vm2285_vm9, %v8555_v8, %v2253_v18  ;;  %5403 = vmatpush1.bf16.msra.mxu1 %v5402_v60  ;;  %v2709_v8 = vrot.slane %v8689_v20, 1 }
 0x3ec   : > { %v8748_v5 = vsel %vm2358_vm3, %v8696_v2, %v2402_v25  ;;  %v2485_v15 = vsel %vm2358_vm3, %v2402_v25, 0.0  ;;  %v8751_v36 = vrot.slane %v2317_v56, 7  ;;  %5404 = vmatprep.subr.bf16.mxu1 %v9789_v47 }
 0x3ed   : > { %2532 = vst [vmem:[#allocation2 + $0x178] sm:$0x3] %v2485_v15  ;;  %6436 = vmatmul.mubr.msk.f32.gmra.mrb[84].mxu1 %vm8032_vm10, %v8569_v44  ;;  %v8771_v11 = vsel %vm399_vm0, %v2708_v43, %v2709_v8  ;;  %v8777_v51 = vsel %vm399_vm0, %v2709_v8, %v2711_v53  ;;  %v2714_v25 = vrot.slane %v8748_v5, 1  ;;  %v2960_v53 = vld [vmem:[#allocation9 + $0x200] sm:$0xff] }
 0x3ee   : > { %v8762_v60 = vsel %vm2358_vm3, 0.0, %v8751_v36  ;;  %3246 = vmatprep.mubr.f32.mxu1 %v8744_v63  ;;  %9852 = vst [vmem:[#allocation79_spill] sm:$0xff] %v8771_v11  ;;  %9853 = vst [vmem:[#allocation80_spill] sm:$0xff] %v8777_v51 }
 0x3ef   : > { %9851 = vst [vmem:[#allocation78_spill] sm:$0xff] %v8762_v60  ;;  %5406 = vmatpush1.bf16.msra.mxu1 %v5405_v41  ;;  %v2964_v60 = vld [vmem:[#allocation9 + $0x220] sm:$0xff] }
 0x3f0   : > { %5407 = vmatprep.subr.bf16.mxu1 %v9789_v47 }
 0x3f1   : > { %v6222_v33 = vpop.eup %6221  ;;  %3247 = vmatmul.mubr.f32.gmra.mrb[86].mxu1 %v8625_v21 }
 0x3f2   : > { %v2254_v27 = vmul.f32 %v6222_v33, %v2158_v49  ;;  %3251 = vmatprep.mubr.f32.mxu1 %v8771_v11  ;;  %v8805_v49 = vld [vmem:[#allocation2] sm:$0xff]  ;;  %v2967_v11 = vld [vmem:[#allocation9 + $0x238] sm:$0xff] }
 0x3f3   : > { %9856 = vst [vmem:[#allocation83_spill] sm:$0xff] %v8805_v49  ;;  %v8808_v43 = vrot.slane %v8805_v49, 2  ;;  %v2961_v33 = vld [vmem:[#allocation9 + $0x208] sm:$0xff] }
 0x3f4   : > { %v2318_v30 = vsel %vm2286_vm11, %v8597_v4, %v2254_v27  ;;  %v8779_v18 = vld [vmem:[#allocation2 + $0x178] sm:$0x3]  ;;  %v2713_v4 = vrot.slane %v8711_v9, 1 }
 0x3f5   : > { %v2405_v1 = vrot.slane %v2318_v30, 7  ;;  %6438 = vmatmul.mubr.msk.f32.gmra.mrb[88].mxu1 %vm8032_vm10, %v8620_v23  ;;  %v2716_v41 = vrot.slane %v8779_v18, 1  ;;  %9857 = vst [vmem:[#allocation84_spill] sm:$0xff] %v8808_v43  ;;  %v6381_v27 = vld [vmem:[#allocation2 + $0x18] sm:$0xff]  ;;  %v5408_v30 = vpack.c.bf16 %v2961_v33, %v2960_v53  ;;  %v8815_v53 = vld [vmem:[#allocation2 + $0x30] sm:$0xff] }
 0x3f6   : > { %3256 = vmatprep.mubr.f32.mxu1 %v8777_v51  ;;  %v8795_v15 = vsel %vm399_vm0, %v2713_v4, %v2714_v25  ;;  %v2963_v4 = vld [vmem:[#allocation9 + $0x218] sm:$0xff]  ;;  %v2755_v33 = vrot.slane %v6381_v27, 2 }
 0x3f7   : > { %v8787_v56 = vsel %vm2358_vm3, %v8751_v36, %v2405_v1  ;;  %v2486_v13 = vsel %vm2358_vm3, %v2405_v1, 0.0  ;;  %9854 = vst [vmem:[#allocation81_spill] sm:$0xff] %v8795_v15  ;;  %v8799_v8 = vsel %vm399_vm0, %v2714_v25, %v2716_v41  ;;  %v6382_v1 = vld [vmem:[#allocation2 + $0x10] sm:$0x3]  ;;  %v6383_v41 = vld [vmem:[#allocation2 + $0x20] sm:$0xff] }
 0x3f8   : > { %2535 = vst [vmem:[#allocation2 + $0x190] sm:$0x3] %v2486_v13  ;;  %9855 = vst [vmem:[#allocation82_spill] sm:$0xff] %v8799_v8  ;;  %v2753_v25 = vrot.slane %v6382_v1, 2  ;;  %v2962_v13 = vld [vmem:[#allocation9 + $0x210] sm:$0xff]  ;;  %v2756_v51 = vrot.slane %v6383_v41, 2 }
 0x3f9   : > { %3257 = vmatmul.mubr.f32.gmra.mrb[90].mxu1 %v8689_v20 }
 0x3fa   : > { %3261 = vmatprep.mubr.f32.mxu1 %v8795_v15  ;;  %v2754_v49 = vsel %vm512_vm1, %v8808_v43, %v2753_v25  ;;  %v2965_v15 = vld [vmem:[#allocation9 + $0x228] sm:$0xff]  ;;  %v8820_v25 = vsel %vm512_vm1, %v2755_v33, %v2756_v51 }
 0x3fb   : > { %v5414_v1 = vpack.c.bf16 %v2965_v15, %v2964_v60  ;;  %v2968_v60 = vld [vmem:[#allocation9 + $0x240] sm:$0xff]  ;;  %v2969_v15 = vld [vmem:[#allocation9 + $0x248] sm:$0xff] }
 0x3fc   : > { %v5420_v33 = vpack.c.bf16 %v2969_v15, %v2968_v60  ;;  %v2974_v15 = vld [vmem:[#allocation9 + $0x270] sm:$0xff] }
 0x3fd   : > { %6440 = vmatmul.mubr.msk.f32.gmra.mrb[92].mxu1 %vm8032_vm10, %v8696_v2 }
 0x3fe   : > { %3266 = vmatprep.mubr.f32.mxu1 %v8799_v8  ;;  %v5411_v8 = vpack.c.bf16 %v2963_v4, %v2962_v13  ;;  %v6385_v13 = vld [vmem:[#allocation2 + $0x28] sm:$0x3] }
 0x3ff   : > { %v2758_v4 = vrot.slane %v6385_v13, 2  ;;  %v2970_v13 = vld [vmem:[#allocation9 + $0x250] sm:$0xff] }
 0x401   : > { %3267 = vmatmul.mubr.f32.gmra.mrb[94].mxu1 %v8748_v5 }
 0x402   : > { %3336 = vmatprep.mubr.f32.mxu1 %v6381_v27  ;;  %v8831_v27 = vld [vmem:[#allocation2 + $0x48] sm:$0xff] }
 0x403   : > { %9858 = vst [vmem:[#allocation85_spill] sm:$0xff] %v8831_v27 }
 0x405   : > { %3337 = vmatmul.mubr.f32.vlgmr.msra.gmra.mrb[32].mxu1 %v8808_v43  ;;  %v2975_v43 = vld [vmem:[#allocation9 + $0x278] sm:$0xff] }
 0x406   : > { %3341 = vmatprep.mubr.f32.mxu1 %v6383_v41  ;;  %5409 = vmatpush1.bf16.msra.mxu1 %v5408_v30  ;;  %v2966_v30 = vld [vmem:[#allocation9 + $0x230] sm:$0xff]  ;;  %v8823_v41 = vld [vmem:[#allocation2 + $0x38] sm:$0xff] }
 0x407   : > { %5410 = vmatprep.subr.bf16.mxu1 %v9789_v47 }
 0x409   : > { %3342 = vmatmul.mubr.f32.gmra.mrb[34].mxu1 %v2754_v49  ;;  %v5417_v49 = vpack.c.bf16 %v2967_v11, %v2966_v30  ;;  %v8836_v11 = vld [vmem:[#allocation2 + $0x50] sm:$0xff] }
 0x40a   : > { %3346 = vmatprep.mubr.f32.mxu1 %v8815_v53  ;;  %5412 = vmatpush1.bf16.msra.mxu1 %v5411_v8  ;;  %v8828_v8 = vsel %vm512_vm1, %v2756_v51, %v2758_v4  ;;  %9859 = vst [vmem:[#allocation86_spill] sm:$0xff] %v8836_v11  ;;  %v2972_v30 = vld [vmem:[#allocation9 + $0x260] sm:$0xff]  ;;  %v2973_v4 = vld [vmem:[#allocation9 + $0x268] sm:$0xff] }
 0x40b   : > { %5413 = vmatprep.subr.bf16.mxu1 %v9789_v47  ;;  %v5426_v60 = vpack.c.bf16 %v2973_v4, %v2972_v30  ;;  %v2978_v4 = vld [vmem:[#allocation9 + $0x290] sm:$0xff] }
 0x40d   : > { %3347 = vmatmul.mubr.f32.gmra.mrb[36].mxu1 %v8820_v25 }
 0x40e   : > { %3351 = vmatprep.mubr.f32.mxu1 %v8823_v41  ;;  %5415 = vmatpush1.bf16.msra.mxu1 %v5414_v1  ;;  %v2971_v1 = vld [vmem:[#allocation9 + $0x258] sm:$0xff] }
 0x40f   : > { %5416 = vmatprep.subr.bf16.mxu1 %v9789_v47  ;;  %v5423_v51 = vpack.c.bf16 %v2971_v1, %v2970_v13  ;;  %v5429_v13 = vpack.c.bf16 %v2975_v43, %v2974_v15  ;;  %v2976_v1 = vld [vmem:[#allocation9 + $0x280] sm:$0xff] }
 0x410   : > { %v2980_v15 = vld [vmem:[#allocation9 + $0x2a0] sm:$0xff] }
 0x411   : > { %3352 = vmatmul.mubr.f32.gmra.mrb[38].mxu1 %v8828_v8 }
 0x412   : > { %3356 = vmatprep.mubr.f32.mxu1 %v8831_v27  ;;  %5418 = vmatpush1.bf16.msra.mxu1 %v5417_v49  ;;  %v8841_v49 = vld [vmem:[#allocation2 + $0x60] sm:$0xff] }
 0x413   : > { %5419 = vmatprep.subr.bf16.mxu1 %v9789_v47  ;;  %9860 = vst [vmem:[#allocation87_spill] sm:$0xff] %v8841_v49  ;;  %v9866_v27 = vld [vmem:[#allocation66_spill] sm:$0xff] }
 0x415   : > { %3357 = vmatmul.mubr.f32.gmra.mrb[40].mxu1 %v8126_v14 }
 0x416   : > { %3361 = vmatprep.mubr.f32.mxu1 %v8836_v11  ;;  %5421 = vmatpush1.bf16.msra.mxu1 %v5420_v33  ;;  %v8846_v33 = vld [vmem:[#allocation2 + $0x68] sm:$0xff]  ;;  %v2977_v11 = vld [vmem:[#allocation9 + $0x288] sm:$0xff] }
 0x417   : > { %5422 = vmatprep.subr.bf16.mxu1 %v9789_v47  ;;  %9861 = vst [vmem:[#allocation88_spill] sm:$0xff] %v8846_v33  ;;  %v5432_v30 = vpack.c.bf16 %v2977_v11, %v2976_v1  ;;  %v2982_v1 = vld [vmem:[#allocation9 + $0x2b0] sm:$0xff] }
 0x419   : > { %3362 = vmatmul.mubr.f32.gmra.mrb[42].mxu1 %v8129_v6 }
 0x41a   : > { %3366 = vmatprep.mubr.f32.mxu1 %v8841_v49  ;;  %5424 = vmatpush1.bf16.msra.mxu1 %v5423_v51  ;;  %v8851_v51 = vld [vmem:[#allocation2 + $0x78] sm:$0xff]  ;;  %v2979_v49 = vld [vmem:[#allocation9 + $0x298] sm:$0xff] }
 0x41b   : > { %5425 = vmatprep.subr.bf16.mxu1 %v9789_v47  ;;  %9862 = vst [vmem:[#allocation89_spill] sm:$0xff] %v8851_v51  ;;  %v5435_v43 = vpack.c.bf16 %v2979_v49, %v2978_v4  ;;  %v2984_v4 = vld [vmem:[#allocation9 + $0x2c0] sm:$0xff] }
 0x41d   : > { %3367 = vmatmul.mubr.f32.gmra.mrb[44].mxu1 %v8214_v28 }
 0x41e   : > { %3371 = vmatprep.mubr.f32.mxu1 %v8846_v33  ;;  %5427 = vmatpush1.bf16.msra.mxu1 %v5426_v60  ;;  %v8856_v60 = vld [vmem:[#allocation2 + $0x80] sm:$0xff] }
 0x41f   : > { %5428 = vmatprep.subr.bf16.mxu1 %v9789_v47  ;;  %9863 = vst [vmem:[#allocation90_spill] sm:$0xff] %v8856_v60  ;;  %v2981_v33 = vld [vmem:[#allocation9 + $0x2a8] sm:$0xff] }
 0x420   : > { %v5438_v11 = vpack.c.bf16 %v2981_v33, %v2980_v15  ;;  %v2986_v15 = vld [vmem:[#allocation9 + $0x2d0] sm:$0xff] }
 0x421   : > { %3372 = vmatmul.mubr.f32.gmra.mrb[46].mxu1 %v8219_v7 }
 0x422   : > { %3376 = vmatprep.mubr.f32.mxu1 %v8851_v51  ;;  %5430 = vmatpush1.bf16.msra.mxu1 %v5429_v13  ;;  %v8861_v13 = vld [vmem:[#allocation2 + $0x90] sm:$0xff] }
 0x423   : > { %5431 = vmatprep.subr.bf16.mxu1 %v9789_v47  ;;  %9864 = vst [vmem:[#allocation91_spill] sm:$0xff] %v8861_v13  ;;  %v2983_v51 = vld [vmem:[#allocation9 + $0x2b8] sm:$0xff] }
 0x424   : > { %v5441_v49 = vpack.c.bf16 %v2983_v51, %v2982_v1  ;;  %v2988_v1 = vld [vmem:[#allocation9 + $0x2e0] sm:$0xff] }
 0x425   : > { %3377 = vmatmul.mubr.f32.gmra.mrb[48].mxu1 %v8270_v46 }
 0x426   : > { %3381 = vmatprep.mubr.f32.mxu1 %v8856_v60  ;;  %5433 = vmatpush1.bf16.msra.mxu1 %v5432_v30  ;;  %v8866_v30 = vld [vmem:[#allocation2 + $0x98] sm:$0xff] }
 0x427   : > { %5434 = vmatprep.subr.bf16.mxu1 %v9789_v47  ;;  %9865 = vst [vmem:[#allocation92_spill] sm:$0xff] %v8866_v30  ;;  %v2985_v60 = vld [vmem:[#allocation9 + $0x2c8] sm:$0xff] }
 0x428   : > { %v5444_v33 = vpack.c.bf16 %v2985_v60, %v2984_v4  ;;  %v2990_v4 = vld [vmem:[#allocation9 + $0x2f0] sm:$0xff] }
 0x429   : > { %3382 = vmatmul.mubr.f32.gmra.mrb[50].mxu1 %v8281_v34 }
 0x42a   : > { %3386 = vmatprep.mubr.f32.mxu1 %v8861_v13  ;;  %5436 = vmatpush1.bf16.msra.mxu1 %v5435_v43  ;;  %v8871_v43 = vld [vmem:[#allocation2 + $0xa8] sm:$0xff] }
 0x42b   : > { %5437 = vmatprep.subr.bf16.mxu1 %v9789_v47  ;;  %9867 = vst [vmem:[#allocation66_spill] sm:$0xff] %v8871_v43  ;;  %v2987_v13 = vld [vmem:[#allocation9 + $0x2d8] sm:$0xff] }
 0x42c   : > { %v5447_v51 = vpack.c.bf16 %v2987_v13, %v2986_v15  ;;  %v8891_v15 = vld [vmem:[#allocation2 + $0xd8] sm:$0xff] }
 0x42d   : > { %3387 = vmatmul.mubr.f32.gmra.mrb[52].mxu1 %v8335_v19 }
 0x42e   : > { %3391 = vmatprep.mubr.f32.mxu1 %v8866_v30  ;;  %5439 = vmatpush1.bf16.msra.mxu1 %v5438_v11  ;;  %v8876_v11 = vld [vmem:[#allocation2 + $0xb0] sm:$0xff]  ;;  %v2989_v30 = vld [vmem:[#allocation9 + $0x2e8] sm:$0xff] }
 0x42f   : > { %5440 = vmatprep.subr.bf16.mxu1 %v9789_v47  ;;  %v5450_v60 = vpack.c.bf16 %v2989_v30, %v2988_v1  ;;  %v8896_v30 = vld [vmem:[#allocation2 + $0xe0] sm:$0xff] }
 0x431   : > { %3392 = vmatmul.mubr.f32.gmra.mrb[54].mxu1 %v9866_v27 }
 0x432   : > { %3396 = vmatprep.mubr.f32.mxu1 %v8871_v43  ;;  %5442 = vmatpush1.bf16.msra.mxu1 %v5441_v49  ;;  %v8881_v49 = vld [vmem:[#allocation2 + $0xc0] sm:$0xff]  ;;  %v2991_v43 = vld [vmem:[#allocation9 + $0x2f8] sm:$0xff] }
 0x433   : > { %5443 = vmatprep.subr.bf16.mxu1 %v9789_v47  ;;  %v5453_v13 = vpack.c.bf16 %v2991_v43, %v2990_v4  ;;  %v8900_v43 = vld [vmem:[#allocation2 + $0xf0] sm:$0xff] }
 0x435   : > { %3397 = vmatmul.mubr.f32.gmra.mrb[56].mxu1 %v8393_v57 }
 0x436   : > { %3401 = vmatprep.mubr.f32.mxu1 %v8876_v11  ;;  %5445 = vmatpush1.bf16.msra.mxu1 %v5444_v33  ;;  %v8886_v33 = vld [vmem:[#allocation2 + $0xc8] sm:$0xff] }
 0x437   : > { %5446 = vmatprep.subr.bf16.mxu1 %v9789_v47 }
 0x439   : > { %3402 = vmatmul.mubr.f32.gmra.mrb[58].mxu1 %v8399_v54 }
 0x43a   : > { %3406 = vmatprep.mubr.f32.mxu1 %v8881_v49  ;;  %5448 = vmatpush1.bf16.msra.mxu1 %v5447_v51 }
 0x43b   : > { %5449 = vmatprep.subr.bf16.mxu1 %v9789_v47 }
 0x43d   : > { %3407 = vmatmul.mubr.f32.gmra.mrb[60].mxu1 %v8445_v29 }
 0x43e   : > { %3411 = vmatprep.mubr.f32.mxu1 %v8886_v33  ;;  %5451 = vmatpush1.bf16.msra.mxu1 %v5450_v60 }
 0x43f   : > { %5452 = vmatprep.subr.bf16.mxu1 %v9789_v47 }
 0x441   : > { %3412 = vmatmul.mubr.f32.gmra.mrb[62].mxu1 %v8455_v17 }
 0x442   : > { %3416 = vmatprep.mubr.f32.mxu1 %v8891_v15  ;;  %5454 = vmatpush1.bf16.msra.mxu1 %v5453_v13 }
 0x443   : > { %5455 = vmatprep.subr.bf16.mxu1 %v9789_v47 }
 0x445   : > { %3417 = vmatmul.mubr.f32.gmra.mrb[64].mxu1 %v8521_v37 }
 0x446   : > { %3421 = vmatprep.mubr.f32.mxu1 %v8896_v30 }
 0x449   : > { %3422 = vmatmul.mubr.f32.gmra.mrb[66].mxu1 %v8525_v22 }
 0x44a   : > { %3426 = vmatprep.mubr.f32.mxu1 %v8900_v43 }
 0x44d   : > { %3427 = vmatmul.mubr.f32.gmra.mrb[68].mxu1 %v8576_v59 }
 0x44e   : > { %3431 = vmatprep.mubr.f32.mxu1 %v8464_v52 }
 0x451   : > { %3432 = vmatmul.mubr.f32.gmra.mrb[70].mxu1 %v8592_v42 }
 0x452   : > { %6442 = vmatprep.mubr.msk.f32.mxu1 %vm8032_vm10, %v8457_v10 }
 0x453   : > { %v8909_v51 = vpop.f32.mrb[64].mxu0 }
 0x454   : > { %9868 = vst [vmem:[#allocation93_spill] sm:$0xff] %v8909_v51  ;;  %v8912_v1 = vpop.f32.mrb[65].mxu0 }
 0x455   : > { %3437 = vmatmul.mubr.f32.gmra.mrb[72].mxu1 %v8637_v3 }
 0x456   : > { %3441 = vmatprep.mubr.f32.mxu1 %v8508_v16 }
 0x459   : > { %3442 = vmatmul.mubr.f32.gmra.mrb[74].mxu1 %v8640_v35 }
 0x45a   : > { %6444 = vmatprep.mubr.msk.f32.mxu1 %vm8032_vm10, %v8518_v12 }
 0x45d   : > { %3447 = vmatmul.mubr.f32.gmra.mrb[76].mxu1 %v8661_v55 }
 0x45e   : > { %3451 = vmatprep.mubr.f32.mxu1 %v8566_v32  ;;  %v2821_v32 = vrot.slane %v8689_v20, 2 }
 0x461   : > { %3452 = vmatmul.mubr.f32.gmra.mrb[78].mxu1 %v8666_v39 }
 0x462   : > { %6446 = vmatprep.mubr.msk.f32.mxu1 %vm8032_vm10, %v8569_v44  ;;  %v2820_v44 = vrot.slane %v8634_v24, 2  ;;  %v2825_v24 = vrot.slane %v8711_v9, 2 }
 0x464   : > { %v8925_v10 = vpop.f32.mrb[66].mxu0 }
 0x465   : > { %9869 = vst [vmem:[#allocation94_spill] sm:$0xff] %v8925_v10  ;;  %v8927_v52 = vpop.f32.mrb[67].mxu0  ;;  %3457 = vmatmul.mubr.f32.gmra.mrb[80].mxu1 %v8685_v45  ;;  %v9876_v10 = vld [vmem:[#allocation57_spill] sm:$0xff] }
 0x466   : > { %9870 = vst [vmem:[#allocation95_spill] sm:$0xff] %v8927_v52  ;;  %3461 = vmatprep.mubr.f32.mxu1 %v8625_v21  ;;  %v2823_v21 = vrot.slane %v8753_v62, 2 }
 0x468   : > { %v8958_v13 = vsel %vm512_vm1, %v2821_v32, %v2823_v21  ;;  %v2993_v21 = vld [vmem:[#allocation9 + $0x308] sm:$0xff] }
 0x469   : > { %3462 = vmatmul.mubr.f32.gmra.mrb[82].mxu1 %v8703_v58 }
 0x46a   : > { %6448 = vmatprep.mubr.msk.f32.mxu1 %vm8032_vm10, %v8620_v23  ;;  %v8948_v23 = vsel %vm512_vm1, %v2820_v44, %v2821_v32  ;;  %v2828_v44 = vrot.slane %v8779_v18, 2  ;;  %v2992_v32 = vld [vmem:[#allocation9 + $0x300] sm:$0xff]  ;;  %v2995_v18 = vld [vmem:[#allocation9 + $0x318] sm:$0xff] }
 0x46b   : > { %v5456_v9 = vpack.c.bf16 %v2993_v21, %v2992_v32  ;;  %v9879_v21 = vld [vmem:[#allocation59_spill] sm:$0xff] }
 0x46c   : > { %v8935_v16 = vpop.f32.mrb[68].mxu0 }
 0x46d   : > { %9871 = vst [vmem:[#allocation96_spill] sm:$0xff] %v8935_v16  ;;  %v8937_v12 = vpop.f32.mrb[69].mxu0  ;;  %3467 = vmatmul.mubr.f32.gmra.mrb[84].mxu1 %v8717_v26  ;;  %v2826_v16 = vrot.slane %v8748_v5, 2 }
 0x46e   : > { %9872 = vst [vmem:[#allocation97_spill] sm:$0xff] %v8937_v12  ;;  %3471 = vmatprep.mubr.f32.mxu1 %v8689_v20 }
 0x46f   : > { %v8967_v62 = vsel %vm512_vm1, %v2825_v24, %v2826_v16  ;;  %v2994_v24 = vld [vmem:[#allocation9 + $0x310] sm:$0xff] }
 0x470   : > { %v5459_v52 = vpack.c.bf16 %v2995_v18, %v2994_v24  ;;  %v3001_v24 = vld [vmem:[#allocation9 + $0x348] sm:$0xff]  ;;  %v9880_v18 = vld [vmem:[#allocation60_spill] sm:$0xff] }
 0x471   : > { %3472 = vmatmul.mubr.f32.gmra.mrb[86].mxu1 %v8727_v48 }
 0x472   : > { %6450 = vmatprep.mubr.msk.f32.mxu1 %vm8032_vm10, %v8696_v2 }
 0x475   : > { %3477 = vmatmul.mubr.f32.gmra.mrb[88].mxu1 %v8948_v23 }
 0x476   : > { %3481 = vmatprep.mubr.f32.mxu1 %v8748_v5  ;;  %v8953_v60 = vpop.f32.mrb[70].mxu0 }
 0x477   : > { %9873 = vst [vmem:[#allocation98_spill] sm:$0xff] %v8953_v60  ;;  %v8955_v4 = vpop.f32.mrb[71].mxu0  ;;  %v8973_v60 = vsel %vm512_vm1, %v2826_v16, %v2828_v44  ;;  %v2996_v16 = vld [vmem:[#allocation9 + $0x320] sm:$0xff]  ;;  %v2997_v44 = vld [vmem:[#allocation9 + $0x328] sm:$0xff] }
 0x478   : > { %9874 = vst [vmem:[#allocation99_spill] sm:$0xff] %v8955_v4  ;;  %v5462_v32 = vpack.c.bf16 %v2997_v44, %v2996_v16  ;;  %v3003_v16 = vld [vmem:[#allocation9 + $0x358] sm:$0xff]  ;;  %v9881_v44 = vld [vmem:[#allocation61_spill] sm:$0xff] }
 0x479   : > { %3482 = vmatmul.mubr.f32.gmra.mrb[90].mxu1 %v8958_v13 }
 0x47a   : > { %6452 = vmatprep.mubr.msk.f32.mxu1 %vm8032_vm10, %v8751_v36 }
 0x47d   : > { %3487 = vmatmul.mubr.f32.gmra.mrb[92].mxu1 %v8967_v62 }
 0x47e   : > { %3491 = vmatprep.mubr.f32.mxu1 %v8787_v56 }
 0x480   : > { %v8975_v4 = vpop.f32.mrb[72].mxu0 }
 0x481   : > { %9875 = vst [vmem:[#allocation100_spill] sm:$0xff] %v8975_v4  ;;  %3492 = vmatmul.mubr.f32.gmra.mrb[94].mxu1 %v8973_v60  ;;  %v8978_v12 = vpop.f32.mrb[73].mxu0  ;;  %v9877_v4 = vld [vmem:[#allocation58_spill] sm:$0xff] }
 0x482   : > { %3561 = vmatprep.mubr.f32.mxu1 %v8820_v25 }
 0x485   : > { %3562 = vmatmul.mubr.f32.vlgmr.msra.gmra.mrb[32].mxu1 %v9876_v10  ;;  %v2998_v10 = vld [vmem:[#allocation9 + $0x330] sm:$0xff] }
 0x486   : > { %3566 = vmatprep.mubr.f32.mxu1 %v8828_v8  ;;  %5457 = vmatpush1.bf16.msra.mxu1 %v5456_v9  ;;  %v2999_v8 = vld [vmem:[#allocation9 + $0x338] sm:$0xff] }
 0x487   : > { %5458 = vmatprep.subr.bf16.mxu1 %v9789_v47  ;;  %v5465_v9 = vpack.c.bf16 %v2999_v8, %v2998_v10  ;;  %v3004_v8 = vld [vmem:[#allocation9 + $0x360] sm:$0xff] }
 0x488   : > { %v8985_v51 = vpop.f32.mrb[74].mxu0 }
 0x489   : > { %3567 = vmatmul.mubr.f32.gmra.mrb[34].mxu1 %v9877_v4  ;;  %9878 = vst [vmem:[#allocation57_spill] sm:$0xff] %v8985_v51  ;;  %v8988_v25 = vpop.f32.mrb[75].mxu0  ;;  %v3000_v4 = vld [vmem:[#allocation9 + $0x340] sm:$0xff]  ;;  %v9885_v51 = vld [vmem:[#allocation63_spill] sm:$0xff] }
 0x48a   : > { %3571 = vmatprep.mubr.f32.mxu1 %v8126_v14  ;;  %5460 = vmatpush1.bf16.msra.mxu1 %v5459_v52  ;;  %v5468_v14 = vpack.c.bf16 %v3001_v24, %v3000_v4  ;;  %v3002_v52 = vld [vmem:[#allocation9 + $0x350] sm:$0xff] }
 0x48b   : > { %5461 = vmatprep.subr.bf16.mxu1 %v9789_v47  ;;  %v3006_v24 = vld [vmem:[#allocation9 + $0x370] sm:$0xff] }
 0x48d   : > { %3572 = vmatmul.mubr.f32.gmra.mrb[36].mxu1 %v9879_v21 }
 0x48e   : > { %3576 = vmatprep.mubr.f32.mxu1 %v8129_v6  ;;  %5463 = vmatpush1.bf16.msra.mxu1 %v5462_v32  ;;  %v5471_v32 = vpack.c.bf16 %v3003_v16, %v3002_v52  ;;  %v3008_v52 = vld [vmem:[#allocation9 + $0x380] sm:$0xff]  ;;  %v3009_v16 = vld [vmem:[#allocation9 + $0x388] sm:$0xff] }
 0x48f   : > { %5464 = vmatprep.subr.bf16.mxu1 %v9789_v47 }
 0x491   : > { %3577 = vmatmul.mubr.f32.gmra.mrb[38].mxu1 %v9880_v18 }
 0x492   : > { %3581 = vmatprep.mubr.f32.mxu1 %v8214_v28  ;;  %5466 = vmatpush1.bf16.msra.mxu1 %v5465_v9  ;;  %v3005_v28 = vld [vmem:[#allocation9 + $0x368] sm:$0xff] }
 0x493   : > { %5467 = vmatprep.subr.bf16.mxu1 %v9789_v47  ;;  %v9884_v9 = vld [vmem:[#allocation62_spill] sm:$0xff]  ;;  %v5474_v4 = vpack.c.bf16 %v3005_v28, %v3004_v8  ;;  %v9889_v28 = vld [vmem:[#allocation65_spill] sm:$0xff] }
 0x494   : > { %v3010_v8 = vld [vmem:[#allocation9 + $0x390] sm:$0xff] }
 0x495   : > { %3582 = vmatmul.mubr.f32.gmra.mrb[40].mxu1 %v9881_v44 }
 0x496   : > { %3586 = vmatprep.mubr.f32.mxu1 %v8219_v7  ;;  %v8999_v6 = vpop.f32.mrb[76].mxu0  ;;  %5469 = vmatpush1.bf16.msra.mxu1 %v5468_v14  ;;  %v3007_v7 = vld [vmem:[#allocation9 + $0x378] sm:$0xff] }
 0x497   : > { %9882 = vst [vmem:[#allocation58_spill] sm:$0xff] %v8999_v6  ;;  %v9001_v10 = vpop.f32.mrb[77].mxu0  ;;  %5470 = vmatprep.subr.bf16.mxu1 %v9789_v47  ;;  %v5477_v14 = vpack.c.bf16 %v3007_v7, %v3006_v24  ;;  %v9886_v6 = vld [vmem:[#allocation64_spill] sm:$0xff]  ;;  %v3013_v7 = vld [vmem:[#allocation9 + $0x3a8] sm:$0xff] }
 0x498   : > { %9883 = vst [vmem:[#allocation59_spill] sm:$0xff] %v9001_v10  ;;  %v3012_v24 = vld [vmem:[#allocation9 + $0x3a0] sm:$0xff] }
 0x499   : > { %3587 = vmatmul.mubr.f32.gmra.mrb[42].mxu1 %v9884_v9 }
 0x49a   : > { %3591 = vmatprep.mubr.f32.mxu1 %v8270_v46  ;;  %5472 = vmatpush1.bf16.msra.mxu1 %v5471_v32  ;;  %v5480_v46 = vpack.c.bf16 %v3009_v16, %v3008_v52  ;;  %v3014_v52 = vld [vmem:[#allocation9 + $0x3b0] sm:$0xff]  ;;  %v3015_v16 = vld [vmem:[#allocation9 + $0x3b8] sm:$0xff] }
 0x49b   : > { %5473 = vmatprep.subr.bf16.mxu1 %v9789_v47 }
 0x49d   : > { %3592 = vmatmul.mubr.f32.gmra.mrb[44].mxu1 %v9885_v51 }
 0x49e   : > { %3596 = vmatprep.mubr.f32.mxu1 %v8281_v34  ;;  %5475 = vmatpush1.bf16.msra.mxu1 %v5474_v4  ;;  %v3011_v34 = vld [vmem:[#allocation9 + $0x398] sm:$0xff] }
 0x49f   : > { %5476 = vmatprep.subr.bf16.mxu1 %v9789_v47  ;;  %v5483_v4 = vpack.c.bf16 %v3011_v34, %v3010_v8  ;;  %v3017_v8 = vld [vmem:[#allocation9 + $0x3c8] sm:$0xff] }
 0x4a1   : > { %3597 = vmatmul.mubr.f32.gmra.mrb[46].mxu1 %v9886_v6 }
 0x4a2   : > { %v9011_v10 = vpop.f32.mrb[78].mxu0  ;;  %3601 = vmatprep.mubr.f32.mxu1 %v8335_v19  ;;  %5478 = vmatpush1.bf16.msra.mxu1 %v5477_v14  ;;  %v5486_v19 = vpack.c.bf16 %v3013_v7, %v3012_v24  ;;  %v3018_v7 = vld [vmem:[#allocation9 + $0x3d0] sm:$0xff] }
 0x4a3   : > { %9887 = vst [vmem:[#allocation60_spill] sm:$0xff] %v9011_v10  ;;  %v9014_v32 = vpop.f32.mrb[79].mxu0  ;;  %5479 = vmatprep.subr.bf16.mxu1 %v9789_v47  ;;  %v9890_v10 = vld [vmem:[#allocation67_spill] sm:$0xff] }
 0x4a4   : > { %9888 = vst [vmem:[#allocation61_spill] sm:$0xff] %v9014_v32 }
 0x4a5   : > { %3602 = vmatmul.mubr.f32.gmra.mrb[48].mxu1 %v9889_v28 }
 0x4a6   : > { %3606 = vmatprep.mubr.f32.mxu1 %v9866_v27  ;;  %5481 = vmatpush1.bf16.msra.mxu1 %v5480_v46  ;;  %v5489_v27 = vpack.c.bf16 %v3015_v16, %v3014_v52 }
 0x4a7   : > { %5482 = vmatprep.subr.bf16.mxu1 %v9789_v47 }
 0x4a9   : > { %3607 = vmatmul.mubr.f32.gmra.mrb[50].mxu1 %v9890_v10 }
 0x4aa   : > { %3611 = vmatprep.mubr.f32.mxu1 %v8393_v57  ;;  %5484 = vmatpush1.bf16.msra.mxu1 %v5483_v4  ;;  %v3016_v57 = vld [vmem:[#allocation9 + $0x3c0] sm:$0xff] }
 0x4ab   : > { %v9022_v14 = vpop.f32.mrb[80].mxu0  ;;  %5485 = vmatprep.subr.bf16.mxu1 %v9789_v47  ;;  %v9893_v4 = vld [vmem:[#allocation68_spill] sm:$0xff]  ;;  %v5492_v24 = vpack.c.bf16 %v3017_v8, %v3016_v57 }
 0x4ac   : > { %v9025_v32 = vpop.f32.mrb[81].mxu0 }
 0x4ad   : > { %3612 = vmatmul.mubr.f32.gmra.mrb[52].mxu1 %v8375_v0 }
 0x4ae   : > { %3616 = vmatprep.mubr.f32.mxu1 %v8399_v54  ;;  %5487 = vmatpush1.bf16.msra.mxu1 %v5486_v19  ;;  %v3019_v54 = vld [vmem:[#allocation9 + $0x3d8] sm:$0xff]  ;;  %v9894_v19 = vld [vmem:[#allocation69_spill] sm:$0xff] }
 0x4af   : > { %v9029_v46 = vpop.f32.mrb[82].mxu0  ;;  %5488 = vmatprep.subr.bf16.mxu1 %v9789_v47 }
 0x4b0   : > { %9891 = vst [vmem:[#allocation62_spill] sm:$0xff] %v9029_v46  ;;  %v9032_v34 = vpop.f32.mrb[83].mxu0  ;;  %v5495_v46 = vpack.c.bf16 %v3019_v54, %v3018_v7  ;;  %v9905_v7 = vld [vmem:[#allocation75_spill] sm:$0xff]  ;;  %v2866_v54 = vrot.slane %v8787_v56, 1 }
 0x4b1   : > { %9892 = vst [vmem:[#allocation63_spill] sm:$0xff] %v9032_v34  ;;  %3617 = vmatmul.mubr.f32.gmra.mrb[54].mxu1 %v9893_v4  ;;  %v3020_v34 = vld [vmem:[#allocation9 + $0x3e0] sm:$0xff] }
 0x4b2   : > { %3621 = vmatprep.mubr.f32.mxu1 %v8445_v29  ;;  %5490 = vmatpush1.bf16.msra.mxu1 %v5489_v27  ;;  %v3021_v29 = vld [vmem:[#allocation9 + $0x3e8] sm:$0xff] }
 0x4b3   : > { %5491 = vmatprep.subr.bf16.mxu1 %v9789_v47  ;;  %v5498_v8 = vpack.c.bf16 %v3021_v29, %v3020_v34  ;;  %v9901_v34 = vld [vmem:[#allocation71_spill] sm:$0xff] }
 0x4b4   : > { %v9038_v52 = vpop.f32.mrb[84].mxu0 }
 0x4b5   : > { %3622 = vmatmul.mubr.f32.gmra.mrb[56].mxu1 %v9894_v19  ;;  %9895 = vst [vmem:[#allocation64_spill] sm:$0xff] %v9038_v52  ;;  %v9041_v16 = vpop.f32.mrb[85].mxu0  ;;  %v3023_v52 = vld [vmem:[#allocation9 + $0x3f8] sm:$0xff] }
 0x4b6   : > { %3626 = vmatprep.mubr.f32.mxu1 %v8455_v17  ;;  %9896 = vst [vmem:[#allocation65_spill] sm:$0xff] %v9041_v16  ;;  %5493 = vmatpush1.bf16.msra.mxu1 %v5492_v24  ;;  %v3022_v17 = vld [vmem:[#allocation9 + $0x3f0] sm:$0xff] }
 0x4b7   : > { %5494 = vmatprep.subr.bf16.mxu1 %v9789_v47  ;;  %v5501_v24 = vpack.c.bf16 %v3023_v52, %v3022_v17  ;;  %v9912_v52 = vld [vmem:[#allocation82_spill] sm:$0xff] }
 0x4b9   : > { %3627 = vmatmul.mubr.f32.gmra.mrb[58].mxu1 %v8481_v61  ;;  %v9045_v27 = vpop.f32.mrb[86].mxu0 }
 0x4ba   : > { %9897 = vst [vmem:[#allocation67_spill] sm:$0xff] %v9045_v27  ;;  %3631 = vmatprep.mubr.f32.mxu1 %v8521_v37  ;;  %v9048_v57 = vpop.f32.mrb[87].mxu0  ;;  %5496 = vmatpush1.bf16.msra.mxu1 %v5495_v46  ;;  %v9899_v37 = vld [vmem:[#allocation49_spill] sm:$0xff]  ;;  %v9900_v46 = vld [vmem:[#allocation70_spill] sm:$0xff] }
 0x4bb   : > { %9898 = vst [vmem:[#allocation68_spill] sm:$0xff] %v9048_v57  ;;  %5497 = vmatprep.subr.bf16.mxu1 %v9789_v47 }
 0x4bd   : > { %3632 = vmatmul.mubr.f32.gmra.mrb[60].mxu1 %v8502_v38 }
 0x4be   : > { %3636 = vmatprep.mubr.f32.mxu1 %v8525_v22  ;;  %5499 = vmatpush1.bf16.msra.mxu1 %v5498_v8  ;;  %v9902_v22 = vld [vmem:[#allocation72_spill] sm:$0xff] }
 0x4bf   : > { %5500 = vmatprep.subr.bf16.mxu1 %v9789_v47  ;;  %v9903_v47 = vld [vmem:[#allocation73_spill] sm:$0xff] }
 0x4c1   : > { %3637 = vmatmul.mubr.f32.gmra.mrb[62].mxu1 %v8541_v50 }
 0x4c2   : > { %3641 = vmatprep.mubr.f32.mxu1 %v8576_v59  ;;  %5502 = vmatpush1.bf16.msra.mxu1 %v5501_v24  ;;  %v9904_v59 = vld [vmem:[#allocation74_spill] sm:$0xff] }
 0x4c3   : > { %5535 = vmatprep.subr.bf16.mxu1 %v9899_v37 }
 0x4c5   : > { %3642 = vmatmul.mubr.f32.gmra.mrb[64].mxu1 %v9900_v46 }
 0x4c6   : > { %3646 = vmatprep.mubr.f32.mxu1 %v8592_v42  ;;  %v9906_v42 = vld [vmem:[#allocation76_spill] sm:$0xff] }
 0x4c9   : > { %3647 = vmatmul.mubr.f32.gmra.mrb[66].mxu1 %v9901_v34 }
 0x4ca   : > { %3651 = vmatprep.mubr.f32.mxu1 %v8637_v3  ;;  %v9907_v3 = vld [vmem:[#allocation77_spill] sm:$0xff] }
 0x4cd   : > { %3652 = vmatmul.mubr.f32.gmra.mrb[68].mxu1 %v9902_v22 }
 0x4ce   : > { %3656 = vmatprep.mubr.f32.mxu1 %v8640_v35  ;;  %v9908_v35 = vld [vmem:[#allocation79_spill] sm:$0xff] }
 0x4d1   : > { %3657 = vmatmul.mubr.f32.gmra.mrb[70].mxu1 %v9903_v47 }
 0x4d2   : > { %3661 = vmatprep.mubr.f32.mxu1 %v8661_v55  ;;  %v9909_v55 = vld [vmem:[#allocation80_spill] sm:$0xff] }
 0x4d5   : > { %3662 = vmatmul.mubr.f32.gmra.mrb[72].mxu1 %v9904_v59 }
 0x4d6   : > { %3666 = vmatprep.mubr.f32.mxu1 %v8666_v39  ;;  %v9910_v39 = vld [vmem:[#allocation81_spill] sm:$0xff] }
 0x4d9   : > { %3667 = vmatmul.mubr.f32.gmra.mrb[74].mxu1 %v9905_v7 }
 0x4da   : > { %3671 = vmatprep.mubr.f32.mxu1 %v8685_v45  ;;  %v2873_v45 = vrot.slane %v8787_v56, 2 }
 0x4dd   : > { %3672 = vmatmul.mubr.f32.gmra.mrb[76].mxu1 %v9906_v42 }
 0x4de   : > { %3676 = vmatprep.mubr.f32.mxu1 %v8703_v58  ;;  %v2586_v58 = vld [vmem:[#allocation2 + $0x190] sm:$0x3] }
 0x4df   : > { %v2875_v8 = vrot.slane %v2586_v58, 2  ;;  %v2868_v27 = vrot.slane %v2586_v58, 1  ;;  %v9913_v58 = vld [vmem:[#allocation50_spill] sm:$0xff] }
 0x4e1   : > { %3677 = vmatmul.mubr.f32.gmra.mrb[78].mxu1 %v9907_v3  ;;  %v9097_v57 = vsel %vm512_vm1, %v2873_v45, %v2875_v8  ;;  %v9101_v16 = vsel %vm399_vm0, %v2866_v54, %v2868_v27  ;;  %v9914_v27 = vld [vmem:[#allocation51_spill] sm:$0xff] }
 0x4e2   : > { %3681 = vmatprep.mubr.f32.mxu1 %v8717_v26  ;;  %v9911_v26 = vld [vmem:[#allocation78_spill] sm:$0xff] }
 0x4e3   : > { %v2865_v17 = vrot.slane %v9911_v26, 1 }
 0x4e5   : > { %3682 = vmatmul.mubr.f32.gmra.mrb[80].mxu1 %v8738_v40  ;;  %v9093_v24 = vsel %vm399_vm0, %v2865_v17, %v2866_v54  ;;  %v9928_v54 = vld [vmem:[#allocation66_spill] sm:$0xff] }
 0x4e6   : > { %3686 = vmatprep.mubr.f32.mxu1 %v8727_v48  ;;  %v2872_v48 = vrot.slane %v9911_v26, 2  ;;  %v9924_v26 = vld [vmem:[#allocation56_spill] sm:$0xff] }
 0x4e8   : > { %v9088_v29 = vsel %vm512_vm1, %v2872_v48, %v2873_v45  ;;  %v9915_v45 = vld [vmem:[#allocation85_spill] sm:$0xff]  ;;  %v9926_v48 = vld [vmem:[#allocation91_spill] sm:$0xff] }
 0x4e9   : > { %3687 = vmatmul.mubr.f32.gmra.mrb[82].mxu1 %v8744_v63 }
 0x4ea   : > { %3691 = vmatprep.mubr.f32.mxu1 %v8948_v23 }
 0x4ed   : > { %3692 = vmatmul.mubr.f32.gmra.mrb[84].mxu1 %v9908_v35 }
 0x4ee   : > { %3696 = vmatprep.mubr.f32.mxu1 %v8958_v13 }
 0x4f1   : > { %3697 = vmatmul.mubr.f32.gmra.mrb[86].mxu1 %v9909_v55 }
 0x4f2   : > { %3701 = vmatprep.mubr.f32.mxu1 %v8967_v62 }
 0x4f5   : > { %3702 = vmatmul.mubr.f32.gmra.mrb[88].mxu1 %v9910_v39 }
 0x4f6   : > { %3706 = vmatprep.mubr.f32.mxu1 %v8973_v60 }
 0x4f9   : > { %3707 = vmatmul.mubr.f32.gmra.mrb[90].mxu1 %v9912_v52 }
 0x4fa   : > { %3711 = vmatprep.mubr.f32.mxu1 %v9088_v29 }
 0x4fd   : > { %3712 = vmatmul.mubr.f32.gmra.mrb[92].mxu1 %v9093_v24 }
 0x4fe   : > { %3716 = vmatprep.mubr.f32.mxu1 %v9097_v57 }
 0x501   : > { %3717 = vmatmul.mubr.f32.gmra.mrb[94].mxu1 %v9101_v16 }
 0x502   : > { %3786 = vmatprep.mubr.f32.mxu1 %v9879_v21  ;;  %v9917_v21 = vld [vmem:[#allocation86_spill] sm:$0xff] }
 0x505   : > { %3787 = vmatmul.mubr.f32.vlgmr.msra.gmra.mrb[32].mxu1 %v8815_v53  ;;  %v9916_v53 = vld [vmem:[#allocation52_spill] sm:$0xff] }
 0x506   : > { %3791 = vmatprep.mubr.f32.mxu1 %v9880_v18  ;;  %5543 = vmatpush3.bf16.msra.mxu1 %v9899_v37  ;;  %v9919_v18 = vld [vmem:[#allocation87_spill] sm:$0xff] }
 0x507   : > { %5536 = vmatprep.subr.bf16.mxu1 %v9913_v58  ;;  %v9922_v37 = vld [vmem:[#allocation55_spill] sm:$0xff] }
 0x509   : > { %3792 = vmatmul.mubr.f32.gmra.mrb[34].mxu1 %v8823_v41  ;;  %v9918_v41 = vld [vmem:[#allocation53_spill] sm:$0xff] }
 0x50a   : > { %3796 = vmatprep.mubr.f32.mxu1 %v9881_v44  ;;  %5544 = vmatpush3.bf16.msra.mxu1 %v9913_v58  ;;  %v9920_v44 = vld [vmem:[#allocation54_spill] sm:$0xff] }
 0x50b   : > { %5537 = vmatprep.subr.bf16.mxu1 %v9914_v27 }
 0x50d   : > { %3797 = vmatmul.mubr.f32.gmra.mrb[36].mxu1 %v9915_v45 }
 0x50e   : > { %3801 = vmatprep.mubr.f32.mxu1 %v9884_v9  ;;  %5545 = vmatpush3.bf16.msra.mxu1 %v9914_v27  ;;  %v9921_v9 = vld [vmem:[#allocation88_spill] sm:$0xff] }
 0x50f   : > { %5538 = vmatprep.subr.bf16.mxu1 %v9916_v53 }
 0x511   : > { %3802 = vmatmul.mubr.f32.gmra.mrb[38].mxu1 %v9917_v21  ;;  %v9934_v21 = vld [vmem:[#allocation97_spill] sm:$0xff] }
 0x512   : > { %3806 = vmatprep.mubr.f32.mxu1 %v9885_v51  ;;  %5546 = vmatpush3.bf16.msra.mxu1 %v9916_v53  ;;  %v9923_v51 = vld [vmem:[#allocation89_spill] sm:$0xff] }
 0x513   : > { %5539 = vmatprep.subr.bf16.mxu1 %v9918_v41 }
 0x515   : > { %3807 = vmatmul.mubr.f32.gmra.mrb[40].mxu1 %v9919_v18 }
 0x516   : > { %3811 = vmatprep.mubr.f32.mxu1 %v9886_v6  ;;  %5547 = vmatpush3.bf16.msra.mxu1 %v9918_v41  ;;  %v9925_v6 = vld [vmem:[#allocation90_spill] sm:$0xff] }
 0x517   : > { %5540 = vmatprep.subr.bf16.mxu1 %v9920_v44 }
 0x519   : > { %3812 = vmatmul.mubr.f32.gmra.mrb[42].mxu1 %v9921_v9 }
 0x51a   : > { %3816 = vmatprep.mubr.f32.mxu1 %v9889_v28  ;;  %5548 = vmatpush3.bf16.msra.mxu1 %v9920_v44  ;;  %v9927_v28 = vld [vmem:[#allocation92_spill] sm:$0xff] }
 0x51b   : > { %5541 = vmatprep.subr.bf16.mxu1 %v9922_v37 }
 0x51d   : > { %3817 = vmatmul.mubr.f32.gmra.mrb[44].mxu1 %v9923_v51 }
 0x51e   : > { %3821 = vmatprep.mubr.f32.mxu1 %v9890_v10  ;;  %5549 = vmatpush3.bf16.msra.mxu1 %v9922_v37 }
 0x51f   : > { %5542 = vmatprep.subr.bf16.mxu1 %v9924_v26 }
 0x521   : > { %3822 = vmatmul.mubr.f32.gmra.mrb[46].mxu1 %v9925_v6 }
 0x522   : > { %3826 = vmatprep.mubr.f32.mxu1 %v8375_v0  ;;  %5550 = vmatpush3.bf16.msra.mxu1 %v9924_v26  ;;  %v6402_v0 = vld [vmem:[#allocation2 + $0xf8] sm:$0xff] }
 0x525   : > { %3827 = vmatmul.mubr.f32.gmra.mrb[48].mxu1 %v9926_v48 }
 0x526   : > { %3831 = vmatprep.mubr.f32.mxu1 %v9893_v4 }
 0x529   : > { %3832 = vmatmul.mubr.f32.gmra.mrb[50].mxu1 %v9927_v28  ;;  %v9935_v28 = vld [vmem:[#allocation96_spill] sm:$0xff] }
 0x52a   : > { %3836 = vmatprep.mubr.f32.mxu1 %v9894_v19 }
 0x52d   : > { %3837 = vmatmul.mubr.f32.gmra.mrb[52].mxu1 %v9928_v54 }
 0x52e   : > { %3841 = vmatprep.mubr.f32.mxu1 %v8481_v61  ;;  %v6403_v61 = vld [vmem:[#allocation2 + $0x108] sm:$0xff] }
 0x531   : > { %3842 = vmatmul.mubr.f32.gmra.mrb[54].mxu1 %v8876_v11  ;;  %v6406_v11 = vld [vmem:[#allocation2 + $0x128] sm:$0xff] }
 0x532   : > { %3846 = vmatprep.mubr.f32.mxu1 %v8502_v38  ;;  %v6404_v38 = vld [vmem:[#allocation2 + $0x110] sm:$0xff] }
 0x535   : > { %3847 = vmatmul.mubr.f32.gmra.mrb[56].mxu1 %v8881_v49  ;;  %v6407_v49 = vld [vmem:[#allocation2 + $0x138] sm:$0xff] }
 0x536   : > { %3851 = vmatprep.mubr.f32.mxu1 %v8541_v50  ;;  %v6405_v50 = vld [vmem:[#allocation2 + $0x120] sm:$0xff] }
 0x539   : > { %3852 = vmatmul.mubr.f32.gmra.mrb[58].mxu1 %v8886_v33  ;;  %v6408_v33 = vld [vmem:[#allocation2 + $0x140] sm:$0xff] }
 0x53a   : > { %3856 = vmatprep.mubr.f32.mxu1 %v9900_v46 }
 0x53d   : > { %3857 = vmatmul.mubr.f32.gmra.mrb[60].mxu1 %v8891_v15  ;;  %v6409_v15 = vld [vmem:[#allocation2 + $0x150] sm:$0xff] }
 0x53e   : > { %3861 = vmatprep.mubr.f32.mxu1 %v9901_v34 }
 0x541   : > { %3862 = vmatmul.mubr.f32.gmra.mrb[62].mxu1 %v8896_v30  ;;  %v2589_v30 = vld [vmem:[#allocation2 + $0x1a8] sm:$0x3] }
 0x542   : > { %3866 = vmatprep.mubr.f32.mxu1 %v9902_v22  ;;  %v2892_v31 = vrot.slane %v2589_v30, 2 }
 0x545   : > { %3867 = vmatmul.mubr.f32.gmra.mrb[64].mxu1 %v8900_v43 }
 0x546   : > { %3871 = vmatprep.mubr.f32.mxu1 %v9903_v47 }
 0x549   : > { %3872 = vmatmul.mubr.f32.gmra.mrb[66].mxu1 %v6402_v0 }
 0x54a   : > { %3876 = vmatprep.mubr.f32.mxu1 %v9904_v59 }
 0x54d   : > { %3877 = vmatmul.mubr.f32.gmra.mrb[68].mxu1 %v6403_v61 }
 0x54e   : > { %3881 = vmatprep.mubr.f32.mxu1 %v9905_v7 }
 0x551   : > { %3882 = vmatmul.mubr.f32.gmra.mrb[70].mxu1 %v6404_v38 }
 0x552   : > { %3886 = vmatprep.mubr.f32.mxu1 %v9906_v42 }
 0x555   : > { %3887 = vmatmul.mubr.f32.gmra.mrb[72].mxu1 %v6405_v50 }
 0x556   : > { %3891 = vmatprep.mubr.f32.mxu1 %v9907_v3 }
 0x559   : > { %3892 = vmatmul.mubr.f32.gmra.mrb[74].mxu1 %v6406_v11 }
 0x55a   : > { %3896 = vmatprep.mubr.f32.mxu1 %v8738_v40  ;;  %v9929_v40 = vld [vmem:[#allocation83_spill] sm:$0xff] }
 0x55d   : > { %3897 = vmatmul.mubr.f32.gmra.mrb[76].mxu1 %v6407_v49 }
 0x55e   : > { %3901 = vmatprep.mubr.f32.mxu1 %v8744_v63  ;;  %v2882_v63 = vrot.slane %v9929_v40, 1 }
 0x561   : > { %3902 = vmatmul.mubr.f32.gmra.mrb[78].mxu1 %v6408_v33 }
 0x562   : > { %3906 = vmatprep.mubr.f32.mxu1 %v9908_v35 }
 0x565   : > { %3907 = vmatmul.mubr.f32.gmra.mrb[80].mxu1 %v6409_v15 }
 0x566   : > { %3911 = vmatprep.mubr.f32.mxu1 %v9909_v55 }
 0x569   : > { %3912 = vmatmul.mubr.f32.gmra.mrb[82].mxu1 %v8689_v20  ;;  %v2885_v20 = vrot.slane %v2589_v30, 1 }
 0x56a   : > { %3916 = vmatprep.mubr.f32.mxu1 %v9910_v39 }
 0x56d   : > { %6454 = vmatmul.mubr.msk.f32.gmra.mrb[84].mxu1 %vm8032_vm10, %v8696_v2  ;;  %v2886_v2 = vsel %vm399_vm0, %v2882_v63, %v2885_v20 }
 0x56e   : > { %3921 = vmatprep.mubr.f32.mxu1 %v9912_v52 }
 0x571   : > { %3922 = vmatmul.mubr.f32.gmra.mrb[86].mxu1 %v8748_v5  ;;  %v9930_v5 = vld [vmem:[#allocation84_spill] sm:$0xff] }
 0x572   : > { %3926 = vmatprep.mubr.f32.mxu1 %v9093_v24 }
 0x575   : > { %6456 = vmatmul.mubr.msk.f32.gmra.mrb[88].mxu1 %vm8032_vm10, %v8751_v36  ;;  %v2893_v36 = vsel %vm512_vm1, %v9930_v5, %v2892_v31 }
 0x576   : > { %3931 = vmatprep.mubr.f32.mxu1 %v9101_v16 }
 0x579   : > { %3932 = vmatmul.mubr.f32.gmra.mrb[90].mxu1 %v8787_v56  ;;  %v9188_v56 = vld [vmem:[#allocation11] ss:$0 sm:$0xff] }
 0x57a   : > { %3936 = vmatprep.mubr.f32.mxu1 %v2882_v63  ;;  %v9936_v63 = vld [vmem:[#allocation99_spill] sm:$0xff] }
 0x57d   : > { %3937 = vmatmul.mubr.f32.gmra.mrb[92].mxu1 %v9929_v40 }
 0x57e   : > { %3941 = vmatprep.mubr.f32.mxu1 %v2886_v2 }
 0x581   : > { %3942 = vmatmul.mubr.f32.gmra.mrb[94].mxu1 %v9929_v40 }
 0x582   : > { %5075 = vmatprep.mubr.f32.mxu1 %v8948_v23 }
 0x585   : > { %5076 = vmatmul.mubr.f32.vlgmr.msra.gmra.mrb[96].mxu1 %v8958_v13 }
 0x586   : > { %5078 = vmatprep.mubr.f32.mxu1 %v8967_v62 }
 0x589   : > { %5079 = vmatmul.mubr.f32.gmra.mrb[98].mxu1 %v8973_v60 }
 0x58a   : > { %5081 = vmatprep.mubr.f32.mxu1 %v9088_v29  ;;  %v9933_v29 = vld [vmem:[#allocation94_spill] sm:$0xff] }
 0x58d   : > { %5082 = vmatmul.mubr.f32.gmra.mrb[100].mxu1 %v9097_v57  ;;  %v9931_v57 = vld [vmem:[#allocation93_spill] sm:$0xff] }
 0x58e   : > { %5084 = vmatprep.mubr.f32.mxu1 %v9930_v5 }
 0x591   : > { %5085 = vmatmul.mubr.f32.gmra.mrb[102].mxu1 %v2893_v36 }
 0x5d8   : > { %v3788_v43 = vpop.f32.mrb[32].mxu1 }
 0x5d9   : > { %v5583_v23 = vadd.f32 %v9188_v56, %v3788_v43  ;;  %v3790_v13 = vpop.f32.mrb[33].mxu1 }
 0x5db   : > { %v9192_v62 = vadd.f32 %v5583_v23, %v8912_v1  ;;  %v9932_v1 = vld [vmem:[#allocation95_spill] sm:$0xff] }
 0x5dc   : > { %v3793_v60 = vpop.f32.mrb[34].mxu1 }
 0x5dd   : > { %v4172_v10 = vmin.f32 %v9192_v62, 20.0  ;;  %v5584_v4 = vadd.f32 %v9188_v56, %v3793_v60  ;;  %v3795_v19 = vpop.f32.mrb[35].mxu1  ;;  %vm4492_vm0 = vcmp.gt.f32.partialorder %v9192_v62, 20.0 }
 0x5df   : > { %v4204_v16 = vmul.f32 1.442695, %v4172_v10  ;;  %v9197_v46 = vadd.f32 %v5584_v4, %v9931_v57  ;;  %v9937_v4 = vld [vmem:[#allocation98_spill] sm:$0xff] }
 0x5e0   : > { %v3798_v34 = vpop.f32.mrb[36].mxu1 }
 0x5e1   : > { %6223 = vpow2.f32 %v4204_v16  ;;  %v4173_v22 = vmin.f32 %v9197_v46, 20.0  ;;  %v5585_v47 = vadd.f32 %v9188_v56, %v3798_v34  ;;  %v3800_v59 = vpop.f32.mrb[37].mxu1  ;;  %vm4493_vm1 = vcmp.gt.f32.partialorder %v9197_v46, 20.0 }
 0x5e3   : > { %v4206_v7 = vmul.f32 1.442695, %v4173_v22  ;;  %v9202_v42 = vadd.f32 %v5585_v47, %v9932_v1 }
 0x5e4   : > { %v3803_v3 = vpop.f32.mrb[38].mxu1 }
 0x5e5   : > { %6225 = vpow2.f32 %v4206_v7  ;;  %v4174_v35 = vmin.f32 %v9202_v42, 20.0  ;;  %v5586_v55 = vadd.f32 %v9188_v56, %v3803_v3  ;;  %v3805_v39 = vpop.f32.mrb[39].mxu1  ;;  %vm4494_vm3 = vcmp.gt.f32.partialorder %v9202_v42, 20.0 }
 0x5e7   : > { %v4208_v52 = vmul.f32 1.442695, %v4174_v35  ;;  %v9207_v8 = vadd.f32 %v5586_v55, %v9933_v29 }
 0x5e8   : > { %v3808_v17 = vpop.f32.mrb[40].mxu1 }
 0x5e9   : > { %6227 = vpow2.f32 %v4208_v52  ;;  %v4175_v24 = vmin.f32 %v9207_v8, 20.0  ;;  %v5587_v58 = vadd.f32 %v9188_v56, %v3808_v17  ;;  %v3810_v27 = vpop.f32.mrb[41].mxu1  ;;  %vm4495_vm10 = vcmp.gt.f32.partialorder %v9207_v8, 20.0 }
 0x5eb   : > { %v6224_v45 = vpop.eup %6223  ;;  %v4210_v53 = vmul.f32 1.442695, %v4175_v24  ;;  %v9212_v41 = vadd.f32 %v5587_v58, %v9934_v21 }
 0x5ec   : > { %v4268_v18 = vadd.f32 1.0, %v6224_v45  ;;  %v3813_v44 = vpop.f32.mrb[42].mxu1 }
 0x5ed   : > { %6229 = vpow2.f32 %v4210_v53  ;;  %v4176_v9 = vmin.f32 %v9212_v41, 20.0  ;;  %v5588_v37 = vadd.f32 %v9188_v56, %v3813_v44  ;;  %v3815_v51 = vpop.f32.mrb[43].mxu1  ;;  %vm4496_vm12 = vcmp.gt.f32.partialorder %v9212_v41, 20.0 }
 0x5ee   : > { %v4300_v26 = vmul.f32 %v4268_v18, %v4268_v18 }
 0x5ef   : > { %v6226_v6 = vpop.eup %6225  ;;  %v4212_v48 = vmul.f32 1.442695, %v4176_v9  ;;  %v9217_v54 = vadd.f32 %v5588_v37, %v9935_v28 }
 0x5f0   : > { %v4396_v0 = vadd.f32 1.0, %v4300_v26  ;;  %v4269_v61 = vadd.f32 1.0, %v6226_v6  ;;  %v3818_v38 = vpop.f32.mrb[44].mxu1  ;;  %v4793_v60 = vadd.f32 -1.0, %v4300_v26  ;;  %v9938_v26 = vld [vmem:[#allocation17_spill] sm:$0xff] }
 0x5f1   : > { %6231 = vpow2.f32 %v4212_v48  ;;  %v4177_v50 = vmin.f32 %v9217_v54, 20.0  ;;  %v5589_v11 = vadd.f32 %v9188_v56, %v3818_v38  ;;  %v3820_v49 = vpop.f32.mrb[45].mxu1  ;;  %v9939_v38 = vld [vmem:[#allocation100_spill] sm:$0xff]  ;;  %vm4497_vm13 = vcmp.gt.f32.partialorder %v9217_v54, 20.0 }
 0x5f2   : > { %6233 = vrcp.f32 %v4396_v0  ;;  %v4301_v33 = vmul.f32 %v4269_v61, %v4269_v61  ;;  %v4364_v3 = vmul.f32 %v4793_v60, %v9192_v62 }
 0x5f3   : > { %v6228_v15 = vpop.eup %6227  ;;  %v4214_v40 = vmul.f32 1.442695, %v4177_v50  ;;  %v9222_v30 = vadd.f32 %v5589_v11, %v9936_v63 }
 0x5f4   : > { %v4397_v20 = vadd.f32 1.0, %v4301_v33  ;;  %v4270_v2 = vadd.f32 1.0, %v6228_v15  ;;  %v3823_v31 = vpop.f32.mrb[46].mxu1  ;;  %v4794_v35 = vadd.f32 -1.0, %v4301_v33 }
 0x5f5   : > { %6235 = vpow2.f32 %v4214_v40  ;;  %v4178_v5 = vmin.f32 %v9222_v30, 20.0  ;;  %v5590_v36 = vadd.f32 %v9188_v56, %v3823_v31  ;;  %v3825_v43 = vpop.f32.mrb[47].mxu1  ;;  %vm4498_vm14 = vcmp.gt.f32.partialorder %v9222_v30, 20.0 }
 0x5f6   : > { %6237 = vrcp.f32 %v4397_v20  ;;  %v4302_v23 = vmul.f32 %v4270_v2, %v4270_v2  ;;  %v4365_v44 = vmul.f32 %v4794_v35, %v9197_v46 }
 0x5f7   : > { %v6230_v13 = vpop.eup %6229  ;;  %v4216_v10 = vmul.f32 1.442695, %v4178_v5  ;;  %v9227_v19 = vadd.f32 %v5590_v36, %v9937_v4  ;;  %v9940_v5 = vld [vmem:[#allocation18_spill] sm:$0xff] }
 0x5f8   : > { %v4398_v16 = vadd.f32 1.0, %v4302_v23  ;;  %v4271_v57 = vadd.f32 1.0, %v6230_v13  ;;  %v3828_v34 = vpop.f32.mrb[48].mxu1  ;;  %v4795_v9 = vadd.f32 -1.0, %v4302_v23 }
 0x5f9   : > { %6239 = vpow2.f32 %v4216_v10  ;;  %v4179_v22 = vmin.f32 %v9227_v19, 20.0  ;;  %v5591_v47 = vadd.f32 %v9188_v56, %v3828_v34  ;;  %v3830_v59 = vpop.f32.mrb[49].mxu1  ;;  %vm4499_vm15 = vcmp.gt.f32.partialorder %v9227_v19, 20.0 }
 0x5fa   : > { %6241 = vrcp.f32 %v4398_v16  ;;  %v4303_v7 = vmul.f32 %v4271_v57, %v4271_v57  ;;  %v4366_v63 = vmul.f32 %v4795_v9, %v9202_v42 }
 0x5fb   : > { %v6232_v1 = vpop.eup %6231  ;;  %v4218_v55 = vmul.f32 1.442695, %v4179_v22  ;;  %v9233_v39 = vadd.f32 %v5591_v47, %v8978_v12 }
 0x5fc   : > { %v6234_v52 = vpop.eup %6233  ;;  %v4399_v29 = vadd.f32 1.0, %v4303_v7  ;;  %v4272_v17 = vadd.f32 1.0, %v6232_v1  ;;  %v3833_v24 = vpop.f32.mrb[50].mxu1  ;;  %v9941_v1 = vld [vmem:[#allocation19_spill] sm:$0xff] }
 0x5fd   : > { %v4460_v58 = vmul.f32 %v6234_v52, %v4364_v3  ;;  %6243 = vpow2.f32 %v4218_v55  ;;  %v4180_v27 = vmin.f32 %v9233_v39, 20.0  ;;  %v3835_v45 = vpop.f32.mrb[51].mxu1  ;;  %v5592_v21 = vadd.f32 %v9188_v56, %v3833_v24 }
 0x5fe   : > { %6245 = vrcp.f32 %v4399_v29  ;;  %v4304_v53 = vmul.f32 %v4272_v17, %v4272_v17  ;;  %v9942_v17 = vld [vmem:[#allocation57_spill] sm:$0xff]  ;;  %vm4500_vm2 = vcmp.gt.f32.partialorder %v9233_v39, 20.0 }
 0x5ff   : > { %v6236_v18 = vpop.eup %6235  ;;  %v4524_v12 = vsel %vm4492_vm0, %v9192_v62, %v4460_v58  ;;  %v4220_v37 = vmul.f32 1.442695, %v4180_v27  ;;  %v9243_v50 = vadd.f32 %v5592_v21, %v9939_v38  ;;  %v4796_v62 = vadd.f32 -1.0, %v4303_v7 }
 0x600   : > { %v6238_v51 = vpop.eup %6237  ;;  %v4556_v6 = vadd.f32 %v4524_v12, %v9938_v26  ;;  %v4400_v48 = vadd.f32 1.0, %v4304_v53  ;;  %v4273_v28 = vadd.f32 1.0, %v6236_v18  ;;  %v3838_v0 = vpop.f32.mrb[52].mxu1  ;;  %v4797_v47 = vadd.f32 -1.0, %v4304_v53 }
 0x601   : > { %v4461_v61 = vmul.f32 %v6238_v51, %v4365_v44  ;;  %6247 = vpow2.f32 %v4220_v37  ;;  %v5593_v11 = vadd.f32 %v9188_v56, %v3838_v0  ;;  %v3840_v49 = vpop.f32.mrb[53].mxu1  ;;  %v4181_v20 = vmin.f32 %v9243_v50, 20.0  ;;  %v9943_v44 = vld [vmem:[#allocation59_spill] sm:$0xff]  ;;  %v9944_v51 = vld [vmem:[#allocation20_spill] sm:$0xff] }
 0x602   : > { %4588 = vst [vmem:[%s9246_s26] sm:$0xff] %v4556_v6  ;;  %6249 = vrcp.f32 %v4400_v48  ;;  %v4305_v33 = vmul.f32 %v4273_v28, %v4273_v28  ;;  %v4367_v16 = vmul.f32 %v4796_v62, %v9207_v8  ;;  %v4368_v18 = vmul.f32 %v4797_v47, %v9212_v41 }
 0x603   : > { %v6240_v15 = vpop.eup %6239  ;;  %v4525_v40 = vsel %vm4493_vm1, %v9197_v46, %v4461_v61  ;;  %v9254_v2 = vadd.f32 %v5593_v11, %v8988_v25  ;;  %v4222_v10 = vmul.f32 1.442695, %v4181_v20  ;;  %v9945_v20 = vld [vmem:[#allocation21_spill] sm:$0xff]  ;;  %vm4501_vm4 = vcmp.gt.f32.partialorder %v9243_v50, 20.0 }
 0x604   : > { %v6242_v31 = vpop.eup %6241  ;;  %v4557_v36 = vadd.f32 %v4525_v40, %v9940_v5  ;;  %v4401_v43 = vadd.f32 1.0, %v4305_v33  ;;  %v4274_v23 = vadd.f32 1.0, %v6240_v15  ;;  %v3843_v13 = vpop.f32.mrb[54].mxu1 }
 0x605   : > { %v4462_v60 = vmul.f32 %v6242_v31, %v4366_v63  ;;  %v4182_v4 = vmin.f32 %v9254_v2, 20.0  ;;  %v3845_v46 = vpop.f32.mrb[55].mxu1  ;;  %v5594_v25 = vadd.f32 %v9188_v56, %v3843_v13  ;;  %vm4502_vm5 = vcmp.gt.f32.partialorder %v9254_v2, 20.0 }
 0x606   : > { %4589 = vst [vmem:[%s9246_s26 + $0x8] sm:$0xff] %v4557_v36  ;;  %6251 = vrcp.f32 %v4401_v43  ;;  %v4306_v57 = vmul.f32 %v4274_v23, %v4274_v23  ;;  %v9946_v36 = vld [vmem:[#allocation58_spill] sm:$0xff] }
 0x607   : > { %v6244_v34 = vpop.eup %6243  ;;  %v4526_v22 = vsel %vm4494_vm3, %v9202_v42, %v4462_v60  ;;  %6253 = vpow2.f32 %v4222_v10  ;;  %v4224_v59 = vmul.f32 1.442695, %v4182_v4  ;;  %v9265_v24 = vadd.f32 %v5594_v25, %v9942_v17 }
 0x608   : > { %v6246_v7 = vpop.eup %6245  ;;  %v4558_v3 = vadd.f32 %v4526_v22, %v9941_v1  ;;  %v4402_v35 = vadd.f32 1.0, %v4306_v57  ;;  %v4275_v55 = vadd.f32 1.0, %v6244_v34  ;;  %v3848_v52 = vpop.f32.mrb[56].mxu1  ;;  %v4798_v42 = vadd.f32 -1.0, %v4305_v33  ;;  %v9947_v22 = vld [vmem:[#allocation61_spill] sm:$0xff] }
 0x609   : > { %v4463_v29 = vmul.f32 %v6246_v7, %v4367_v16  ;;  %6255 = vpow2.f32 %v4224_v59  ;;  %v5595_v58 = vadd.f32 %v9188_v56, %v3848_v52  ;;  %v3850_v27 = vpop.f32.mrb[57].mxu1  ;;  %v4183_v12 = vmin.f32 %v9265_v24, 20.0  ;;  %v9948_v7 = vld [vmem:[#allocation22_spill] sm:$0xff] }
 0x60a   : > { %4590 = vst [vmem:[%s9246_s26 + $0x10] sm:$0xff] %v4558_v3  ;;  %6257 = vrcp.f32 %v4402_v35  ;;  %v4307_v45 = vmul.f32 %v4275_v55, %v4275_v55  ;;  %v4369_v11 = vmul.f32 %v4798_v42, %v9217_v54  ;;  %v4799_v15 = vadd.f32 -1.0, %v4306_v57 }
 0x60b   : > { %v6248_v53 = vpop.eup %6247  ;;  %v4527_v21 = vsel %vm4495_vm10, %v9207_v8, %v4463_v29  ;;  %v9274_v9 = vadd.f32 %v5595_v58, %v9943_v44  ;;  %v4226_v61 = vmul.f32 1.442695, %v4183_v12  ;;  %v9949_v12 = vld [vmem:[#allocation60_spill] sm:$0xff]  ;;  %vm4503_vm6 = vcmp.gt.f32.partialorder %v9265_v24, 20.0 }
 0x60c   : > { %v6250_v37 = vpop.eup %6249  ;;  %v4559_v26 = vadd.f32 %v4527_v21, %v9944_v51  ;;  %v4403_v6 = vadd.f32 1.0, %v4307_v45  ;;  %v4276_v48 = vadd.f32 1.0, %v6248_v53  ;;  %v3853_v28 = vpop.f32.mrb[58].mxu1  ;;  %v4370_v25 = vmul.f32 %v4799_v15, %v9222_v30  ;;  %v9950_v51 = vld [vmem:[#allocation23_spill] sm:$0xff] }
 0x60d   : > { %v4464_v0 = vmul.f32 %v6250_v37, %v4368_v18  ;;  %v4184_v38 = vmin.f32 %v9274_v9, 20.0  ;;  %v3855_v8 = vpop.f32.mrb[59].mxu1  ;;  %v5596_v62 = vadd.f32 %v9188_v56, %v3853_v28  ;;  %v4800_v34 = vadd.f32 -1.0, %v4307_v45 }
 0x60e   : > { %4591 = vst [vmem:[%s9246_s26 + $0x18] sm:$0xff] %v4559_v26  ;;  %6259 = vrcp.f32 %v4403_v6  ;;  %v4308_v49 = vmul.f32 %v4276_v48, %v4276_v48  ;;  %vm4504_vm7 = vcmp.gt.f32.partialorder %v9274_v9, 20.0 }
 0x60f   : > { %v4528_v33 = vsel %vm4496_vm12, %v9212_v41, %v4464_v0  ;;  %6261 = vpow2.f32 %v4226_v61  ;;  %v4228_v40 = vmul.f32 1.442695, %v4184_v38  ;;  %v9285_v43 = vadd.f32 %v5596_v62, %v9946_v36 }
 0x610   : > { %v6252_v63 = vpop.eup %6251  ;;  %v4560_v31 = vadd.f32 %v4528_v33, %v9945_v20  ;;  %v4404_v5 = vadd.f32 1.0, %v4308_v49  ;;  %v3858_v23 = vpop.f32.mrb[60].mxu1  ;;  %v4801_v27 = vadd.f32 -1.0, %v4308_v49  ;;  %v4371_v21 = vmul.f32 %v4800_v34, %v9227_v19 }
 0x611   : > { %v6254_v13 = vpop.eup %6253  ;;  %v4465_v60 = vmul.f32 %v6252_v63, %v4369_v11  ;;  %6263 = vpow2.f32 %v4228_v40  ;;  %v5597_v10 = vadd.f32 %v9188_v56, %v3858_v23  ;;  %v3860_v4 = vpop.f32.mrb[61].mxu1  ;;  %v4185_v46 = vmin.f32 %v9285_v43, 20.0  ;;  %v9951_v63 = vld [vmem:[#allocation24_spill] sm:$0xff] }
 0x612   : > { %4592 = vst [vmem:[%s9246_s26 + $0x20] sm:$0xff] %v4560_v31  ;;  %6265 = vrcp.f32 %v4404_v5  ;;  %v4277_v41 = vadd.f32 1.0, %v6254_v13  ;;  %vm4505_vm8 = vcmp.gt.f32.partialorder %v9285_v43, 20.0 }
 0x613   : > { %v6256_v16 = vpop.eup %6255  ;;  %v4529_v57 = vsel %vm4497_vm13, %v9217_v54, %v4465_v60  ;;  %v9294_v47 = vadd.f32 %v5597_v10, %v9947_v22  ;;  %v4230_v55 = vmul.f32 1.442695, %v4185_v46 }
 0x614   : > { %v6258_v59 = vpop.eup %6257  ;;  %v4561_v1 = vadd.f32 %v4529_v57, %v9948_v7  ;;  %v4309_v3 = vmul.f32 %v4277_v41, %v4277_v41  ;;  %v4278_v35 = vadd.f32 1.0, %v6256_v16  ;;  %v3863_v52 = vpop.f32.mrb[62].mxu1  ;;  %v9952_v57 = vld [vmem:[#allocation25_spill] sm:$0xff] }
 0x615   : > { %v4466_v29 = vmul.f32 %v6258_v59, %v4370_v25  ;;  %v4186_v17 = vmin.f32 %v9294_v47, 20.0  ;;  %v5598_v54 = vadd.f32 %v9188_v56, %v3863_v52  ;;  %v3865_v58 = vpop.f32.mrb[63].mxu1  ;;  %6267 = vpow2.f32 %v4230_v55 }
 0x616   : > { %4593 = vst [vmem:[%s9246_s26 + $0x28] sm:$0xff] %v4561_v1  ;;  %v4405_v42 = vadd.f32 1.0, %v4309_v3  ;;  %v4310_v45 = vmul.f32 %v4278_v35, %v4278_v35  ;;  %v4802_v33 = vadd.f32 -1.0, %v4309_v3  ;;  %vm4506_vm9 = vcmp.gt.f32.partialorder %v9294_v47, 20.0 }
 0x617   : > { %v4530_v53 = vsel %vm4498_vm14, %v9222_v30, %v4466_v29  ;;  %v4232_v18 = vmul.f32 1.442695, %v4186_v17  ;;  %v9304_v44 = vadd.f32 %v5598_v54, %v9949_v12  ;;  %v4372_v30 = vmul.f32 %v4801_v27, %v9233_v39 }
 0x618   : > { %v6260_v37 = vpop.eup %6259  ;;  %v4562_v26 = vadd.f32 %v4530_v53, %v9950_v51  ;;  %6269 = vrcp.f32 %v4405_v42  ;;  %v3868_v6 = vpop.f32.mrb[64].mxu1  ;;  %v4406_v0 = vadd.f32 1.0, %v4310_v45  ;;  %v4373_v34 = vmul.f32 %v4802_v33, %v9243_v50  ;;  %v9955_v33 = vld [vmem:[#allocation27_spill] sm:$0xff] }
 0x619   : > { %v6262_v48 = vpop.eup %6261  ;;  %v4467_v28 = vmul.f32 %v6260_v37, %v4371_v21  ;;  %6271 = vpow2.f32 %v4232_v18  ;;  %v4187_v61 = vmin.f32 %v9304_v44, 20.0  ;;  %v3870_v38 = vpop.f32.mrb[65].mxu1  ;;  %v5599_v11 = vadd.f32 %v9188_v56, %v3868_v6 }
 0x61a   : > { %4594 = vst [vmem:[%s9246_s26 + $0x30] sm:$0xff] %v4562_v26  ;;  %v4279_v8 = vadd.f32 1.0, %v6262_v48  ;;  %6273 = vrcp.f32 %v4406_v0  ;;  %v4803_v22 = vadd.f32 -1.0, %v4310_v45  ;;  %v9953_v45 = vld [vmem:[#allocation63_spill] sm:$0xff]  ;;  %v9954_v26 = vld [vmem:[#allocation26_spill] sm:$0xff]  ;;  %vm4507_vm11 = vcmp.gt.f32.partialorder %v9304_v44, 20.0 }
 0x61b   : > { %v6264_v49 = vpop.eup %6263  ;;  %v4531_v62 = vsel %vm4499_vm15, %v9227_v19, %v4467_v28  ;;  %v4234_v15 = vmul.f32 1.442695, %v4187_v61  ;;  %v9315_v36 = vadd.f32 %v5599_v11, %v9025_v32 }
 0x61c   : > { %v6266_v40 = vpop.eup %6265  ;;  %v4563_v20 = vadd.f32 %v4531_v62, %v9951_v63  ;;  %v4311_v31 = vmul.f32 %v4279_v8, %v4279_v8  ;;  %v4280_v5 = vadd.f32 1.0, %v6264_v49  ;;  %v3873_v23 = vpop.f32.mrb[66].mxu1  ;;  %v4374_v27 = vmul.f32 %v4803_v22, %v9254_v2  ;;  %v9956_v63 = vld [vmem:[#allocation62_spill] sm:$0xff] }
 0x61d   : > { %v4468_v13 = vmul.f32 %v6266_v40, %v4372_v30  ;;  %6275 = vpow2.f32 %v4234_v15  ;;  %v5600_v60 = vadd.f32 %v9188_v56, %v3873_v23  ;;  %v3875_v10 = vpop.f32.mrb[67].mxu1  ;;  %v4188_v41 = vmin.f32 %v9315_v36, 20.0 }
 0x61e   : > { %4595 = vst [vmem:[%s9246_s26 + $0x38] sm:$0xff] %v4563_v20  ;;  %v4407_v19 = vadd.f32 1.0, %v4311_v31  ;;  %v4312_v4 = vmul.f32 %v4280_v5, %v4280_v5  ;;  %vm4508_vm0 = vcmp.gt.f32.partialorder %v9315_v36, 20.0 }
 0x61f   : > { %v4532_v46 = vsel %vm4500_vm2, %v9233_v39, %v4468_v13  ;;  %v9323_v16 = vadd.f32 %v5600_v60, %v9022_v14  ;;  %v6268_v32 = vpop.eup %6267  ;;  %v4236_v3 = vmul.f32 1.442695, %v4188_v41  ;;  %v4804_v14 = vadd.f32 -1.0, %v4311_v31  ;;  %v9957_v41 = vld [vmem:[#allocation65_spill] sm:$0xff] }
 0x620   : > { %v4564_v25 = vadd.f32 %v4532_v46, %v9952_v57  ;;  %6277 = vrcp.f32 %v4407_v19  ;;  %v3878_v59 = vpop.f32.mrb[68].mxu1  ;;  %v4408_v7 = vadd.f32 1.0, %v4312_v4  ;;  %v4281_v1 = vadd.f32 1.0, %v6268_v32 }
 0x621   : > { %v4189_v35 = vmin.f32 %v9323_v16, 20.0  ;;  %v3880_v55 = vpop.f32.mrb[69].mxu1  ;;  %v5601_v39 = vadd.f32 %v9188_v56, %v3878_v59  ;;  %v4375_v38 = vmul.f32 %v4804_v14, %v9265_v24  ;;  %v4805_v8 = vadd.f32 -1.0, %v4312_v4 }
 0x622   : > { %v6270_v52 = vpop.eup %6269  ;;  %4596 = vst [vmem:[%s9246_s26 + $0x40] sm:$0xff] %v4564_v25  ;;  %6279 = vrcp.f32 %v4408_v7  ;;  %v4313_v54 = vmul.f32 %v4281_v1, %v4281_v1  ;;  %v9958_v1 = vld [vmem:[#allocation28_spill] sm:$0xff]  ;;  %vm4509_vm1 = vcmp.gt.f32.partialorder %v9323_v16, 20.0 }
 0x623   : > { %v6272_v29 = vpop.eup %6271  ;;  %v4469_v17 = vmul.f32 %v6270_v52, %v4373_v34  ;;  %v4238_v58 = vmul.f32 1.442695, %v4189_v35  ;;  %6281 = vpow2.f32 %v4236_v3  ;;  %v9333_v53 = vadd.f32 %v5601_v39, %v9953_v45  ;;  %v9960_v45 = vld [vmem:[#allocation29_spill] sm:$0xff] }
 0x624   : > { %v4282_v42 = vadd.f32 1.0, %v6272_v29  ;;  %v3883_v21 = vpop.f32.mrb[70].mxu1  ;;  %v6274_v18 = vpop.eup %6273  ;;  %v4409_v37 = vadd.f32 1.0, %v4313_v54  ;;  %v4376_v10 = vmul.f32 %v4805_v8, %v9274_v9  ;;  %v4806_v19 = vadd.f32 -1.0, %v4313_v54  ;;  %v9959_v54 = vld [vmem:[#allocation64_spill] sm:$0xff] }
 0x625   : > { %v4533_v12 = vsel %vm4501_vm4, %v9243_v50, %v4469_v17  ;;  %6283 = vpow2.f32 %v4238_v58  ;;  %v3885_v51 = vpop.f32.mrb[71].mxu1  ;;  %v4470_v48 = vmul.f32 %v6274_v18, %v4374_v27  ;;  %v4190_v0 = vmin.f32 %v9333_v53, 20.0 }
 0x626   : > { %v4565_v6 = vadd.f32 %v4533_v12, %v9954_v26  ;;  %v4314_v28 = vmul.f32 %v4282_v42, %v4282_v42  ;;  %6285 = vrcp.f32 %v4409_v37  ;;  %v5602_v30 = vadd.f32 %v9188_v56, %v3883_v21 }
 0x627   : > { %v6276_v61 = vpop.eup %6275  ;;  %v4534_v50 = vsel %vm4502_vm5, %v9254_v2, %v4470_v48  ;;  %v4240_v40 = vmul.f32 1.442695, %v4190_v0  ;;  %v4377_v29 = vmul.f32 %v4806_v19, %v9285_v43  ;;  %vm4510_vm3 = vcmp.gt.f32.partialorder %v9333_v53, 20.0 }
 0x628   : > { %4597 = vst [vmem:[%s9246_s26 + $0x48] sm:$0xff] %v4565_v6  ;;  %v4410_v11 = vadd.f32 1.0, %v4314_v28  ;;  %v4283_v49 = vadd.f32 1.0, %v6276_v61  ;;  %v3888_v62 = vpop.f32.mrb[72].mxu1  ;;  %v4566_v15 = vadd.f32 %v4534_v50, %v9955_v33  ;;  %v9345_v20 = vadd.f32 %v5602_v30, %v9956_v63  ;;  %v9961_v61 = vld [vmem:[#allocation68_spill] sm:$0xff]  ;;  %v9962_v33 = vld [vmem:[#allocation30_spill] sm:$0xff] }
 0x629   : > { %v5603_v31 = vadd.f32 %v9188_v56, %v3888_v62  ;;  %v3890_v5 = vpop.f32.mrb[73].mxu1  ;;  %v4807_v55 = vadd.f32 -1.0, %v4314_v28 }
 0x62a   : > { %v6278_v23 = vpop.eup %6277  ;;  %6287 = vrcp.f32 %v4410_v11  ;;  %v4315_v13 = vmul.f32 %v4283_v49, %v4283_v49  ;;  %4598 = vst [vmem:[%s9246_s26 + $0x50] sm:$0xff] %v4566_v15  ;;  %v4191_v2 = vmin.f32 %v9345_v20, 20.0  ;;  %vm4511_vm10 = vcmp.gt.f32.partialorder %v9345_v20, 20.0 }
 0x62b   : > { %v4471_v60 = vmul.f32 %v6278_v23, %v4375_v38  ;;  %6289 = vpow2.f32 %v4240_v40  ;;  %v9353_v46 = vadd.f32 %v5603_v31, %v9957_v41  ;;  %v4378_v6 = vmul.f32 %v4807_v55, %v9294_v47  ;;  %v9965_v55 = vld [vmem:[#allocation32_spill] sm:$0xff] }
 0x62c   : > { %v4411_v4 = vadd.f32 1.0, %v4315_v13  ;;  %v3893_v32 = vpop.f32.mrb[74].mxu1  ;;  %v6280_v57 = vpop.eup %6279  ;;  %v4242_v34 = vmul.f32 1.442695, %v4191_v2  ;;  %v4808_v28 = vadd.f32 -1.0, %v4315_v13  ;;  %v9963_v2 = vld [vmem:[#allocation31_spill] sm:$0xff] }
 0x62d   : > { %v4535_v25 = vsel %vm4503_vm6, %v9265_v24, %v4471_v60  ;;  %v5604_v22 = vadd.f32 %v9188_v56, %v3893_v32  ;;  %v3895_v59 = vpop.f32.mrb[75].mxu1  ;;  %v6282_v7 = vpop.eup %6281  ;;  %v4472_v35 = vmul.f32 %v6280_v57, %v4376_v10  ;;  %v4192_v39 = vmin.f32 %v9353_v46, 20.0 }
 0x62e   : > { %v4567_v3 = vadd.f32 %v4535_v25, %v9958_v1  ;;  %6291 = vrcp.f32 %v4411_v4  ;;  %v4284_v14 = vadd.f32 1.0, %v6282_v7  ;;  %v9964_v25 = vld [vmem:[#allocation67_spill] sm:$0xff]  ;;  %vm4512_vm12 = vcmp.gt.f32.partialorder %v9353_v46, 20.0 }
 0x62f   : > { %v6284_v52 = vpop.eup %6283  ;;  %6293 = vpow2.f32 %v4242_v34  ;;  %v4536_v24 = vsel %vm4504_vm7, %v9274_v9, %v4472_v35  ;;  %v9365_v58 = vadd.f32 %v5604_v22, %v9959_v54  ;;  %v4244_v12 = vmul.f32 1.442695, %v4192_v39 }
 0x630   : > { %4599 = vst [vmem:[%s9246_s26 + $0x58] sm:$0xff] %v4567_v3  ;;  %v4285_v17 = vadd.f32 1.0, %v6284_v52  ;;  %v3898_v27 = vpop.f32.mrb[76].mxu1  ;;  %v6286_v42 = vpop.eup %6285  ;;  %v4568_v21 = vadd.f32 %v4536_v24, %v9960_v45  ;;  %v4316_v18 = vmul.f32 %v4284_v14, %v4284_v14 }
 0x631   : > { %v5605_v37 = vadd.f32 %v9188_v56, %v3898_v27  ;;  %v3900_v51 = vpop.f32.mrb[77].mxu1  ;;  %v4473_v26 = vmul.f32 %v6286_v42, %v4377_v29  ;;  %v4193_v9 = vmin.f32 %v9365_v58, 20.0  ;;  %6295 = vpow2.f32 %v4244_v12 }
 0x632   : > { %v4317_v48 = vmul.f32 %v4285_v17, %v4285_v17  ;;  %4600 = vst [vmem:[%s9246_s26 + $0x60] sm:$0xff] %v4568_v21  ;;  %v4412_v0 = vadd.f32 1.0, %v4316_v18  ;;  %v4809_v22 = vadd.f32 -1.0, %v4316_v18  ;;  %vm4513_vm13 = vcmp.gt.f32.partialorder %v9365_v58, 20.0 }
 0x633   : > { %v9373_v38 = vadd.f32 %v5605_v37, %v9961_v61  ;;  %v4537_v50 = vsel %vm4505_vm8, %v9285_v43, %v4473_v26  ;;  %v4246_v11 = vmul.f32 1.442695, %v4193_v9  ;;  %v4379_v43 = vmul.f32 %v4808_v28, %v9304_v44  ;;  %v9966_v61 = vld [vmem:[#allocation33_spill] sm:$0xff] }
 0x634   : > { %v6288_v30 = vpop.eup %6287  ;;  %v4413_v8 = vadd.f32 1.0, %v4317_v48  ;;  %v3903_v49 = vpop.f32.mrb[78].mxu1  ;;  %v4569_v15 = vadd.f32 %v4537_v50, %v9962_v33  ;;  %6297 = vrcp.f32 %v4412_v0  ;;  %v4810_v3 = vadd.f32 -1.0, %v4317_v48 }
 0x635   : > { %v6290_v62 = vpop.eup %6289  ;;  %v4474_v40 = vmul.f32 %v6288_v30, %v4378_v6  ;;  %v3905_v63 = vpop.f32.mrb[79].mxu1  ;;  %v4194_v5 = vmin.f32 %v9373_v38, 20.0  ;;  %v5606_v13 = vadd.f32 %v9188_v56, %v3903_v49  ;;  %v4380_v54 = vmul.f32 %v4809_v22, %v9315_v36 }
 0x636   : > { %6299 = vrcp.f32 %v4413_v8  ;;  %v4286_v31 = vadd.f32 1.0, %v6290_v62  ;;  %4601 = vst [vmem:[%s9246_s26 + $0x68] sm:$0xff] %v4569_v15  ;;  %vm4514_vm14 = vcmp.gt.f32.partialorder %v9373_v38, 20.0 }
 0x637   : > { %v4538_v23 = vsel %vm4506_vm9, %v9294_v47, %v4474_v40  ;;  %6301 = vpow2.f32 %v4246_v11  ;;  %v4248_v4 = vmul.f32 1.442695, %v4194_v5  ;;  %v9390_v34 = vadd.f32 %v5606_v13, %v9964_v25  ;;  %v9967_v11 = vld [vmem:[#allocation34_spill] sm:$0xff] }
 0x638   : > { %v6292_v60 = vpop.eup %6291  ;;  %v4570_v10 = vadd.f32 %v4538_v23, %v9963_v2  ;;  %v4318_v19 = vmul.f32 %v4286_v31, %v4286_v31  ;;  %v9386_v41 = vpop.f32.mrb[80].mxu1 }
 0x639   : > { %v6294_v32 = vpop.eup %6293  ;;  %v4475_v57 = vmul.f32 %v6292_v60, %v4379_v43  ;;  %v3910_v47 = vpop.f32.mrb[81].mxu1  ;;  %6303 = vpow2.f32 %v4248_v4  ;;  %v4195_v35 = vmin.f32 %v9390_v34, 20.0  ;;  %vm4515_vm15 = vcmp.gt.f32.partialorder %v9390_v34, 20.0 }
 0x63a   : > { %4602 = vst [vmem:[%s9246_s26 + $0x70] sm:$0xff] %v4570_v10  ;;  %v4414_v59 = vadd.f32 1.0, %v4318_v19  ;;  %v4287_v7 = vadd.f32 1.0, %v6294_v32  ;;  %v4811_v6 = vadd.f32 -1.0, %v4318_v19 }
 0x63b   : > { %v4539_v1 = vsel %vm4507_vm11, %v9304_v44, %v4475_v57  ;;  %v6296_v24 = vpop.eup %6295  ;;  %v4250_v29 = vmul.f32 1.442695, %v4195_v35  ;;  %v4381_v44 = vmul.f32 %v4810_v3, %v9323_v16  ;;  %v9968_v57 = vld [vmem:[#allocation35_spill] sm:$0xff] }
 0x63c   : > { %v4571_v52 = vadd.f32 %v4539_v1, %v9965_v55  ;;  %6305 = vrcp.f32 %v4414_v59  ;;  %v4319_v14 = vmul.f32 %v4287_v7, %v4287_v7  ;;  %v9396_v39 = vpop.f32.mrb[82].mxu1  ;;  %v4288_v42 = vadd.f32 1.0, %v6296_v24 }
 0x63d   : > { %v3915_v17 = vpop.f32.mrb[83].mxu1  ;;  %6307 = vpow2.f32 %v4250_v29  ;;  %v4382_v15 = vmul.f32 %v4811_v6, %v9333_v53 }
 0x63e   : > { %4603 = vst [vmem:[%s9246_s26 + $0x78] sm:$0xff] %v4571_v52  ;;  %v4415_v27 = vadd.f32 1.0, %v4319_v14  ;;  %v6298_v45 = vpop.eup %6297  ;;  %v4320_v12 = vmul.f32 %v4288_v42, %v4288_v42  ;;  %v9969_v52 = vld [vmem:[#allocation36_spill] sm:$0xff] }
 0x63f   : > { %v4476_v18 = vmul.f32 %v6298_v45, %v4380_v54 }
 0x640   : > { %v6300_v21 = vpop.eup %6299  ;;  %6309 = vrcp.f32 %v4415_v27  ;;  %v9401_v37 = vpop.f32.mrb[84].mxu1  ;;  %v4416_v28 = vadd.f32 1.0, %v4320_v12  ;;  %v4813_v10 = vadd.f32 -1.0, %v4320_v12 }
 0x641   : > { %v6302_v51 = vpop.eup %6301  ;;  %v4477_v26 = vmul.f32 %v6300_v21, %v4381_v44  ;;  %v3920_v48 = vpop.f32.mrb[85].mxu1  ;;  %v4540_v9 = vsel %vm4508_vm0, %v9315_v36, %v4476_v18  ;;  %v4812_v36 = vadd.f32 -1.0, %v4319_v14  ;;  %v9970_v44 = vld [vmem:[#allocation37_spill] sm:$0xff] }
 0x642   : > { %v4289_v0 = vadd.f32 1.0, %v6302_v51  ;;  %v4572_v30 = vadd.f32 %v4540_v9, %v9966_v61  ;;  %6311 = vrcp.f32 %v4416_v28  ;;  %v9971_v9 = vld [vmem:[#allocation38_spill] sm:$0xff]  ;;  %v5608_v61 = vadd.f32 %v9188_v56, %v9396_v39 }
 0x643   : > { %v4541_v50 = vsel %vm4509_vm1, %v9323_v16, %v4477_v26  ;;  %v6304_v8 = vpop.eup %6303  ;;  %v4383_v2 = vmul.f32 %v4812_v36, %v9345_v20 }
 0x644   : > { %v4573_v49 = vadd.f32 %v4541_v50, %v9967_v11  ;;  %v4321_v62 = vmul.f32 %v4289_v0, %v4289_v0  ;;  %v9409_v33 = vpop.f32.mrb[86].mxu1  ;;  %4604 = vst [vmem:[%s9246_s26 + $0x80] sm:$0xff] %v4572_v30  ;;  %v4290_v40 = vadd.f32 1.0, %v6304_v8  ;;  %v5607_v50 = vadd.f32 %v9188_v56, %v9386_v41  ;;  %v9972_v11 = vld [vmem:[#allocation39_spill] sm:$0xff] }
 0x645   : > { %v3925_v63 = vpop.f32.mrb[87].mxu1  ;;  %v5610_v39 = vadd.f32 %v9188_v56, %v9409_v33  ;;  %v5609_v41 = vadd.f32 %v9188_v56, %v9401_v37 }
 0x646   : > { %v6306_v31 = vpop.eup %6305  ;;  %4605 = vst [vmem:[%s9246_s26 + $0x88] sm:$0xff] %v4573_v49  ;;  %v4417_v5 = vadd.f32 1.0, %v4321_v62  ;;  %v4322_v43 = vmul.f32 %v4290_v40, %v4290_v40  ;;  %v4814_v3 = vadd.f32 -1.0, %v4321_v62 }
 0x647   : > { %v4478_v23 = vmul.f32 %v6306_v31, %v4382_v15  ;;  %v6308_v13 = vpop.eup %6307 }
 0x648   : > { %6313 = vrcp.f32 %v4417_v5  ;;  %v9415_v16 = vpop.f32.mrb[88].mxu1  ;;  %v4418_v19 = vadd.f32 1.0, %v4322_v43  ;;  %v4291_v47 = vadd.f32 1.0, %v6308_v13  ;;  %v4815_v17 = vadd.f32 -1.0, %v4322_v43 }
 0x649   : > { %v4542_v60 = vsel %vm4510_vm3, %v9333_v53, %v4478_v23  ;;  %v3930_v4 = vpop.f32.mrb[89].mxu1  ;;  %v4384_v53 = vmul.f32 %v4813_v10, %v9353_v46 }
 0x64a   : > { %v6310_v32 = vpop.eup %6309  ;;  %v4574_v25 = vadd.f32 %v4542_v60, %v9968_v57  ;;  %6315 = vrcp.f32 %v4418_v19  ;;  %v4323_v59 = vmul.f32 %v4291_v47, %v4291_v47  ;;  %v4386_v12 = vmul.f32 %v4815_v17, %v9373_v38  ;;  %v6410_v4 = vld [vmem:[#allocation11] ss:$0 sm:$0xff] }
 0x64b   : > { %v4479_v22 = vmul.f32 %v6310_v32, %v4383_v2  ;;  %v9973_v2 = vld [vmem:[#allocation40_spill] sm:$0xff]  ;;  %v5611_v56 = vadd.f32 %v6410_v4, %v9415_v16 }
 0x64c   : > { %4606 = vst [vmem:[%s9246_s26 + $0x90] sm:$0xff] %v4574_v25  ;;  %v3933_v7 = vpop.f32.mrb[90].mxu1  ;;  %v6312_v55 = vpop.eup %6311  ;;  %v4419_v24 = vadd.f32 1.0, %v4323_v59  ;;  %v4816_v48 = vadd.f32 -1.0, %v4323_v59 }
 0x64d   : > { %v4543_v1 = vsel %vm4511_vm10, %v9345_v20, %v4479_v22  ;;  %v3935_v35 = vpop.f32.mrb[91].mxu1  ;;  %v4480_v29 = vmul.f32 %v6312_v55, %v4384_v53  ;;  %v4385_v20 = vmul.f32 %v4814_v3, %v9365_v58  ;;  %v5612_v32 = vadd.f32 %v6410_v4, %v3933_v7 }
 0x64e   : > { %v4575_v14 = vadd.f32 %v4543_v1, %v9969_v52  ;;  %6317 = vrcp.f32 %v4419_v24  ;;  %v4387_v49 = vmul.f32 %v4816_v48, %v9390_v34 }
 0x64f   : > { %v4544_v27 = vsel %vm4512_vm12, %v9353_v46, %v4480_v29 }
 0x650   : > { %4607 = vst [vmem:[%s9246_s26 + $0x98] sm:$0xff] %v4575_v14  ;;  %v3938_v54 = vpop.f32.mrb[92].mxu1  ;;  %v4576_v21 = vadd.f32 %v4544_v27, %v9970_v44 }
 0x651   : > { %v3940_v42 = vpop.f32.mrb[93].mxu1  ;;  %v5613_v3 = vadd.f32 %v6410_v4, %v3938_v54 }
 0x652   : > { %v6314_v45 = vpop.eup %6313  ;;  %4608 = vst [vmem:[%s9246_s26 + $0xa0] sm:$0xff] %v4576_v21 }
 0x653   : > { %v4481_v18 = vmul.f32 %v6314_v45, %v4385_v20 }
 0x654   : > { %v3943_v51 = vpop.f32.mrb[94].mxu1  ;;  %v6316_v26 = vpop.eup %6315 }
 0x655   : > { %v4545_v6 = vsel %vm4513_vm13, %v9365_v58, %v4481_v18  ;;  %v3945_v46 = vpop.f32.mrb[95].mxu1  ;;  %v4482_v0 = vmul.f32 %v6316_v26, %v4386_v12  ;;  %v5614_v53 = vadd.f32 %v6410_v4, %v3943_v51 }
 0x656   : > { %v4577_v28 = vadd.f32 %v4545_v6, %v9971_v9 }
 0x657   : > { %v4546_v30 = vsel %vm4514_vm14, %v9373_v38, %v4482_v0 }
 0x658   : > { %4609 = vst [vmem:[%s9246_s26 + $0xa8] sm:$0xff] %v4577_v28  ;;  %v5077_v8 = vpop.f32.mrb[96].mxu1  ;;  %v4578_v58 = vadd.f32 %v4546_v30, %v9972_v11  ;;  %v6318_v36 = vpop.eup %6317 }
 0x659   : > { %v9444_v62 = vadd.f32 %v5608_v61, %v5077_v8  ;;  %v4133_v15 = vpop.f32.mrb[97].mxu1  ;;  %v4483_v63 = vmul.f32 %v6318_v36, %v4387_v49 }
 0x65a   : > { %v9446_v40 = vadd.f32 %v5607_v50, %v4133_v15  ;;  %4610 = vst [vmem:[%s9246_s26 + $0xb0] sm:$0xff] %v4578_v58 }
 0x65b   : > { %v4197_v38 = vmin.f32 %v9444_v62, 20.0  ;;  %v4547_v23 = vsel %vm4515_vm15, %v9390_v34, %v4483_v63  ;;  %vm4517_vm2 = vcmp.gt.f32.partialorder %v9444_v62, 20.0 }
 0x65c   : > { %v4196_v31 = vmin.f32 %v9446_v40, 20.0  ;;  %v5080_v5 = vpop.f32.mrb[98].mxu1  ;;  %v4579_v10 = vadd.f32 %v4547_v23, %v9973_v2  ;;  %vm4516_vm4 = vcmp.gt.f32.partialorder %v9446_v40, 20.0 }
 0x65d   : > { %v4254_v43 = vmul.f32 1.442695, %v4197_v38  ;;  %v9457_v13 = vadd.f32 %v5610_v39, %v5080_v5  ;;  %v4143_v60 = vpop.f32.mrb[99].mxu1 }
 0x65e   : > { %v4252_v33 = vmul.f32 1.442695, %v4196_v31  ;;  %v9460_v19 = vadd.f32 %v5609_v41, %v4143_v60  ;;  %4611 = vst [vmem:[%s9246_s26 + $0xb8] sm:$0xff] %v4579_v10 }
 0x65f   : > { %6319 = vpow2.f32 %v4254_v43  ;;  %v4199_v57 = vmin.f32 %v9457_v13, 20.0  ;;  %vm4519_vm5 = vcmp.gt.f32.partialorder %v9457_v13, 20.0 }
 0x660   : > { %6321 = vpow2.f32 %v4252_v33  ;;  %v4198_v34 = vmin.f32 %v9460_v19, 20.0  ;;  %v5083_v37 = vpop.f32.mrb[100].mxu1  ;;  %vm4518_vm6 = vcmp.gt.f32.partialorder %v9460_v19, 20.0 }
 0x661   : > { %v4258_v25 = vmul.f32 1.442695, %v4199_v57  ;;  %v9466_v47 = vadd.f32 %v5612_v32, %v5083_v37  ;;  %v4153_v22 = vpop.f32.mrb[101].mxu1 }
 0x662   : > { %v4256_v59 = vmul.f32 1.442695, %v4198_v34  ;;  %v9468_v1 = vadd.f32 %v5611_v56, %v4153_v22 }
 0x663   : > { %6323 = vpow2.f32 %v4258_v25  ;;  %v4201_v7 = vmin.f32 %v9466_v47, 20.0  ;;  %vm4521_vm7 = vcmp.gt.f32.partialorder %v9466_v47, 20.0 }
 0x664   : > { %6325 = vpow2.f32 %v4256_v59  ;;  %v4200_v35 = vmin.f32 %v9468_v1, 20.0  ;;  %v5086_v16 = vpop.f32.mrb[102].mxu1  ;;  %vm4520_vm8 = vcmp.gt.f32.partialorder %v9468_v1, 20.0 }
 0x665   : > { %v4262_v55 = vmul.f32 1.442695, %v4201_v7  ;;  %v9472_v52 = vadd.f32 %v5614_v53, %v5086_v16  ;;  %v4163_v14 = vpop.f32.mrb[103].mxu1 }
 0x666   : > { %v4260_v24 = vmul.f32 1.442695, %v4200_v35  ;;  %v9474_v29 = vadd.f32 %v5613_v3, %v4163_v14  ;;  %v9974_v3 = vld [vmem:[#allocation42_spill] sm:$0xff] }
 0x667   : > { %6327 = vpow2.f32 %v4262_v55  ;;  %v4203_v17 = vmin.f32 %v9472_v52, 20.0  ;;  %vm4523_vm9 = vcmp.gt.f32.partialorder %v9472_v52, 20.0 }
 0x668   : > { %6329 = vpow2.f32 %v4260_v24  ;;  %v4202_v27 = vmin.f32 %v9474_v29, 20.0  ;;  %vm4522_vm11 = vcmp.gt.f32.partialorder %v9474_v29, 20.0 }
 0x669   : > { %v6320_v20 = vpop.eup %6319  ;;  %v4266_v42 = vmul.f32 1.442695, %v4203_v17  ;;  %v9975_v17 = vld [vmem:[#allocation41_spill] sm:$0xff] }
 0x66a   : > { %v6322_v54 = vpop.eup %6321  ;;  %v4293_v45 = vadd.f32 1.0, %v6320_v20  ;;  %v4264_v44 = vmul.f32 1.442695, %v4202_v27 }
 0x66b   : > { %v4292_v21 = vadd.f32 1.0, %v6322_v54  ;;  %6331 = vpow2.f32 %v4266_v42 }
 0x66c   : > { %v4325_v18 = vmul.f32 %v4293_v45, %v4293_v45  ;;  %6333 = vpow2.f32 %v4264_v44  ;;  %v9976_v44 = vld [vmem:[#allocation44_spill] sm:$0xff] }
 0x66d   : > { %v6324_v12 = vpop.eup %6323  ;;  %v4324_v51 = vmul.f32 %v4292_v21, %v4292_v21 }
 0x66e   : > { %v6326_v26 = vpop.eup %6325  ;;  %v4421_v6 = vadd.f32 1.0, %v4325_v18  ;;  %v4295_v48 = vadd.f32 1.0, %v6324_v12  ;;  %v4818_v36 = vadd.f32 -1.0, %v4325_v18 }
 0x66f   : > { %v4420_v46 = vadd.f32 1.0, %v4324_v51  ;;  %v4294_v9 = vadd.f32 1.0, %v6326_v26  ;;  %v4817_v38 = vadd.f32 -1.0, %v4324_v51 }
 0x670   : > { %6335 = vrcp.f32 %v4421_v6  ;;  %v4327_v28 = vmul.f32 %v4295_v48, %v4295_v48  ;;  %v4389_v60 = vmul.f32 %v4818_v36, %v9444_v62  ;;  %v9977_v6 = vld [vmem:[#allocation43_spill] sm:$0xff] }
 0x671   : > { %v6328_v0 = vpop.eup %6327  ;;  %6337 = vrcp.f32 %v4420_v46  ;;  %v4326_v61 = vmul.f32 %v4294_v9, %v4294_v9  ;;  %v4388_v4 = vmul.f32 %v4817_v38, %v9446_v40 }
 0x672   : > { %v6330_v30 = vpop.eup %6329  ;;  %v4423_v50 = vadd.f32 1.0, %v4327_v28  ;;  %v4297_v8 = vadd.f32 1.0, %v6328_v0  ;;  %v4820_v2 = vadd.f32 -1.0, %v4327_v28  ;;  %v9978_v0 = vld [vmem:[#allocation46_spill] sm:$0xff] }
 0x673   : > { %v4422_v11 = vadd.f32 1.0, %v4326_v61  ;;  %v4296_v58 = vadd.f32 1.0, %v6330_v30  ;;  %v4819_v32 = vadd.f32 -1.0, %v4326_v61 }
 0x674   : > { %6339 = vrcp.f32 %v4423_v50  ;;  %v4329_v49 = vmul.f32 %v4297_v8, %v4297_v8  ;;  %v4391_v59 = vmul.f32 %v4820_v2, %v9457_v13 }
 0x675   : > { %v6332_v15 = vpop.eup %6331  ;;  %6341 = vrcp.f32 %v4422_v11  ;;  %v4328_v63 = vmul.f32 %v4296_v58, %v4296_v58  ;;  %v4390_v55 = vmul.f32 %v4819_v32, %v9460_v19  ;;  %v9979_v11 = vld [vmem:[#allocation45_spill] sm:$0xff] }
 0x676   : > { %v6334_v39 = vpop.eup %6333  ;;  %v4425_v41 = vadd.f32 1.0, %v4329_v49  ;;  %v4299_v31 = vadd.f32 1.0, %v6332_v15  ;;  %v4822_v53 = vadd.f32 -1.0, %v4329_v49 }
 0x677   : > { %v4424_v5 = vadd.f32 1.0, %v4328_v63  ;;  %v4298_v23 = vadd.f32 1.0, %v6334_v39  ;;  %v4821_v14 = vadd.f32 -1.0, %v4328_v63  ;;  %v9981_v39 = vld [vmem:[#allocation47_spill] sm:$0xff] }
 0x678   : > { %6343 = vrcp.f32 %v4425_v41  ;;  %v4331_v43 = vmul.f32 %v4299_v31, %v4299_v31 }
 0x679   : > { %6345 = vrcp.f32 %v4424_v5  ;;  %v4330_v10 = vmul.f32 %v4298_v23, %v4298_v23  ;;  %v4392_v12 = vmul.f32 %v4821_v14, %v9468_v1 }
 0x67a   : > { %v6336_v33 = vpop.eup %6335  ;;  %v4427_v57 = vadd.f32 1.0, %v4331_v43  ;;  %v4824_v54 = vadd.f32 -1.0, %v4331_v43 }
 0x67b   : > { %v6338_v56 = vpop.eup %6337  ;;  %v4485_v34 = vmul.f32 %v6336_v33, %v4389_v60  ;;  %v4426_v37 = vadd.f32 1.0, %v4330_v10  ;;  %v4823_v51 = vadd.f32 -1.0, %v4330_v10 }
 0x67c   : > { %v4484_v25 = vmul.f32 %v6338_v56, %v4388_v4  ;;  %6347 = vrcp.f32 %v4427_v57 }
 0x67d   : > { %v4549_v22 = vsel %vm4517_vm2, %v9444_v62, %v4485_v34  ;;  %6349 = vrcp.f32 %v4426_v37  ;;  %v4394_v50 = vmul.f32 %v4823_v51, %v9474_v29 }
 0x67e   : > { %v6340_v7 = vpop.eup %6339  ;;  %v4581_v35 = vadd.f32 %v4549_v22, %v9974_v3  ;;  %v4548_v16 = vsel %vm4516_vm4, %v9446_v40, %v4484_v25  ;;  %v4393_v40 = vmul.f32 %v4822_v53, %v9466_v47 }
 0x67f   : > { %v6342_v24 = vpop.eup %6341  ;;  %v4580_v27 = vadd.f32 %v4548_v16, %v9975_v17  ;;  %v4487_v20 = vmul.f32 %v6340_v7, %v4391_v59 }
 0x680   : > { %4613 = vst [vmem:[%s9246_s26 + $0xc8] sm:$0xff] %v4581_v35  ;;  %v4486_v62 = vmul.f32 %v6342_v24, %v4390_v55 }
 0x681   : > { %4612 = vst [vmem:[%s9246_s26 + $0xc0] sm:$0xff] %v4580_v27  ;;  %v4551_v42 = vsel %vm4519_vm5, %v9457_v13, %v4487_v20 }
 0x682   : > { %v6344_v45 = vpop.eup %6343  ;;  %v4583_v21 = vadd.f32 %v4551_v42, %v9976_v44  ;;  %v4550_v18 = vsel %vm4518_vm6, %v9460_v19, %v4486_v62  ;;  %v4395_v19 = vmul.f32 %v4824_v54, %v9472_v52 }
 0x683   : > { %v6346_v26 = vpop.eup %6345  ;;  %v4582_v48 = vadd.f32 %v4550_v18, %v9977_v6  ;;  %v4489_v46 = vmul.f32 %v6344_v45, %v4393_v40 }
 0x684   : > { %4615 = vst [vmem:[%s9246_s26 + $0xd8] sm:$0xff] %v4583_v21  ;;  %v4488_v13 = vmul.f32 %v6346_v26, %v4392_v12 }
 0x685   : > { %4614 = vst [vmem:[%s9246_s26 + $0xd0] sm:$0xff] %v4582_v48  ;;  %v4553_v9 = vsel %vm4521_vm7, %v9466_v47, %v4489_v46 }
 0x686   : > { %v6348_v28 = vpop.eup %6347  ;;  %v4585_v61 = vadd.f32 %v4553_v9, %v9978_v0  ;;  %v4552_v30 = vsel %vm4520_vm8, %v9468_v1, %v4488_v13  ;;  %v9980_v1 = vld [vmem:[#allocation48_spill] sm:$0xff] }
 0x687   : > { %v6350_v8 = vpop.eup %6349  ;;  %v4584_v58 = vadd.f32 %v4552_v30, %v9979_v11  ;;  %v4491_v49 = vmul.f32 %v6348_v28, %v4395_v19 }
 0x688   : > { %4617 = vst [vmem:[%s9246_s26 + $0xe8] sm:$0xff] %v4585_v61  ;;  %v4490_v47 = vmul.f32 %v6350_v8, %v4394_v50 }
 0x689   : > { %4616 = vst [vmem:[%s9246_s26 + $0xe0] sm:$0xff] %v4584_v58  ;;  %v4555_v15 = vsel %vm4523_vm9, %v9472_v52, %v4491_v49 }
 0x68a   : > { %v4587_v36 = vadd.f32 %v4555_v15, %v9980_v1  ;;  %v4554_v63 = vsel %vm4522_vm11, %v9474_v29, %v4490_v47 }
 0x68b   : > { %v4586_v38 = vadd.f32 %v4554_v63, %v9981_v39 }
 0x68c   : > { %4619 = vst [vmem:[%s9246_s26 + $0xf8] sm:$0xff] %v4587_v36 }
 0x68d   : > { %4618 = vst [vmem:[%s9246_s26 + $0xf0] sm:$0xff] %v4586_v38 }
 0x68e   : > { %6612 = shalt.err (!%p6609_p13)
}
 0x68f   : > { %s6613_s30 = scalar_lea.hbm %s9520_s17, 4096  ;;  %s6617_s16 = scalar_lea.hbm %s9574_s5, 8192 }
 0x690   : > { %p6614_p9 = scmp.ne.s32.totalorder %s9520_s17, %s6613_s30  ;;  %p6618_p6 = scmp.lt.u32.totalorder %s9520_s17, %s9574_s5 }
 0x691   : > { %p6619_p4 = scmp.lt.u32.totalorder %s6617_s16, %s6613_s30  ;;  %p6621_p3 = scmp.lt.u32.totalorder %s6613_s30, %s9520_s17 }
 0x692   : > { %p6615_p0 = pnand %p6614_p9, %p6882_p10 }
 0x693   : > { %p6620_p8 = por %p6619_p4, %p6618_p6 }
 0x694   : > { %p6616_p11 = pneg %p6615_p0 }
 0x695   : > { %p6622_p5 = por %p6621_p3, %p6620_p8 }
 0x697   : > { %p6623_p7 = pnand %p6622_p5, %p6616_p11 }
 0x699   : > { %6626 = shalt.err (!%p6623_p7)
}
 0x69a   : > { %s6685_s27 = smov 128   ;;  %s6686_s8 = smov 8  }
 0x69b   : > { %6020 = dma.vmem_to_hbm [thread:$0]  (%p6882_p10), %s9522_s13, 4096, %s9520_s17, %s4621_s22, %s6685_s27, %s6685_s27, %s6686_s8  }
 0x69c PF: > { %s4649_s28 = sand.u32 1, %s6661_s18   ;;  %p9982_p12 = scmp.ne.s32.totalorder %s9745_s25, 0 }
 0x69d   : > { %p9983_p1 = scmp.ge.s32.totalorder %s6673_s21, 2  ;;  %s4650_s11 = scalar_lea.sflag [#allocation5], %s4649_s28 }
 0x69f   : > { %p6040_p2 = pnand %p9983_p1, %p9982_p12 }
 0x6a1   : > { %6656 = dma.done.wait (!%p6040_p2), %s4650_s11, 4096  }
 0x6a2   : > { %6658 = vsyncadd (!%p6040_p2), %s4650_s11, 4294963200  ;;  %p20_p13 = scmp.ge.s32.totalorder %s6872_s14, 4   ;;  %s9984_s18 = smov %s6665_s19 }
 0x6a3   : > { %s9985_s19 = smov %s6669_s20  ;;  %s9986_s20 = smov %s6888_s10 }
 0x6a4   : > { %s9987_s21 = smov %s6872_s14  ;;  %22 = sbr.rel (!%p20_p13) target bundleno = 7 (0x7), region = 103 }
 0x6ab   :  { %4655 = vsyncpa [#allocation4], 1 }
 0x6ac   :  { %4657 = vsyncpa [#allocation4 + $0x1], 1 }
 0x6ad   :  { %4658 = vsyncpa [#allocation7], 1 }
 0x6ae   :  { %4659 = vsyncpa [#allocation10], 1 }
 0x6af   :  { %4660 = vsyncpa [#allocation5], 1 }
 0x6b0   :  { %4662 = vsyncpa [#allocation5 + $0x1], 1 }

</bundles_post_ra>
